<compile_context>
chip_gen: v7x
topology: tpu7x:2x2x1
jax: 0.10.0
libtpu: 0.0.40
codegen_flags: <defaults>
</compile_context>

<pallas_src>
import math
from functools import partial

import jax
import jax.numpy as jnp
from jax import lax
from jax.experimental import pallas as pl
from jax.experimental.pallas import tpu as pltpu

_VMEM = pl.BlockSpec(memory_space=pltpu.MemorySpace.VMEM)
_SMEM = pl.BlockSpec(memory_space=pltpu.MemorySpace.SMEM)
_HBM = pl.BlockSpec(memory_space=pl.ANY)


# ----------------------------------------------------------------------------
# Fused kernel: DMA-gather embedding -> stacked biLSTM -> linear head
# ----------------------------------------------------------------------------
def _fused_tagger_kernel(*refs, T, B, H, num_layers):
    """Ref layout (positional):
      refs[0]              tok     (T*B,)       int32  SMEM
      refs[1]              emb     (V, E)       f32    HBM (pl.ANY)
      refs[2 : 2+3L]       per layer: w_in (Ein, 8H), b_in (1, 8H), w_rec (2H, 8H)
      refs[2+3L]           W_out   (2H, O_pad)  f32
      refs[3+3L]           b_out   (1,  O_pad)  f32
      refs[4+3L]           out     (T*B, O_pad) f32
      refs[5+3L:]          scratch: x_buf (T*B, E), h_buf (T*B, 2H),
                           xp_buf (T*B, 8H), emb_sem (DMA semaphore, (1,))

    Gate order per direction follows PyTorch: [i, f, g, o]; the fused 8H gate
    block is [fwd 4H | rev 4H].  The g-gate columns were pre-scaled by 2 in
    the wrapper so tanh(a) = 2*sigmoid(2a) - 1 (no tanh push for the g gate).
    """
    tok_ref, emb_hbm = refs[0], refs[1]
    layer_refs = refs[2:2 + 3 * num_layers]
    w_out_ref = refs[2 + 3 * num_layers]
    b_out_ref = refs[3 + 3 * num_layers]
    out_ref = refs[4 + 3 * num_layers]
    x_buf, h_buf, xp_buf, emb_sem = refs[5 + 3 * num_layers:]

    rows = T * B
    vocab = emb_hbm.shape[0]

    # ---- Embedding: DMA row gather from the HBM-resident table. ------------
    # Token ids are scalars in SMEM; only the needed (1, E) rows travel
    # HBM -> VMEM.  Start every copy, then drain; all copies are the same size
    # so sharing one DMA semaphore is fine regardless of completion order.
    # TODO(synk): at realistic vocab / rows, dedupe ids and batch rows per DMA.
    def _row_copy(r):
        idx = jnp.minimum(tok_ref[r], vocab - 1)      # clamp OOB ids (safety)
        return pltpu.make_async_copy(
            emb_hbm.at[pl.ds(idx, 1), :], x_buf.at[pl.ds(r, 1), :],
            emb_sem.at[0])

    def _start(r, carry):
        _row_copy(r).start()
        return carry

    lax.fori_loop(0, rows, _start, 0, unroll=False)

    def _drain(r, carry):
        _row_copy(r).wait()
        return carry

    lax.fori_loop(0, rows, _drain, 0, unroll=False)

    x = x_buf[...]                                    # (rows, E) f32

    # ---- Stacked bidirectional LSTM (inter-layer dropout = identity). ------
    # NOTE(bf16): on v6e/v7x the MXU operands (x, w_in, h_both, w_rec, W_out)
    # can be cast to bf16 (keeping preferred_element_type=f32) for ~2-3x MXU
    # throughput; that needs the validation tolerance relaxed to ~1e-2, so it
    # is left off here to preserve 1e-4 parity with the PyTorch module.
    for l in range(num_layers):
        w_in_ref, b_in_ref, w_rec_ref = layer_refs[3 * l:3 * l + 3]

        # One fused input-projection matmul for both directions and all
        # timesteps: columns [0:4H] = fwd gates, [4H:8H] = rev gates.
        xp_buf[...] = (
            jnp.dot(x, w_in_ref[...], preferred_element_type=jnp.float32)
            + b_in_ref[...]
        )
        w_rec = w_rec_ref[...]                        # block-diag (2H, 8H)

        z_h = jnp.zeros((B, 2 * H), jnp.float32)
        z_c = jnp.zeros((B, H), jnp.float32)

        def body(t, carry):
            h_both, cf, cr = carry
            rf = pl.multiple_of(t * B, B)             # fwd timestep row offset
            rr = pl.multiple_of((T - 1 - t) * B, B)   # rev timestep row offset
            # (B, 8H) gate pre-activations: fwd half from row rf, rev half
            # from row rr (each half is 4H = 128 lanes -> concat is cheap).
            gx = jnp.concatenate(
                [xp_buf[pl.ds(rf, B), 0:4 * H],
                 xp_buf[pl.ds(rr, B), 4 * H:8 * H]], axis=1)
            # ONE recurrent MXU push per timestep: (B,2H) @ block-diag (2H,8H).
            g = gx + jnp.dot(h_both, w_rec, preferred_element_type=jnp.float32)
            s = jax.nn.sigmoid(g)                     # one EUP push over 8H
            i_f = s[:, 0:H]
            f_f = s[:, H:2 * H]
            g_f = 2.0 * s[:, 2 * H:3 * H] - 1.0       # tanh via sigmoid (VPU)
            o_f = s[:, 3 * H:4 * H]
            i_r = s[:, 4 * H:5 * H]
            f_r = s[:, 5 * H:6 * H]
            g_r = 2.0 * s[:, 6 * H:7 * H] - 1.0
            o_r = s[:, 7 * H:8 * H]
            cf = f_f * cf + i_f * g_f
            cr = f_r * cr + i_r * g_r
            c_t = jnp.tanh(jnp.concatenate([cf, cr], axis=1))   # one tanh push
            hf = o_f * c_t[:, 0:H]
            hr = o_r * c_t[:, H:2 * H]
            # Write h straight into the layer-output slab [h_fwd | h_rev].
            h_buf[pl.ds(rf, B), 0:H] = hf
            h_buf[pl.ds(rr, B), H:2 * H] = hr
            return (jnp.concatenate([hf, hr], axis=1), cf, cr)

        # Bounded unroll: full unroll only for small static T so the carried
        # h/c + w_rec live ranges do not spill the 64-vreg file.
        lax.fori_loop(0, T, body, (z_h, z_c, z_c),
                      unroll=(True if T <= 16 else 4))

        x = h_buf[...]                                # input to next stage
        # TODO(synk): on v7x, split the fwd/rev recurrences across the two
        # TensorCores (pl.core_map) instead of fusing them on one core.

    # ---- hidden2tag head, lane-dense padded output (dropout = identity). ---
    out_ref[...] = (
        jnp.dot(x, w_out_ref[...], preferred_element_type=jnp.float32)
        + b_out_ref[...]
    )


# ----------------------------------------------------------------------------
# Wrapper (layout plumbing + weight fusion only)
# ----------------------------------------------------------------------------
def _prep_layer_weights(layer, H):
    """Fold the tanh-as-sigmoid x2 into the g-gate columns, fuse fwd|rev."""
    def scale_g(w):
        return w.at[..., 2 * H:3 * H].multiply(2.0)

    wih_f, whh_f, b_f = (scale_g(layer["wih_f"]), scale_g(layer["whh_f"]),
                         scale_g(layer["b_f"]))
    wih_r, whh_r, b_r = (scale_g(layer["wih_r"]), scale_g(layer["whh_r"]),
                         scale_g(layer["b_r"]))
    w_in = jnp.concatenate([wih_f, wih_r], axis=1)            # (Ein, 8H)
    b_in = jnp.concatenate([b_f, b_r], axis=1)                # (1, 8H)
    w_rec = jnp.zeros((2 * H, 8 * H), jnp.float32)            # block-diagonal
    w_rec = w_rec.at[0:H, 0:4 * H].set(whh_f)
    w_rec = w_rec.at[H:2 * H, 4 * H:8 * H].set(whh_r)
    return w_in, b_in, w_rec


def bilstm_tagger_forward(sentences, params):
    T, B = sentences.shape
    emb_table = params["embedding"]                   # (V, E); stays in HBM
    layers = params["lstm_layers"]
    num_layers = len(layers)
    H = layers[0]["whh_f"].shape[0]
    E = emb_table.shape[1]

    W, b = params["hidden2tag"]
    O = W.shape[1]
    O_pad = ((O + 127) // 128) * 128                  # lane-dense head output
    W_pad = jnp.zeros((2 * H, O_pad), jnp.float32).at[:, :O].set(W)
    b_pad = jnp.zeros((1, O_pad), jnp.float32).at[:, :O].set(b)

    tok = sentences.reshape(T * B).astype(jnp.int32)

    weight_args = []
    for layer in layers:
        weight_args += list(_prep_layer_weights(layer, H))

    in_specs = [_SMEM, _HBM] + [_VMEM] * (3 * num_layers + 2)

    logits_pad = pl.pallas_call(
        partial(_fused_tagger_kernel, T=T, B=B, H=H, num_layers=num_layers),
        out_shape=jax.ShapeDtypeStruct((T * B, O_pad), jnp.float32),
        in_specs=in_specs,
        out_specs=_VMEM,
        scratch_shapes=[
            pltpu.VMEM((T * B, E), jnp.float32),      # gathered embeddings
            pltpu.VMEM((T * B, 2 * H), jnp.float32),  # layer output [hf | hr]
            pltpu.VMEM((T * B, 8 * H), jnp.float32),  # fused x-projection
            pltpu.SemaphoreType.DMA((1,)),            # embedding-gather sem
        ],
        compiler_params=pltpu.CompilerParams(
            vmem_limit_bytes=32 * 1024 * 1024),
        # TODO(synk): when T*B grows, tile the non-recurrent stages over a
        # 'parallel' row grid (BlockSpec pipelining) instead of holding every
        # slab VMEM-resident.
    )(tok, emb_table, *weight_args, W_pad, b_pad)

    return logits_pad[:, :O].reshape(T, B, O)


# ----------------------------------------------------------------------------
# Deterministic parameter init (shapes per nn.Embedding / nn.LSTM / nn.Linear)
# ----------------------------------------------------------------------------
def init_params(key, vocab, emb_dim, hidden, tagset, num_layers, padding_idx):
    n_keys = 1 + num_layers * 2 * 4 + 2
    keys = iter(jax.random.split(key, n_keys))

    emb = jax.random.normal(next(keys), (vocab, emb_dim), jnp.float32)
    emb = emb.at[padding_idx].set(0.0)                # padding_idx row = 0

    bound = 1.0 / math.sqrt(hidden)
    layers = []
    for l in range(num_layers):
        in_dim = emb_dim if l == 0 else 2 * hidden
        layer = {}
        for d in ("f", "r"):
            wih = jax.random.uniform(next(keys), (in_dim, 4 * hidden),
                                     jnp.float32, -bound, bound)
            whh = jax.random.uniform(next(keys), (hidden, 4 * hidden),
                                     jnp.float32, -bound, bound)
            b_ih = jax.random.uniform(next(keys), (1, 4 * hidden),
                                      jnp.float32, -bound, bound)
            b_hh = jax.random.uniform(next(keys), (1, 4 * hidden),
                                      jnp.float32, -bound, bound)
            layer[f"wih_{d}"] = wih
            layer[f"whh_{d}"] = whh
            layer[f"b_{d}"] = b_ih + b_hh
        layers.append(layer)

    wb = 1.0 / math.sqrt(2 * hidden)
    W = jax.random.uniform(next(keys), (2 * hidden, tagset), jnp.float32, -wb, wb)
    b = jax.random.uniform(next(keys), (1, tagset), jnp.float32, -wb, wb)
    return {"embedding": emb, "lstm_layers": layers, "hidden2tag": (W, b)}


# ----------------------------------------------------------------------------
# Pure-JAX reference for validation (standard LSTM math, unmodified gates)
# ----------------------------------------------------------------------------
def reference_forward(sentences, params):
    T, B = sentences.shape
    x = params["embedding"][sentences]                # (T, B, E)
    for layer in params["lstm_layers"]:
        H = layer["whh_f"].shape[0]

        def run(xs, wih, whh, b):
            def step(carry, xt):
                h, c = carry
                g = xt @ wih + h @ whh + b
                i = jax.nn.sigmoid(g[:, :H])
                f = jax.nn.sigmoid(g[:, H:2 * H])
                gg = jnp.tanh(g[:, 2 * H:3 * H])
                o = jax.nn.sigmoid(g[:, 3 * H:])
                c = f * c + i * gg
                h = o * jnp.tanh(c)
                return (h, c), h

            init = (jnp.zeros((B, H), jnp.float32), jnp.zeros((B, H), jnp.float32))
            _, hs = lax.scan(step, init, xs)
            return hs

        hf = run(x, layer["wih_f"], layer["whh_f"], layer["b_f"][0])
        hr = run(x[::-1], layer["wih_r"], layer["whh_r"], layer["b_r"][0])[::-1]
        x = jnp.concatenate([hf, hr], axis=-1)
    W, b = params["hidden2tag"]
    return x @ W + b[0]


# ----------------------------------------------------------------------------
if __name__ == "__main__":
    # Small shapes consistent with the module's forward:
    VOCAB = 64          # input_dim
    EMB = 32            # embedding_dim
    HIDDEN = 32         # hidden_dim
    TAGSET = 16         # tagset_dim
    NUM_LAYERS = 2      # num_layers
    PAD_IDX = 0         # padding_idx
    SEQ = 8             # sequence length
    BATCH = 8           # batch size

    key = jax.random.PRNGKey(0)
    k_param, k_data = jax.random.split(key)

    params = init_params(k_param, VOCAB, EMB, HIDDEN, TAGSET, NUM_LAYERS, PAD_IDX)
    sentences = jax.random.randint(k_data, (SEQ, BATCH), 0, VOCAB, dtype=jnp.int32)

    logits = jax.jit(bilstm_tagger_forward)(sentences, params)
    logits = jax.block_until_ready(logits)

    assert logits.shape == (SEQ, BATCH, TAGSET)
    assert logits.dtype == jnp.float32

    ref = jax.block_until_ready(reference_forward(sentences, params))
    assert jnp.allclose(logits, ref, atol=1e-4, rtol=1e-4), "mismatch vs reference"

    print("KERNEL_OK")
</pallas_src>

<mosaic_0001>
module attributes {stable_mosaic.version = 11 : i64} {
  func.func @_fused_tagger_kernel(%arg0: memref<64xi32, #tpu.memory_space<smem>>, %arg1: memref<64x32xf32, #tpu.memory_space<any>>, %arg2: memref<32x256xf32, #tpu.memory_space<vmem>>, %arg3: memref<1x256xf32, #tpu.memory_space<vmem>>, %arg4: memref<64x256xf32, #tpu.memory_space<vmem>>, %arg5: memref<64x256xf32, #tpu.memory_space<vmem>>, %arg6: memref<1x256xf32, #tpu.memory_space<vmem>>, %arg7: memref<64x256xf32, #tpu.memory_space<vmem>>, %arg8: memref<64x128xf32, #tpu.memory_space<vmem>>, %arg9: memref<1x128xf32, #tpu.memory_space<vmem>>, %arg10: memref<64x128xf32, #tpu.memory_space<vmem>>, %arg11: memref<64x32xf32, #tpu.memory_space<vmem>>, %arg12: memref<64x64xf32, #tpu.memory_space<vmem>>, %arg13: memref<64x256xf32, #tpu.memory_space<vmem>>, %arg14: memref<1x!tpu.dma_semaphore, #tpu.memory_space<semaphore_mem>>) attributes {dimension_semantics = [], scalar_prefetch = 0 : i64, scratch_operands = 4 : i64, tpu.core_type = #tpu.core_type<tc>} {
    %c0_i32 = arith.constant 0 : i32
    %c64_i32 = arith.constant 64 : i32
    %0 = arith.addi %c0_i32, %c64_i32 : i32
    %c1_i32 = arith.constant 1 : i32
    scf.for %arg15 = %c0_i32 to %0 step %c1_i32  : i32 {
      %829 = arith.index_cast %arg15 : i32 to index
      %830 = memref.load %arg0[%829] : memref<64xi32, #tpu.memory_space<smem>>
      %c63_i32 = arith.constant 63 : i32
      %831 = arith.minsi %830, %c63_i32 : i32
      %c0_i32_255 = arith.constant 0 : i32
      %c0_i32_256 = arith.constant 0 : i32
      %832 = tpu.memref_slice %arg1[%831, %c0_i32_256] : memref<64x32xf32, #tpu.memory_space<any>> -> memref<1x32xf32, #tpu.memory_space<any>>
      %c0_i32_257 = arith.constant 0 : i32
      %833 = tpu.memref_slice %arg11[%arg15, %c0_i32_257] : memref<64x32xf32, #tpu.memory_space<vmem>> -> memref<1x32xf32, #tpu.memory_space<vmem>>
      %834 = tpu.memref_slice %arg14[%c0_i32_255] : memref<1x!tpu.dma_semaphore, #tpu.memory_space<semaphore_mem>> -> memref<1x!tpu.dma_semaphore, #tpu.memory_space<semaphore_mem>>
      %835 = tpu.memref_squeeze %834 : memref<1x!tpu.dma_semaphore, #tpu.memory_space<semaphore_mem>> -> memref<!tpu.dma_semaphore, #tpu.memory_space<semaphore_mem>>
      tpu.enqueue_dma source(%832 : memref<1x32xf32, #tpu.memory_space<any>>) target(%833 : memref<1x32xf32, #tpu.memory_space<vmem>>) target_semaphore(%835 : memref<!tpu.dma_semaphore, #tpu.memory_space<semaphore_mem>>)
    }
    %c64_i32_0 = arith.constant 64 : i32
    %c0_i32_1 = arith.constant 0 : i32
    %c64_i32_2 = arith.constant 64 : i32
    %1 = arith.addi %c0_i32_1, %c64_i32_2 : i32
    %c1_i32_3 = arith.constant 1 : i32
    scf.for %arg15 = %c0_i32_1 to %1 step %c1_i32_3  : i32 {
      %829 = arith.index_cast %arg15 : i32 to index
      %830 = memref.load %arg0[%829] : memref<64xi32, #tpu.memory_space<smem>>
      %c63_i32 = arith.constant 63 : i32
      %831 = arith.minsi %830, %c63_i32 : i32
      %c0_i32_255 = arith.constant 0 : i32
      %c0_i32_256 = arith.constant 0 : i32
      %832 = tpu.memref_slice %arg1[%831, %c0_i32_256] : memref<64x32xf32, #tpu.memory_space<any>> -> memref<1x32xf32, #tpu.memory_space<any>>
      %c0_i32_257 = arith.constant 0 : i32
      %833 = tpu.memref_slice %arg11[%arg15, %c0_i32_257] : memref<64x32xf32, #tpu.memory_space<vmem>> -> memref<1x32xf32, #tpu.memory_space<vmem>>
      %834 = tpu.memref_slice %arg14[%c0_i32_255] : memref<1x!tpu.dma_semaphore, #tpu.memory_space<semaphore_mem>> -> memref<1x!tpu.dma_semaphore, #tpu.memory_space<semaphore_mem>>
      %835 = tpu.memref_squeeze %834 : memref<1x!tpu.dma_semaphore, #tpu.memory_space<semaphore_mem>> -> memref<!tpu.dma_semaphore, #tpu.memory_space<semaphore_mem>>
      tpu.wait_dma2 semaphore(%835 : memref<!tpu.dma_semaphore, #tpu.memory_space<semaphore_mem>>) src(%832 : memref<1x32xf32, #tpu.memory_space<any>>) dst(%833 : memref<1x32xf32, #tpu.memory_space<vmem>>)
    }
    %c64_i32_4 = arith.constant 64 : i32
    %c0 = arith.constant 0 : index
    %c0_5 = arith.constant 0 : index
    %2 = vector.load %arg11[%c0, %c0_5] : memref<64x32xf32, #tpu.memory_space<vmem>>, vector<64x32xf32>
    %c0_6 = arith.constant 0 : index
    %c0_7 = arith.constant 0 : index
    %3 = vector.load %arg2[%c0_6, %c0_7] : memref<32x256xf32, #tpu.memory_space<vmem>>, vector<32x256xf32>
    %cst = arith.constant dense<0.000000e+00> : vector<64x256xf32>
    %4 = tpu.matmul %2, %3, %cst {dimension_numbers = #tpu.dot_dimension_numbers<[1], [0], [0], [1], [0, 0, 1, 1], [], []>} : vector<64x32xf32>, vector<32x256xf32>, vector<64x256xf32> -> vector<64x256xf32>
    %c0_8 = arith.constant 0 : index
    %c0_9 = arith.constant 0 : index
    %5 = vector.load %arg3[%c0_8, %c0_9] : memref<1x256xf32, #tpu.memory_space<vmem>>, vector<1x256xf32>
    %6 = vector.broadcast %5 : vector<1x256xf32> to vector<64x256xf32>
    %7 = arith.addf %4, %6 : vector<64x256xf32>
    %c0_10 = arith.constant 0 : index
    %c0_11 = arith.constant 0 : index
    %8 = vector.load %arg13[%c0_10, %c0_11] : memref<64x256xf32, #tpu.memory_space<vmem>>, vector<64x256xf32>
    tpu.vector_store %arg13[%c0_10, %c0_11], %7 {strides = array<i32>} : memref<64x256xf32, #tpu.memory_space<vmem>>, vector<64x256xf32>,
    %c0_12 = arith.constant 0 : index
    %c0_13 = arith.constant 0 : index
    %9 = vector.load %arg4[%c0_12, %c0_13] : memref<64x256xf32, #tpu.memory_space<vmem>>, vector<64x256xf32>
    %cst_14 = arith.constant 0.000000e+00 : f32
    %10 = vector.broadcast %cst_14 : f32 to vector<8x64xf32>
    %cst_15 = arith.constant 0.000000e+00 : f32
    %11 = vector.broadcast %cst_15 : f32 to vector<8x32xf32>
    %c0_i32_16 = arith.constant 0 : i32
    %c8_i32 = arith.constant 8 : i32
    %12 = arith.muli %c0_i32_16, %c8_i32 : i32
    %13 = tpu.assume_multiple %12, 8 : i32
    %c7_i32 = arith.constant 7 : i32
    %14 = arith.subi %c7_i32, %c0_i32_16 : i32
    %c8_i32_17 = arith.constant 8 : i32
    %15 = arith.muli %14, %c8_i32_17 : i32
    %16 = tpu.assume_multiple %15, 8 : i32
    %17 = arith.index_cast %13 : i32 to index
    %c0_18 = arith.constant 0 : index
    %18 = vector.load %arg13[%17, %c0_18] : memref<64x256xf32, #tpu.memory_space<vmem>>, vector<8x128xf32>
    %19 = arith.index_cast %16 : i32 to index
    %c128 = arith.constant 128 : index
    %20 = vector.load %arg13[%19, %c128] : memref<64x256xf32, #tpu.memory_space<vmem>>, vector<8x128xf32>
    %21 = tpu.concatenate %18, %20 in 1 : vector<8x128xf32>, vector<8x128xf32> -> vector<8x256xf32>
    %cst_19 = arith.constant dense<0.000000e+00> : vector<8x256xf32>
    %22 = tpu.matmul %10, %9, %cst_19 {dimension_numbers = #tpu.dot_dimension_numbers<[1], [0], [0], [1], [0, 0, 1, 1], [], []>} : vector<8x64xf32>, vector<64x256xf32>, vector<8x256xf32> -> vector<8x256xf32>
    %23 = arith.addf %21, %22 : vector<8x256xf32>
    %24 = arith.negf %23 : vector<8x256xf32>
    %25 = math.exp %24 : vector<8x256xf32>
    %cst_20 = arith.constant 1.000000e+00 : f32
    %26 = vector.broadcast %cst_20 : f32 to vector<8x256xf32>
    %27 = arith.addf %26, %25 : vector<8x256xf32>
    %28 = arith.divf %26, %27 : vector<8x256xf32>
    %29 = vector.extract_strided_slice %28 {offsets = [0, 0], sizes = [8, 32], strides = [1, 1]} : vector<8x256xf32> to vector<8x32xf32>
    %30 = vector.extract_strided_slice %28 {offsets = [0, 32], sizes = [8, 32], strides = [1, 1]} : vector<8x256xf32> to vector<8x32xf32>
    %31 = vector.extract_strided_slice %28 {offsets = [0, 64], sizes = [8, 32], strides = [1, 1]} : vector<8x256xf32> to vector<8x32xf32>
    %cst_21 = arith.constant 2.000000e+00 : f32
    %32 = vector.broadcast %cst_21 : f32 to vector<8x32xf32>
    %33 = arith.mulf %32, %31 : vector<8x32xf32>
    %cst_22 = arith.constant 1.000000e+00 : f32
    %34 = vector.broadcast %cst_22 : f32 to vector<8x32xf32>
    %35 = arith.subf %33, %34 : vector<8x32xf32>
    %36 = vector.extract_strided_slice %28 {offsets = [0, 96], sizes = [8, 32], strides = [1, 1]} : vector<8x256xf32> to vector<8x32xf32>
    %37 = vector.extract_strided_slice %28 {offsets = [0, 128], sizes = [8, 32], strides = [1, 1]} : vector<8x256xf32> to vector<8x32xf32>
    %38 = vector.extract_strided_slice %28 {offsets = [0, 160], sizes = [8, 32], strides = [1, 1]} : vector<8x256xf32> to vector<8x32xf32>
    %39 = vector.extract_strided_slice %28 {offsets = [0, 192], sizes = [8, 32], strides = [1, 1]} : vector<8x256xf32> to vector<8x32xf32>
    %cst_23 = arith.constant 2.000000e+00 : f32
    %40 = vector.broadcast %cst_23 : f32 to vector<8x32xf32>
    %41 = arith.mulf %40, %39 : vector<8x32xf32>
    %cst_24 = arith.constant 1.000000e+00 : f32
    %42 = vector.broadcast %cst_24 : f32 to vector<8x32xf32>
    %43 = arith.subf %41, %42 : vector<8x32xf32>
    %44 = vector.extract_strided_slice %28 {offsets = [0, 224], sizes = [8, 32], strides = [1, 1]} : vector<8x256xf32> to vector<8x32xf32>
    %45 = arith.mulf %30, %11 : vector<8x32xf32>
    %46 = arith.mulf %29, %35 : vector<8x32xf32>
    %47 = arith.addf %45, %46 : vector<8x32xf32>
    %48 = arith.mulf %38, %11 : vector<8x32xf32>
    %49 = arith.mulf %37, %43 : vector<8x32xf32>
    %50 = arith.addf %48, %49 : vector<8x32xf32>
    %51 = tpu.concatenate %47, %50 in 1 : vector<8x32xf32>, vector<8x32xf32> -> vector<8x64xf32>
    %52 = math.tanh %51 : vector<8x64xf32>
    %53 = vector.extract_strided_slice %52 {offsets = [0, 0], sizes = [8, 32], strides = [1, 1]} : vector<8x64xf32> to vector<8x32xf32>
    %54 = arith.mulf %36, %53 : vector<8x32xf32>
    %55 = vector.extract_strided_slice %52 {offsets = [0, 32], sizes = [8, 32], strides = [1, 1]} : vector<8x64xf32> to vector<8x32xf32>
    %56 = arith.mulf %44, %55 : vector<8x32xf32>
    %57 = arith.index_cast %13 : i32 to index
    %c0_25 = arith.constant 0 : index
    %58 = vector.load %arg12[%57, %c0_25] : memref<64x64xf32, #tpu.memory_space<vmem>>, vector<8x32xf32>
    tpu.vector_store %arg12[%57, %c0_25], %54 {strides = array<i32>} : memref<64x64xf32, #tpu.memory_space<vmem>>, vector<8x32xf32>,
    %59 = arith.index_cast %16 : i32 to index
    %c32 = arith.constant 32 : index
    %60 = vector.load %arg12[%59, %c32] : memref<64x64xf32, #tpu.memory_space<vmem>>, vector<8x32xf32>
    tpu.vector_store %arg12[%59, %c32], %56 {strides = array<i32>} : memref<64x64xf32, #tpu.memory_space<vmem>>, vector<8x32xf32>,
    %61 = tpu.concatenate %54, %56 in 1 : vector<8x32xf32>, vector<8x32xf32> -> vector<8x64xf32>
    %c1_i32_26 = arith.constant 1 : i32
    %c8_i32_27 = arith.constant 8 : i32
    %62 = arith.muli %c1_i32_26, %c8_i32_27 : i32
    %63 = tpu.assume_multiple %62, 8 : i32
    %c7_i32_28 = arith.constant 7 : i32
    %64 = arith.subi %c7_i32_28, %c1_i32_26 : i32
    %c8_i32_29 = arith.constant 8 : i32
    %65 = arith.muli %64, %c8_i32_29 : i32
    %66 = tpu.assume_multiple %65, 8 : i32
    %67 = arith.index_cast %63 : i32 to index
    %c0_30 = arith.constant 0 : index
    %68 = vector.load %arg13[%67, %c0_30] : memref<64x256xf32, #tpu.memory_space<vmem>>, vector<8x128xf32>
    %69 = arith.index_cast %66 : i32 to index
    %c128_31 = arith.constant 128 : index
    %70 = vector.load %arg13[%69, %c128_31] : memref<64x256xf32, #tpu.memory_space<vmem>>, vector<8x128xf32>
    %71 = tpu.concatenate %68, %70 in 1 : vector<8x128xf32>, vector<8x128xf32> -> vector<8x256xf32>
    %cst_32 = arith.constant dense<0.000000e+00> : vector<8x256xf32>
    %72 = tpu.matmul %61, %9, %cst_32 {dimension_numbers = #tpu.dot_dimension_numbers<[1], [0], [0], [1], [0, 0, 1, 1], [], []>} : vector<8x64xf32>, vector<64x256xf32>, vector<8x256xf32> -> vector<8x256xf32>
    %73 = arith.addf %71, %72 : vector<8x256xf32>
    %74 = arith.negf %73 : vector<8x256xf32>
    %75 = math.exp %74 : vector<8x256xf32>
    %cst_33 = arith.constant 1.000000e+00 : f32
    %76 = vector.broadcast %cst_33 : f32 to vector<8x256xf32>
    %77 = arith.addf %76, %75 : vector<8x256xf32>
    %78 = arith.divf %76, %77 : vector<8x256xf32>
    %79 = vector.extract_strided_slice %78 {offsets = [0, 0], sizes = [8, 32], strides = [1, 1]} : vector<8x256xf32> to vector<8x32xf32>
    %80 = vector.extract_strided_slice %78 {offsets = [0, 32], sizes = [8, 32], strides = [1, 1]} : vector<8x256xf32> to vector<8x32xf32>
    %81 = vector.extract_strided_slice %78 {offsets = [0, 64], sizes = [8, 32], strides = [1, 1]} : vector<8x256xf32> to vector<8x32xf32>
    %cst_34 = arith.constant 2.000000e+00 : f32
    %82 = vector.broadcast %cst_34 : f32 to vector<8x32xf32>
    %83 = arith.mulf %82, %81 : vector<8x32xf32>
    %cst_35 = arith.constant 1.000000e+00 : f32
    %84 = vector.broadcast %cst_35 : f32 to vector<8x32xf32>
    %85 = arith.subf %83, %84 : vector<8x32xf32>
    %86 = vector.extract_strided_slice %78 {offsets = [0, 96], sizes = [8, 32], strides = [1, 1]} : vector<8x256xf32> to vector<8x32xf32>
    %87 = vector.extract_strided_slice %78 {offsets = [0, 128], sizes = [8, 32], strides = [1, 1]} : vector<8x256xf32> to vector<8x32xf32>
    %88 = vector.extract_strided_slice %78 {offsets = [0, 160], sizes = [8, 32], strides = [1, 1]} : vector<8x256xf32> to vector<8x32xf32>
    %89 = vector.extract_strided_slice %78 {offsets = [0, 192], sizes = [8, 32], strides = [1, 1]} : vector<8x256xf32> to vector<8x32xf32>
    %cst_36 = arith.constant 2.000000e+00 : f32
    %90 = vector.broadcast %cst_36 : f32 to vector<8x32xf32>
    %91 = arith.mulf %90, %89 : vector<8x32xf32>
    %cst_37 = arith.constant 1.000000e+00 : f32
    %92 = vector.broadcast %cst_37 : f32 to vector<8x32xf32>
    %93 = arith.subf %91, %92 : vector<8x32xf32>
    %94 = vector.extract_strided_slice %78 {offsets = [0, 224], sizes = [8, 32], strides = [1, 1]} : vector<8x256xf32> to vector<8x32xf32>
    %95 = arith.mulf %80, %47 : vector<8x32xf32>
    %96 = arith.mulf %79, %85 : vector<8x32xf32>
    %97 = arith.addf %95, %96 : vector<8x32xf32>
    %98 = arith.mulf %88, %50 : vector<8x32xf32>
    %99 = arith.mulf %87, %93 : vector<8x32xf32>
    %100 = arith.addf %98, %99 : vector<8x32xf32>
    %101 = tpu.concatenate %97, %100 in 1 : vector<8x32xf32>, vector<8x32xf32> -> vector<8x64xf32>
    %102 = math.tanh %101 : vector<8x64xf32>
    %103 = vector.extract_strided_slice %102 {offsets = [0, 0], sizes = [8, 32], strides = [1, 1]} : vector<8x64xf32> to vector<8x32xf32>
    %104 = arith.mulf %86, %103 : vector<8x32xf32>
    %105 = vector.extract_strided_slice %102 {offsets = [0, 32], sizes = [8, 32], strides = [1, 1]} : vector<8x64xf32> to vector<8x32xf32>
    %106 = arith.mulf %94, %105 : vector<8x32xf32>
    %107 = arith.index_cast %63 : i32 to index
    %c0_38 = arith.constant 0 : index
    %108 = vector.load %arg12[%107, %c0_38] : memref<64x64xf32, #tpu.memory_space<vmem>>, vector<8x32xf32>
    tpu.vector_store %arg12[%107, %c0_38], %104 {strides = array<i32>} : memref<64x64xf32, #tpu.memory_space<vmem>>, vector<8x32xf32>,
    %109 = arith.index_cast %66 : i32 to index
    %c32_39 = arith.constant 32 : index
    %110 = vector.load %arg12[%109, %c32_39] : memref<64x64xf32, #tpu.memory_space<vmem>>, vector<8x32xf32>
    tpu.vector_store %arg12[%109, %c32_39], %106 {strides = array<i32>} : memref<64x64xf32, #tpu.memory_space<vmem>>, vector<8x32xf32>,
    %111 = tpu.concatenate %104, %106 in 1 : vector<8x32xf32>, vector<8x32xf32> -> vector<8x64xf32>
    %c2_i32 = arith.constant 2 : i32
    %c8_i32_40 = arith.constant 8 : i32
    %112 = arith.muli %c2_i32, %c8_i32_40 : i32
    %113 = tpu.assume_multiple %112, 8 : i32
    %c7_i32_41 = arith.constant 7 : i32
    %114 = arith.subi %c7_i32_41, %c2_i32 : i32
    %c8_i32_42 = arith.constant 8 : i32
    %115 = arith.muli %114, %c8_i32_42 : i32
    %116 = tpu.assume_multiple %115, 8 : i32
    %117 = arith.index_cast %113 : i32 to index
    %c0_43 = arith.constant 0 : index
    %118 = vector.load %arg13[%117, %c0_43] : memref<64x256xf32, #tpu.memory_space<vmem>>, vector<8x128xf32>
    %119 = arith.index_cast %116 : i32 to index
    %c128_44 = arith.constant 128 : index
    %120 = vector.load %arg13[%119, %c128_44] : memref<64x256xf32, #tpu.memory_space<vmem>>, vector<8x128xf32>
    %121 = tpu.concatenate %118, %120 in 1 : vector<8x128xf32>, vector<8x128xf32> -> vector<8x256xf32>
    %cst_45 = arith.constant dense<0.000000e+00> : vector<8x256xf32>
    %122 = tpu.matmul %111, %9, %cst_45 {dimension_numbers = #tpu.dot_dimension_numbers<[1], [0], [0], [1], [0, 0, 1, 1], [], []>} : vector<8x64xf32>, vector<64x256xf32>, vector<8x256xf32> -> vector<8x256xf32>
    %123 = arith.addf %121, %122 : vector<8x256xf32>
    %124 = arith.negf %123 : vector<8x256xf32>
    %125 = math.exp %124 : vector<8x256xf32>
    %cst_46 = arith.constant 1.000000e+00 : f32
    %126 = vector.broadcast %cst_46 : f32 to vector<8x256xf32>
    %127 = arith.addf %126, %125 : vector<8x256xf32>
    %128 = arith.divf %126, %127 : vector<8x256xf32>
    %129 = vector.extract_strided_slice %128 {offsets = [0, 0], sizes = [8, 32], strides = [1, 1]} : vector<8x256xf32> to vector<8x32xf32>
    %130 = vector.extract_strided_slice %128 {offsets = [0, 32], sizes = [8, 32], strides = [1, 1]} : vector<8x256xf32> to vector<8x32xf32>
    %131 = vector.extract_strided_slice %128 {offsets = [0, 64], sizes = [8, 32], strides = [1, 1]} : vector<8x256xf32> to vector<8x32xf32>
    %cst_47 = arith.constant 2.000000e+00 : f32
    %132 = vector.broadcast %cst_47 : f32 to vector<8x32xf32>
    %133 = arith.mulf %132, %131 : vector<8x32xf32>
    %cst_48 = arith.constant 1.000000e+00 : f32
    %134 = vector.broadcast %cst_48 : f32 to vector<8x32xf32>
    %135 = arith.subf %133, %134 : vector<8x32xf32>
    %136 = vector.extract_strided_slice %128 {offsets = [0, 96], sizes = [8, 32], strides = [1, 1]} : vector<8x256xf32> to vector<8x32xf32>
    %137 = vector.extract_strided_slice %128 {offsets = [0, 128], sizes = [8, 32], strides = [1, 1]} : vector<8x256xf32> to vector<8x32xf32>
    %138 = vector.extract_strided_slice %128 {offsets = [0, 160], sizes = [8, 32], strides = [1, 1]} : vector<8x256xf32> to vector<8x32xf32>
    %139 = vector.extract_strided_slice %128 {offsets = [0, 192], sizes = [8, 32], strides = [1, 1]} : vector<8x256xf32> to vector<8x32xf32>
    %cst_49 = arith.constant 2.000000e+00 : f32
    %140 = vector.broadcast %cst_49 : f32 to vector<8x32xf32>
    %141 = arith.mulf %140, %139 : vector<8x32xf32>
    %cst_50 = arith.constant 1.000000e+00 : f32
    %142 = vector.broadcast %cst_50 : f32 to vector<8x32xf32>
    %143 = arith.subf %141, %142 : vector<8x32xf32>
    %144 = vector.extract_strided_slice %128 {offsets = [0, 224], sizes = [8, 32], strides = [1, 1]} : vector<8x256xf32> to vector<8x32xf32>
    %145 = arith.mulf %130, %97 : vector<8x32xf32>
    %146 = arith.mulf %129, %135 : vector<8x32xf32>
    %147 = arith.addf %145, %146 : vector<8x32xf32>
    %148 = arith.mulf %138, %100 : vector<8x32xf32>
    %149 = arith.mulf %137, %143 : vector<8x32xf32>
    %150 = arith.addf %148, %149 : vector<8x32xf32>
    %151 = tpu.concatenate %147, %150 in 1 : vector<8x32xf32>, vector<8x32xf32> -> vector<8x64xf32>
    %152 = math.tanh %151 : vector<8x64xf32>
    %153 = vector.extract_strided_slice %152 {offsets = [0, 0], sizes = [8, 32], strides = [1, 1]} : vector<8x64xf32> to vector<8x32xf32>
    %154 = arith.mulf %136, %153 : vector<8x32xf32>
    %155 = vector.extract_strided_slice %152 {offsets = [0, 32], sizes = [8, 32], strides = [1, 1]} : vector<8x64xf32> to vector<8x32xf32>
    %156 = arith.mulf %144, %155 : vector<8x32xf32>
    %157 = arith.index_cast %113 : i32 to index
    %c0_51 = arith.constant 0 : index
    %158 = vector.load %arg12[%157, %c0_51] : memref<64x64xf32, #tpu.memory_space<vmem>>, vector<8x32xf32>
    tpu.vector_store %arg12[%157, %c0_51], %154 {strides = array<i32>} : memref<64x64xf32, #tpu.memory_space<vmem>>, vector<8x32xf32>,
    %159 = arith.index_cast %116 : i32 to index
    %c32_52 = arith.constant 32 : index
    %160 = vector.load %arg12[%159, %c32_52] : memref<64x64xf32, #tpu.memory_space<vmem>>, vector<8x32xf32>
    tpu.vector_store %arg12[%159, %c32_52], %156 {strides = array<i32>} : memref<64x64xf32, #tpu.memory_space<vmem>>, vector<8x32xf32>,
    %161 = tpu.concatenate %154, %156 in 1 : vector<8x32xf32>, vector<8x32xf32> -> vector<8x64xf32>
    %c3_i32 = arith.constant 3 : i32
    %c8_i32_53 = arith.constant 8 : i32
    %162 = arith.muli %c3_i32, %c8_i32_53 : i32
    %163 = tpu.assume_multiple %162, 8 : i32
    %c7_i32_54 = arith.constant 7 : i32
    %164 = arith.subi %c7_i32_54, %c3_i32 : i32
    %c8_i32_55 = arith.constant 8 : i32
    %165 = arith.muli %164, %c8_i32_55 : i32
    %166 = tpu.assume_multiple %165, 8 : i32
    %167 = arith.index_cast %163 : i32 to index
    %c0_56 = arith.constant 0 : index
    %168 = vector.load %arg13[%167, %c0_56] : memref<64x256xf32, #tpu.memory_space<vmem>>, vector<8x128xf32>
    %169 = arith.index_cast %166 : i32 to index
    %c128_57 = arith.constant 128 : index
    %170 = vector.load %arg13[%169, %c128_57] : memref<64x256xf32, #tpu.memory_space<vmem>>, vector<8x128xf32>
    %171 = tpu.concatenate %168, %170 in 1 : vector<8x128xf32>, vector<8x128xf32> -> vector<8x256xf32>
    %cst_58 = arith.constant dense<0.000000e+00> : vector<8x256xf32>
    %172 = tpu.matmul %161, %9, %cst_58 {dimension_numbers = #tpu.dot_dimension_numbers<[1], [0], [0], [1], [0, 0, 1, 1], [], []>} : vector<8x64xf32>, vector<64x256xf32>, vector<8x256xf32> -> vector<8x256xf32>
    %173 = arith.addf %171, %172 : vector<8x256xf32>
    %174 = arith.negf %173 : vector<8x256xf32>
    %175 = math.exp %174 : vector<8x256xf32>
    %cst_59 = arith.constant 1.000000e+00 : f32
    %176 = vector.broadcast %cst_59 : f32 to vector<8x256xf32>
    %177 = arith.addf %176, %175 : vector<8x256xf32>
    %178 = arith.divf %176, %177 : vector<8x256xf32>
    %179 = vector.extract_strided_slice %178 {offsets = [0, 0], sizes = [8, 32], strides = [1, 1]} : vector<8x256xf32> to vector<8x32xf32>
    %180 = vector.extract_strided_slice %178 {offsets = [0, 32], sizes = [8, 32], strides = [1, 1]} : vector<8x256xf32> to vector<8x32xf32>
    %181 = vector.extract_strided_slice %178 {offsets = [0, 64], sizes = [8, 32], strides = [1, 1]} : vector<8x256xf32> to vector<8x32xf32>
    %cst_60 = arith.constant 2.000000e+00 : f32
    %182 = vector.broadcast %cst_60 : f32 to vector<8x32xf32>
    %183 = arith.mulf %182, %181 : vector<8x32xf32>
    %cst_61 = arith.constant 1.000000e+00 : f32
    %184 = vector.broadcast %cst_61 : f32 to vector<8x32xf32>
    %185 = arith.subf %183, %184 : vector<8x32xf32>
    %186 = vector.extract_strided_slice %178 {offsets = [0, 96], sizes = [8, 32], strides = [1, 1]} : vector<8x256xf32> to vector<8x32xf32>
    %187 = vector.extract_strided_slice %178 {offsets = [0, 128], sizes = [8, 32], strides = [1, 1]} : vector<8x256xf32> to vector<8x32xf32>
    %188 = vector.extract_strided_slice %178 {offsets = [0, 160], sizes = [8, 32], strides = [1, 1]} : vector<8x256xf32> to vector<8x32xf32>
    %189 = vector.extract_strided_slice %178 {offsets = [0, 192], sizes = [8, 32], strides = [1, 1]} : vector<8x256xf32> to vector<8x32xf32>
    %cst_62 = arith.constant 2.000000e+00 : f32
    %190 = vector.broadcast %cst_62 : f32 to vector<8x32xf32>
    %191 = arith.mulf %190, %189 : vector<8x32xf32>
    %cst_63 = arith.constant 1.000000e+00 : f32
    %192 = vector.broadcast %cst_63 : f32 to vector<8x32xf32>
    %193 = arith.subf %191, %192 : vector<8x32xf32>
    %194 = vector.extract_strided_slice %178 {offsets = [0, 224], sizes = [8, 32], strides = [1, 1]} : vector<8x256xf32> to vector<8x32xf32>
    %195 = arith.mulf %180, %147 : vector<8x32xf32>
    %196 = arith.mulf %179, %185 : vector<8x32xf32>
    %197 = arith.addf %195, %196 : vector<8x32xf32>
    %198 = arith.mulf %188, %150 : vector<8x32xf32>
    %199 = arith.mulf %187, %193 : vector<8x32xf32>
    %200 = arith.addf %198, %199 : vector<8x32xf32>
    %201 = tpu.concatenate %197, %200 in 1 : vector<8x32xf32>, vector<8x32xf32> -> vector<8x64xf32>
    %202 = math.tanh %201 : vector<8x64xf32>
    %203 = vector.extract_strided_slice %202 {offsets = [0, 0], sizes = [8, 32], strides = [1, 1]} : vector<8x64xf32> to vector<8x32xf32>
    %204 = arith.mulf %186, %203 : vector<8x32xf32>
    %205 = vector.extract_strided_slice %202 {offsets = [0, 32], sizes = [8, 32], strides = [1, 1]} : vector<8x64xf32> to vector<8x32xf32>
    %206 = arith.mulf %194, %205 : vector<8x32xf32>
    %207 = arith.index_cast %163 : i32 to index
    %c0_64 = arith.constant 0 : index
    %208 = vector.load %arg12[%207, %c0_64] : memref<64x64xf32, #tpu.memory_space<vmem>>, vector<8x32xf32>
    tpu.vector_store %arg12[%207, %c0_64], %204 {strides = array<i32>} : memref<64x64xf32, #tpu.memory_space<vmem>>, vector<8x32xf32>,
    %209 = arith.index_cast %166 : i32 to index
    %c32_65 = arith.constant 32 : index
    %210 = vector.load %arg12[%209, %c32_65] : memref<64x64xf32, #tpu.memory_space<vmem>>, vector<8x32xf32>
    tpu.vector_store %arg12[%209, %c32_65], %206 {strides = array<i32>} : memref<64x64xf32, #tpu.memory_space<vmem>>, vector<8x32xf32>,
    %211 = tpu.concatenate %204, %206 in 1 : vector<8x32xf32>, vector<8x32xf32> -> vector<8x64xf32>
    %c4_i32 = arith.constant 4 : i32
    %c8_i32_66 = arith.constant 8 : i32
    %212 = arith.muli %c4_i32, %c8_i32_66 : i32
    %213 = tpu.assume_multiple %212, 8 : i32
    %c7_i32_67 = arith.constant 7 : i32
    %214 = arith.subi %c7_i32_67, %c4_i32 : i32
    %c8_i32_68 = arith.constant 8 : i32
    %215 = arith.muli %214, %c8_i32_68 : i32
    %216 = tpu.assume_multiple %215, 8 : i32
    %217 = arith.index_cast %213 : i32 to index
    %c0_69 = arith.constant 0 : index
    %218 = vector.load %arg13[%217, %c0_69] : memref<64x256xf32, #tpu.memory_space<vmem>>, vector<8x128xf32>
    %219 = arith.index_cast %216 : i32 to index
    %c128_70 = arith.constant 128 : index
    %220 = vector.load %arg13[%219, %c128_70] : memref<64x256xf32, #tpu.memory_space<vmem>>, vector<8x128xf32>
    %221 = tpu.concatenate %218, %220 in 1 : vector<8x128xf32>, vector<8x128xf32> -> vector<8x256xf32>
    %cst_71 = arith.constant dense<0.000000e+00> : vector<8x256xf32>
    %222 = tpu.matmul %211, %9, %cst_71 {dimension_numbers = #tpu.dot_dimension_numbers<[1], [0], [0], [1], [0, 0, 1, 1], [], []>} : vector<8x64xf32>, vector<64x256xf32>, vector<8x256xf32> -> vector<8x256xf32>
    %223 = arith.addf %221, %222 : vector<8x256xf32>
    %224 = arith.negf %223 : vector<8x256xf32>
    %225 = math.exp %224 : vector<8x256xf32>
    %cst_72 = arith.constant 1.000000e+00 : f32
    %226 = vector.broadcast %cst_72 : f32 to vector<8x256xf32>
    %227 = arith.addf %226, %225 : vector<8x256xf32>
    %228 = arith.divf %226, %227 : vector<8x256xf32>
    %229 = vector.extract_strided_slice %228 {offsets = [0, 0], sizes = [8, 32], strides = [1, 1]} : vector<8x256xf32> to vector<8x32xf32>
    %230 = vector.extract_strided_slice %228 {offsets = [0, 32], sizes = [8, 32], strides = [1, 1]} : vector<8x256xf32> to vector<8x32xf32>
    %231 = vector.extract_strided_slice %228 {offsets = [0, 64], sizes = [8, 32], strides = [1, 1]} : vector<8x256xf32> to vector<8x32xf32>
    %cst_73 = arith.constant 2.000000e+00 : f32
    %232 = vector.broadcast %cst_73 : f32 to vector<8x32xf32>
    %233 = arith.mulf %232, %231 : vector<8x32xf32>
    %cst_74 = arith.constant 1.000000e+00 : f32
    %234 = vector.broadcast %cst_74 : f32 to vector<8x32xf32>
    %235 = arith.subf %233, %234 : vector<8x32xf32>
    %236 = vector.extract_strided_slice %228 {offsets = [0, 96], sizes = [8, 32], strides = [1, 1]} : vector<8x256xf32> to vector<8x32xf32>
    %237 = vector.extract_strided_slice %228 {offsets = [0, 128], sizes = [8, 32], strides = [1, 1]} : vector<8x256xf32> to vector<8x32xf32>
    %238 = vector.extract_strided_slice %228 {offsets = [0, 160], sizes = [8, 32], strides = [1, 1]} : vector<8x256xf32> to vector<8x32xf32>
    %239 = vector.extract_strided_slice %228 {offsets = [0, 192], sizes = [8, 32], strides = [1, 1]} : vector<8x256xf32> to vector<8x32xf32>
    %cst_75 = arith.constant 2.000000e+00 : f32
    %240 = vector.broadcast %cst_75 : f32 to vector<8x32xf32>
    %241 = arith.mulf %240, %239 : vector<8x32xf32>
    %cst_76 = arith.constant 1.000000e+00 : f32
    %242 = vector.broadcast %cst_76 : f32 to vector<8x32xf32>
    %243 = arith.subf %241, %242 : vector<8x32xf32>
    %244 = vector.extract_strided_slice %228 {offsets = [0, 224], sizes = [8, 32], strides = [1, 1]} : vector<8x256xf32> to vector<8x32xf32>
    %245 = arith.mulf %230, %197 : vector<8x32xf32>
    %246 = arith.mulf %229, %235 : vector<8x32xf32>
    %247 = arith.addf %245, %246 : vector<8x32xf32>
    %248 = arith.mulf %238, %200 : vector<8x32xf32>
    %249 = arith.mulf %237, %243 : vector<8x32xf32>
    %250 = arith.addf %248, %249 : vector<8x32xf32>
    %251 = tpu.concatenate %247, %250 in 1 : vector<8x32xf32>, vector<8x32xf32> -> vector<8x64xf32>
    %252 = math.tanh %251 : vector<8x64xf32>
    %253 = vector.extract_strided_slice %252 {offsets = [0, 0], sizes = [8, 32], strides = [1, 1]} : vector<8x64xf32> to vector<8x32xf32>
    %254 = arith.mulf %236, %253 : vector<8x32xf32>
    %255 = vector.extract_strided_slice %252 {offsets = [0, 32], sizes = [8, 32], strides = [1, 1]} : vector<8x64xf32> to vector<8x32xf32>
    %256 = arith.mulf %244, %255 : vector<8x32xf32>
    %257 = arith.index_cast %213 : i32 to index
    %c0_77 = arith.constant 0 : index
    %258 = vector.load %arg12[%257, %c0_77] : memref<64x64xf32, #tpu.memory_space<vmem>>, vector<8x32xf32>
    tpu.vector_store %arg12[%257, %c0_77], %254 {strides = array<i32>} : memref<64x64xf32, #tpu.memory_space<vmem>>, vector<8x32xf32>,
    %259 = arith.index_cast %216 : i32 to index
    %c32_78 = arith.constant 32 : index
    %260 = vector.load %arg12[%259, %c32_78] : memref<64x64xf32, #tpu.memory_space<vmem>>, vector<8x32xf32>
    tpu.vector_store %arg12[%259, %c32_78], %256 {strides = array<i32>} : memref<64x64xf32, #tpu.memory_space<vmem>>, vector<8x32xf32>,
    %261 = tpu.concatenate %254, %256 in 1 : vector<8x32xf32>, vector<8x32xf32> -> vector<8x64xf32>
    %c5_i32 = arith.constant 5 : i32
    %c8_i32_79 = arith.constant 8 : i32
    %262 = arith.muli %c5_i32, %c8_i32_79 : i32
    %263 = tpu.assume_multiple %262, 8 : i32
    %c7_i32_80 = arith.constant 7 : i32
    %264 = arith.subi %c7_i32_80, %c5_i32 : i32
    %c8_i32_81 = arith.constant 8 : i32
    %265 = arith.muli %264, %c8_i32_81 : i32
    %266 = tpu.assume_multiple %265, 8 : i32
    %267 = arith.index_cast %263 : i32 to index
    %c0_82 = arith.constant 0 : index
    %268 = vector.load %arg13[%267, %c0_82] : memref<64x256xf32, #tpu.memory_space<vmem>>, vector<8x128xf32>
    %269 = arith.index_cast %266 : i32 to index
    %c128_83 = arith.constant 128 : index
    %270 = vector.load %arg13[%269, %c128_83] : memref<64x256xf32, #tpu.memory_space<vmem>>, vector<8x128xf32>
    %271 = tpu.concatenate %268, %270 in 1 : vector<8x128xf32>, vector<8x128xf32> -> vector<8x256xf32>
    %cst_84 = arith.constant dense<0.000000e+00> : vector<8x256xf32>
    %272 = tpu.matmul %261, %9, %cst_84 {dimension_numbers = #tpu.dot_dimension_numbers<[1], [0], [0], [1], [0, 0, 1, 1], [], []>} : vector<8x64xf32>, vector<64x256xf32>, vector<8x256xf32> -> vector<8x256xf32>
    %273 = arith.addf %271, %272 : vector<8x256xf32>
    %274 = arith.negf %273 : vector<8x256xf32>
    %275 = math.exp %274 : vector<8x256xf32>
    %cst_85 = arith.constant 1.000000e+00 : f32
    %276 = vector.broadcast %cst_85 : f32 to vector<8x256xf32>
    %277 = arith.addf %276, %275 : vector<8x256xf32>
    %278 = arith.divf %276, %277 : vector<8x256xf32>
    %279 = vector.extract_strided_slice %278 {offsets = [0, 0], sizes = [8, 32], strides = [1, 1]} : vector<8x256xf32> to vector<8x32xf32>
    %280 = vector.extract_strided_slice %278 {offsets = [0, 32], sizes = [8, 32], strides = [1, 1]} : vector<8x256xf32> to vector<8x32xf32>
    %281 = vector.extract_strided_slice %278 {offsets = [0, 64], sizes = [8, 32], strides = [1, 1]} : vector<8x256xf32> to vector<8x32xf32>
    %cst_86 = arith.constant 2.000000e+00 : f32
    %282 = vector.broadcast %cst_86 : f32 to vector<8x32xf32>
    %283 = arith.mulf %282, %281 : vector<8x32xf32>
    %cst_87 = arith.constant 1.000000e+00 : f32
    %284 = vector.broadcast %cst_87 : f32 to vector<8x32xf32>
    %285 = arith.subf %283, %284 : vector<8x32xf32>
    %286 = vector.extract_strided_slice %278 {offsets = [0, 96], sizes = [8, 32], strides = [1, 1]} : vector<8x256xf32> to vector<8x32xf32>
    %287 = vector.extract_strided_slice %278 {offsets = [0, 128], sizes = [8, 32], strides = [1, 1]} : vector<8x256xf32> to vector<8x32xf32>
    %288 = vector.extract_strided_slice %278 {offsets = [0, 160], sizes = [8, 32], strides = [1, 1]} : vector<8x256xf32> to vector<8x32xf32>
    %289 = vector.extract_strided_slice %278 {offsets = [0, 192], sizes = [8, 32], strides = [1, 1]} : vector<8x256xf32> to vector<8x32xf32>
    %cst_88 = arith.constant 2.000000e+00 : f32
    %290 = vector.broadcast %cst_88 : f32 to vector<8x32xf32>
    %291 = arith.mulf %290, %289 : vector<8x32xf32>
    %cst_89 = arith.constant 1.000000e+00 : f32
    %292 = vector.broadcast %cst_89 : f32 to vector<8x32xf32>
    %293 = arith.subf %291, %292 : vector<8x32xf32>
    %294 = vector.extract_strided_slice %278 {offsets = [0, 224], sizes = [8, 32], strides = [1, 1]} : vector<8x256xf32> to vector<8x32xf32>
    %295 = arith.mulf %280, %247 : vector<8x32xf32>
    %296 = arith.mulf %279, %285 : vector<8x32xf32>
    %297 = arith.addf %295, %296 : vector<8x32xf32>
    %298 = arith.mulf %288, %250 : vector<8x32xf32>
    %299 = arith.mulf %287, %293 : vector<8x32xf32>
    %300 = arith.addf %298, %299 : vector<8x32xf32>
    %301 = tpu.concatenate %297, %300 in 1 : vector<8x32xf32>, vector<8x32xf32> -> vector<8x64xf32>
    %302 = math.tanh %301 : vector<8x64xf32>
    %303 = vector.extract_strided_slice %302 {offsets = [0, 0], sizes = [8, 32], strides = [1, 1]} : vector<8x64xf32> to vector<8x32xf32>
    %304 = arith.mulf %286, %303 : vector<8x32xf32>
    %305 = vector.extract_strided_slice %302 {offsets = [0, 32], sizes = [8, 32], strides = [1, 1]} : vector<8x64xf32> to vector<8x32xf32>
    %306 = arith.mulf %294, %305 : vector<8x32xf32>
    %307 = arith.index_cast %263 : i32 to index
    %c0_90 = arith.constant 0 : index
    %308 = vector.load %arg12[%307, %c0_90] : memref<64x64xf32, #tpu.memory_space<vmem>>, vector<8x32xf32>
    tpu.vector_store %arg12[%307, %c0_90], %304 {strides = array<i32>} : memref<64x64xf32, #tpu.memory_space<vmem>>, vector<8x32xf32>,
    %309 = arith.index_cast %266 : i32 to index
    %c32_91 = arith.constant 32 : index
    %310 = vector.load %arg12[%309, %c32_91] : memref<64x64xf32, #tpu.memory_space<vmem>>, vector<8x32xf32>
    tpu.vector_store %arg12[%309, %c32_91], %306 {strides = array<i32>} : memref<64x64xf32, #tpu.memory_space<vmem>>, vector<8x32xf32>,
    %311 = tpu.concatenate %304, %306 in 1 : vector<8x32xf32>, vector<8x32xf32> -> vector<8x64xf32>
    %c6_i32 = arith.constant 6 : i32
    %c8_i32_92 = arith.constant 8 : i32
    %312 = arith.muli %c6_i32, %c8_i32_92 : i32
    %313 = tpu.assume_multiple %312, 8 : i32
    %c7_i32_93 = arith.constant 7 : i32
    %314 = arith.subi %c7_i32_93, %c6_i32 : i32
    %c8_i32_94 = arith.constant 8 : i32
    %315 = arith.muli %314, %c8_i32_94 : i32
    %316 = tpu.assume_multiple %315, 8 : i32
    %317 = arith.index_cast %313 : i32 to index
    %c0_95 = arith.constant 0 : index
    %318 = vector.load %arg13[%317, %c0_95] : memref<64x256xf32, #tpu.memory_space<vmem>>, vector<8x128xf32>
    %319 = arith.index_cast %316 : i32 to index
    %c128_96 = arith.constant 128 : index
    %320 = vector.load %arg13[%319, %c128_96] : memref<64x256xf32, #tpu.memory_space<vmem>>, vector<8x128xf32>
    %321 = tpu.concatenate %318, %320 in 1 : vector<8x128xf32>, vector<8x128xf32> -> vector<8x256xf32>
    %cst_97 = arith.constant dense<0.000000e+00> : vector<8x256xf32>
    %322 = tpu.matmul %311, %9, %cst_97 {dimension_numbers = #tpu.dot_dimension_numbers<[1], [0], [0], [1], [0, 0, 1, 1], [], []>} : vector<8x64xf32>, vector<64x256xf32>, vector<8x256xf32> -> vector<8x256xf32>
    %323 = arith.addf %321, %322 : vector<8x256xf32>
    %324 = arith.negf %323 : vector<8x256xf32>
    %325 = math.exp %324 : vector<8x256xf32>
    %cst_98 = arith.constant 1.000000e+00 : f32
    %326 = vector.broadcast %cst_98 : f32 to vector<8x256xf32>
    %327 = arith.addf %326, %325 : vector<8x256xf32>
    %328 = arith.divf %326, %327 : vector<8x256xf32>
    %329 = vector.extract_strided_slice %328 {offsets = [0, 0], sizes = [8, 32], strides = [1, 1]} : vector<8x256xf32> to vector<8x32xf32>
    %330 = vector.extract_strided_slice %328 {offsets = [0, 32], sizes = [8, 32], strides = [1, 1]} : vector<8x256xf32> to vector<8x32xf32>
    %331 = vector.extract_strided_slice %328 {offsets = [0, 64], sizes = [8, 32], strides = [1, 1]} : vector<8x256xf32> to vector<8x32xf32>
    %cst_99 = arith.constant 2.000000e+00 : f32
    %332 = vector.broadcast %cst_99 : f32 to vector<8x32xf32>
    %333 = arith.mulf %332, %331 : vector<8x32xf32>
    %cst_100 = arith.constant 1.000000e+00 : f32
    %334 = vector.broadcast %cst_100 : f32 to vector<8x32xf32>
    %335 = arith.subf %333, %334 : vector<8x32xf32>
    %336 = vector.extract_strided_slice %328 {offsets = [0, 96], sizes = [8, 32], strides = [1, 1]} : vector<8x256xf32> to vector<8x32xf32>
    %337 = vector.extract_strided_slice %328 {offsets = [0, 128], sizes = [8, 32], strides = [1, 1]} : vector<8x256xf32> to vector<8x32xf32>
    %338 = vector.extract_strided_slice %328 {offsets = [0, 160], sizes = [8, 32], strides = [1, 1]} : vector<8x256xf32> to vector<8x32xf32>
    %339 = vector.extract_strided_slice %328 {offsets = [0, 192], sizes = [8, 32], strides = [1, 1]} : vector<8x256xf32> to vector<8x32xf32>
    %cst_101 = arith.constant 2.000000e+00 : f32
    %340 = vector.broadcast %cst_101 : f32 to vector<8x32xf32>
    %341 = arith.mulf %340, %339 : vector<8x32xf32>
    %cst_102 = arith.constant 1.000000e+00 : f32
    %342 = vector.broadcast %cst_102 : f32 to vector<8x32xf32>
    %343 = arith.subf %341, %342 : vector<8x32xf32>
    %344 = vector.extract_strided_slice %328 {offsets = [0, 224], sizes = [8, 32], strides = [1, 1]} : vector<8x256xf32> to vector<8x32xf32>
    %345 = arith.mulf %330, %297 : vector<8x32xf32>
    %346 = arith.mulf %329, %335 : vector<8x32xf32>
    %347 = arith.addf %345, %346 : vector<8x32xf32>
    %348 = arith.mulf %338, %300 : vector<8x32xf32>
    %349 = arith.mulf %337, %343 : vector<8x32xf32>
    %350 = arith.addf %348, %349 : vector<8x32xf32>
    %351 = tpu.concatenate %347, %350 in 1 : vector<8x32xf32>, vector<8x32xf32> -> vector<8x64xf32>
    %352 = math.tanh %351 : vector<8x64xf32>
    %353 = vector.extract_strided_slice %352 {offsets = [0, 0], sizes = [8, 32], strides = [1, 1]} : vector<8x64xf32> to vector<8x32xf32>
    %354 = arith.mulf %336, %353 : vector<8x32xf32>
    %355 = vector.extract_strided_slice %352 {offsets = [0, 32], sizes = [8, 32], strides = [1, 1]} : vector<8x64xf32> to vector<8x32xf32>
    %356 = arith.mulf %344, %355 : vector<8x32xf32>
    %357 = arith.index_cast %313 : i32 to index
    %c0_103 = arith.constant 0 : index
    %358 = vector.load %arg12[%357, %c0_103] : memref<64x64xf32, #tpu.memory_space<vmem>>, vector<8x32xf32>
    tpu.vector_store %arg12[%357, %c0_103], %354 {strides = array<i32>} : memref<64x64xf32, #tpu.memory_space<vmem>>, vector<8x32xf32>,
    %359 = arith.index_cast %316 : i32 to index
    %c32_104 = arith.constant 32 : index
    %360 = vector.load %arg12[%359, %c32_104] : memref<64x64xf32, #tpu.memory_space<vmem>>, vector<8x32xf32>
    tpu.vector_store %arg12[%359, %c32_104], %356 {strides = array<i32>} : memref<64x64xf32, #tpu.memory_space<vmem>>, vector<8x32xf32>,
    %361 = tpu.concatenate %354, %356 in 1 : vector<8x32xf32>, vector<8x32xf32> -> vector<8x64xf32>
    %c7_i32_105 = arith.constant 7 : i32
    %c8_i32_106 = arith.constant 8 : i32
    %362 = arith.muli %c7_i32_105, %c8_i32_106 : i32
    %363 = tpu.assume_multiple %362, 8 : i32
    %c7_i32_107 = arith.constant 7 : i32
    %364 = arith.subi %c7_i32_107, %c7_i32_105 : i32
    %c8_i32_108 = arith.constant 8 : i32
    %365 = arith.muli %364, %c8_i32_108 : i32
    %366 = tpu.assume_multiple %365, 8 : i32
    %367 = arith.index_cast %363 : i32 to index
    %c0_109 = arith.constant 0 : index
    %368 = vector.load %arg13[%367, %c0_109] : memref<64x256xf32, #tpu.memory_space<vmem>>, vector<8x128xf32>
    %369 = arith.index_cast %366 : i32 to index
    %c128_110 = arith.constant 128 : index
    %370 = vector.load %arg13[%369, %c128_110] : memref<64x256xf32, #tpu.memory_space<vmem>>, vector<8x128xf32>
    %371 = tpu.concatenate %368, %370 in 1 : vector<8x128xf32>, vector<8x128xf32> -> vector<8x256xf32>
    %cst_111 = arith.constant dense<0.000000e+00> : vector<8x256xf32>
    %372 = tpu.matmul %361, %9, %cst_111 {dimension_numbers = #tpu.dot_dimension_numbers<[1], [0], [0], [1], [0, 0, 1, 1], [], []>} : vector<8x64xf32>, vector<64x256xf32>, vector<8x256xf32> -> vector<8x256xf32>
    %373 = arith.addf %371, %372 : vector<8x256xf32>
    %374 = arith.negf %373 : vector<8x256xf32>
    %375 = math.exp %374 : vector<8x256xf32>
    %cst_112 = arith.constant 1.000000e+00 : f32
    %376 = vector.broadcast %cst_112 : f32 to vector<8x256xf32>
    %377 = arith.addf %376, %375 : vector<8x256xf32>
    %378 = arith.divf %376, %377 : vector<8x256xf32>
    %379 = vector.extract_strided_slice %378 {offsets = [0, 0], sizes = [8, 32], strides = [1, 1]} : vector<8x256xf32> to vector<8x32xf32>
    %380 = vector.extract_strided_slice %378 {offsets = [0, 32], sizes = [8, 32], strides = [1, 1]} : vector<8x256xf32> to vector<8x32xf32>
    %381 = vector.extract_strided_slice %378 {offsets = [0, 64], sizes = [8, 32], strides = [1, 1]} : vector<8x256xf32> to vector<8x32xf32>
    %cst_113 = arith.constant 2.000000e+00 : f32
    %382 = vector.broadcast %cst_113 : f32 to vector<8x32xf32>
    %383 = arith.mulf %382, %381 : vector<8x32xf32>
    %cst_114 = arith.constant 1.000000e+00 : f32
    %384 = vector.broadcast %cst_114 : f32 to vector<8x32xf32>
    %385 = arith.subf %383, %384 : vector<8x32xf32>
    %386 = vector.extract_strided_slice %378 {offsets = [0, 96], sizes = [8, 32], strides = [1, 1]} : vector<8x256xf32> to vector<8x32xf32>
    %387 = vector.extract_strided_slice %378 {offsets = [0, 128], sizes = [8, 32], strides = [1, 1]} : vector<8x256xf32> to vector<8x32xf32>
    %388 = vector.extract_strided_slice %378 {offsets = [0, 160], sizes = [8, 32], strides = [1, 1]} : vector<8x256xf32> to vector<8x32xf32>
    %389 = vector.extract_strided_slice %378 {offsets = [0, 192], sizes = [8, 32], strides = [1, 1]} : vector<8x256xf32> to vector<8x32xf32>
    %cst_115 = arith.constant 2.000000e+00 : f32
    %390 = vector.broadcast %cst_115 : f32 to vector<8x32xf32>
    %391 = arith.mulf %390, %389 : vector<8x32xf32>
    %cst_116 = arith.constant 1.000000e+00 : f32
    %392 = vector.broadcast %cst_116 : f32 to vector<8x32xf32>
    %393 = arith.subf %391, %392 : vector<8x32xf32>
    %394 = vector.extract_strided_slice %378 {offsets = [0, 224], sizes = [8, 32], strides = [1, 1]} : vector<8x256xf32> to vector<8x32xf32>
    %395 = arith.mulf %380, %347 : vector<8x32xf32>
    %396 = arith.mulf %379, %385 : vector<8x32xf32>
    %397 = arith.addf %395, %396 : vector<8x32xf32>
    %398 = arith.mulf %388, %350 : vector<8x32xf32>
    %399 = arith.mulf %387, %393 : vector<8x32xf32>
    %400 = arith.addf %398, %399 : vector<8x32xf32>
    %401 = tpu.concatenate %397, %400 in 1 : vector<8x32xf32>, vector<8x32xf32> -> vector<8x64xf32>
    %402 = math.tanh %401 : vector<8x64xf32>
    %403 = vector.extract_strided_slice %402 {offsets = [0, 0], sizes = [8, 32], strides = [1, 1]} : vector<8x64xf32> to vector<8x32xf32>
    %404 = arith.mulf %386, %403 : vector<8x32xf32>
    %405 = vector.extract_strided_slice %402 {offsets = [0, 32], sizes = [8, 32], strides = [1, 1]} : vector<8x64xf32> to vector<8x32xf32>
    %406 = arith.mulf %394, %405 : vector<8x32xf32>
    %407 = arith.index_cast %363 : i32 to index
    %c0_117 = arith.constant 0 : index
    %408 = vector.load %arg12[%407, %c0_117] : memref<64x64xf32, #tpu.memory_space<vmem>>, vector<8x32xf32>
    tpu.vector_store %arg12[%407, %c0_117], %404 {strides = array<i32>} : memref<64x64xf32, #tpu.memory_space<vmem>>, vector<8x32xf32>,
    %409 = arith.index_cast %366 : i32 to index
    %c32_118 = arith.constant 32 : index
    %410 = vector.load %arg12[%409, %c32_118] : memref<64x64xf32, #tpu.memory_space<vmem>>, vector<8x32xf32>
    tpu.vector_store %arg12[%409, %c32_118], %406 {strides = array<i32>} : memref<64x64xf32, #tpu.memory_space<vmem>>, vector<8x32xf32>,
    %411 = tpu.concatenate %404, %406 in 1 : vector<8x32xf32>, vector<8x32xf32> -> vector<8x64xf32>
    %c8_i32_119 = arith.constant 8 : i32
    %c0_120 = arith.constant 0 : index
    %c0_121 = arith.constant 0 : index
    %412 = vector.load %arg12[%c0_120, %c0_121] : memref<64x64xf32, #tpu.memory_space<vmem>>, vector<64x64xf32>
    %c0_122 = arith.constant 0 : index
    %c0_123 = arith.constant 0 : index
    %413 = vector.load %arg5[%c0_122, %c0_123] : memref<64x256xf32, #tpu.memory_space<vmem>>, vector<64x256xf32>
    %cst_124 = arith.constant dense<0.000000e+00> : vector<64x256xf32>
    %414 = tpu.matmul %412, %413, %cst_124 {dimension_numbers = #tpu.dot_dimension_numbers<[1], [0], [0], [1], [0, 0, 1, 1], [], []>} : vector<64x64xf32>, vector<64x256xf32>, vector<64x256xf32> -> vector<64x256xf32>
    %c0_125 = arith.constant 0 : index
    %c0_126 = arith.constant 0 : index
    %415 = vector.load %arg6[%c0_125, %c0_126] : memref<1x256xf32, #tpu.memory_space<vmem>>, vector<1x256xf32>
    %416 = vector.broadcast %415 : vector<1x256xf32> to vector<64x256xf32>
    %417 = arith.addf %414, %416 : vector<64x256xf32>
    %c0_127 = arith.constant 0 : index
    %c0_128 = arith.constant 0 : index
    %418 = vector.load %arg13[%c0_127, %c0_128] : memref<64x256xf32, #tpu.memory_space<vmem>>, vector<64x256xf32>
    tpu.vector_store %arg13[%c0_127, %c0_128], %417 {strides = array<i32>} : memref<64x256xf32, #tpu.memory_space<vmem>>, vector<64x256xf32>,
    %c0_129 = arith.constant 0 : index
    %c0_130 = arith.constant 0 : index
    %419 = vector.load %arg7[%c0_129, %c0_130] : memref<64x256xf32, #tpu.memory_space<vmem>>, vector<64x256xf32>
    %cst_131 = arith.constant 0.000000e+00 : f32
    %420 = vector.broadcast %cst_131 : f32 to vector<8x64xf32>
    %cst_132 = arith.constant 0.000000e+00 : f32
    %421 = vector.broadcast %cst_132 : f32 to vector<8x32xf32>
    %c0_i32_133 = arith.constant 0 : i32
    %c8_i32_134 = arith.constant 8 : i32
    %422 = arith.muli %c0_i32_133, %c8_i32_134 : i32
    %423 = tpu.assume_multiple %422, 8 : i32
    %c7_i32_135 = arith.constant 7 : i32
    %424 = arith.subi %c7_i32_135, %c0_i32_133 : i32
    %c8_i32_136 = arith.constant 8 : i32
    %425 = arith.muli %424, %c8_i32_136 : i32
    %426 = tpu.assume_multiple %425, 8 : i32
    %427 = arith.index_cast %423 : i32 to index
    %c0_137 = arith.constant 0 : index
    %428 = vector.load %arg13[%427, %c0_137] : memref<64x256xf32, #tpu.memory_space<vmem>>, vector<8x128xf32>
    %429 = arith.index_cast %426 : i32 to index
    %c128_138 = arith.constant 128 : index
    %430 = vector.load %arg13[%429, %c128_138] : memref<64x256xf32, #tpu.memory_space<vmem>>, vector<8x128xf32>
    %431 = tpu.concatenate %428, %430 in 1 : vector<8x128xf32>, vector<8x128xf32> -> vector<8x256xf32>
    %cst_139 = arith.constant dense<0.000000e+00> : vector<8x256xf32>
    %432 = tpu.matmul %420, %419, %cst_139 {dimension_numbers = #tpu.dot_dimension_numbers<[1], [0], [0], [1], [0, 0, 1, 1], [], []>} : vector<8x64xf32>, vector<64x256xf32>, vector<8x256xf32> -> vector<8x256xf32>
    %433 = arith.addf %431, %432 : vector<8x256xf32>
    %434 = arith.negf %433 : vector<8x256xf32>
    %435 = math.exp %434 : vector<8x256xf32>
    %cst_140 = arith.constant 1.000000e+00 : f32
    %436 = vector.broadcast %cst_140 : f32 to vector<8x256xf32>
    %437 = arith.addf %436, %435 : vector<8x256xf32>
    %438 = arith.divf %436, %437 : vector<8x256xf32>
    %439 = vector.extract_strided_slice %438 {offsets = [0, 0], sizes = [8, 32], strides = [1, 1]} : vector<8x256xf32> to vector<8x32xf32>
    %440 = vector.extract_strided_slice %438 {offsets = [0, 32], sizes = [8, 32], strides = [1, 1]} : vector<8x256xf32> to vector<8x32xf32>
    %441 = vector.extract_strided_slice %438 {offsets = [0, 64], sizes = [8, 32], strides = [1, 1]} : vector<8x256xf32> to vector<8x32xf32>
    %cst_141 = arith.constant 2.000000e+00 : f32
    %442 = vector.broadcast %cst_141 : f32 to vector<8x32xf32>
    %443 = arith.mulf %442, %441 : vector<8x32xf32>
    %cst_142 = arith.constant 1.000000e+00 : f32
    %444 = vector.broadcast %cst_142 : f32 to vector<8x32xf32>
    %445 = arith.subf %443, %444 : vector<8x32xf32>
    %446 = vector.extract_strided_slice %438 {offsets = [0, 96], sizes = [8, 32], strides = [1, 1]} : vector<8x256xf32> to vector<8x32xf32>
    %447 = vector.extract_strided_slice %438 {offsets = [0, 128], sizes = [8, 32], strides = [1, 1]} : vector<8x256xf32> to vector<8x32xf32>
    %448 = vector.extract_strided_slice %438 {offsets = [0, 160], sizes = [8, 32], strides = [1, 1]} : vector<8x256xf32> to vector<8x32xf32>
    %449 = vector.extract_strided_slice %438 {offsets = [0, 192], sizes = [8, 32], strides = [1, 1]} : vector<8x256xf32> to vector<8x32xf32>
    %cst_143 = arith.constant 2.000000e+00 : f32
    %450 = vector.broadcast %cst_143 : f32 to vector<8x32xf32>
    %451 = arith.mulf %450, %449 : vector<8x32xf32>
    %cst_144 = arith.constant 1.000000e+00 : f32
    %452 = vector.broadcast %cst_144 : f32 to vector<8x32xf32>
    %453 = arith.subf %451, %452 : vector<8x32xf32>
    %454 = vector.extract_strided_slice %438 {offsets = [0, 224], sizes = [8, 32], strides = [1, 1]} : vector<8x256xf32> to vector<8x32xf32>
    %455 = arith.mulf %440, %421 : vector<8x32xf32>
    %456 = arith.mulf %439, %445 : vector<8x32xf32>
    %457 = arith.addf %455, %456 : vector<8x32xf32>
    %458 = arith.mulf %448, %421 : vector<8x32xf32>
    %459 = arith.mulf %447, %453 : vector<8x32xf32>
    %460 = arith.addf %458, %459 : vector<8x32xf32>
    %461 = tpu.concatenate %457, %460 in 1 : vector<8x32xf32>, vector<8x32xf32> -> vector<8x64xf32>
    %462 = math.tanh %461 : vector<8x64xf32>
    %463 = vector.extract_strided_slice %462 {offsets = [0, 0], sizes = [8, 32], strides = [1, 1]} : vector<8x64xf32> to vector<8x32xf32>
    %464 = arith.mulf %446, %463 : vector<8x32xf32>
    %465 = vector.extract_strided_slice %462 {offsets = [0, 32], sizes = [8, 32], strides = [1, 1]} : vector<8x64xf32> to vector<8x32xf32>
    %466 = arith.mulf %454, %465 : vector<8x32xf32>
    %467 = arith.index_cast %423 : i32 to index
    %c0_145 = arith.constant 0 : index
    %468 = vector.load %arg12[%467, %c0_145] : memref<64x64xf32, #tpu.memory_space<vmem>>, vector<8x32xf32>
    tpu.vector_store %arg12[%467, %c0_145], %464 {strides = array<i32>} : memref<64x64xf32, #tpu.memory_space<vmem>>, vector<8x32xf32>,
    %469 = arith.index_cast %426 : i32 to index
    %c32_146 = arith.constant 32 : index
    %470 = vector.load %arg12[%469, %c32_146] : memref<64x64xf32, #tpu.memory_space<vmem>>, vector<8x32xf32>
    tpu.vector_store %arg12[%469, %c32_146], %466 {strides = array<i32>} : memref<64x64xf32, #tpu.memory_space<vmem>>, vector<8x32xf32>,
    %471 = tpu.concatenate %464, %466 in 1 : vector<8x32xf32>, vector<8x32xf32> -> vector<8x64xf32>
    %c1_i32_147 = arith.constant 1 : i32
    %c8_i32_148 = arith.constant 8 : i32
    %472 = arith.muli %c1_i32_147, %c8_i32_148 : i32
    %473 = tpu.assume_multiple %472, 8 : i32
    %c7_i32_149 = arith.constant 7 : i32
    %474 = arith.subi %c7_i32_149, %c1_i32_147 : i32
    %c8_i32_150 = arith.constant 8 : i32
    %475 = arith.muli %474, %c8_i32_150 : i32
    %476 = tpu.assume_multiple %475, 8 : i32
    %477 = arith.index_cast %473 : i32 to index
    %c0_151 = arith.constant 0 : index
    %478 = vector.load %arg13[%477, %c0_151] : memref<64x256xf32, #tpu.memory_space<vmem>>, vector<8x128xf32>
    %479 = arith.index_cast %476 : i32 to index
    %c128_152 = arith.constant 128 : index
    %480 = vector.load %arg13[%479, %c128_152] : memref<64x256xf32, #tpu.memory_space<vmem>>, vector<8x128xf32>
    %481 = tpu.concatenate %478, %480 in 1 : vector<8x128xf32>, vector<8x128xf32> -> vector<8x256xf32>
    %cst_153 = arith.constant dense<0.000000e+00> : vector<8x256xf32>
    %482 = tpu.matmul %471, %419, %cst_153 {dimension_numbers = #tpu.dot_dimension_numbers<[1], [0], [0], [1], [0, 0, 1, 1], [], []>} : vector<8x64xf32>, vector<64x256xf32>, vector<8x256xf32> -> vector<8x256xf32>
    %483 = arith.addf %481, %482 : vector<8x256xf32>
    %484 = arith.negf %483 : vector<8x256xf32>
    %485 = math.exp %484 : vector<8x256xf32>
    %cst_154 = arith.constant 1.000000e+00 : f32
    %486 = vector.broadcast %cst_154 : f32 to vector<8x256xf32>
    %487 = arith.addf %486, %485 : vector<8x256xf32>
    %488 = arith.divf %486, %487 : vector<8x256xf32>
    %489 = vector.extract_strided_slice %488 {offsets = [0, 0], sizes = [8, 32], strides = [1, 1]} : vector<8x256xf32> to vector<8x32xf32>
    %490 = vector.extract_strided_slice %488 {offsets = [0, 32], sizes = [8, 32], strides = [1, 1]} : vector<8x256xf32> to vector<8x32xf32>
    %491 = vector.extract_strided_slice %488 {offsets = [0, 64], sizes = [8, 32], strides = [1, 1]} : vector<8x256xf32> to vector<8x32xf32>
    %cst_155 = arith.constant 2.000000e+00 : f32
    %492 = vector.broadcast %cst_155 : f32 to vector<8x32xf32>
    %493 = arith.mulf %492, %491 : vector<8x32xf32>
    %cst_156 = arith.constant 1.000000e+00 : f32
    %494 = vector.broadcast %cst_156 : f32 to vector<8x32xf32>
    %495 = arith.subf %493, %494 : vector<8x32xf32>
    %496 = vector.extract_strided_slice %488 {offsets = [0, 96], sizes = [8, 32], strides = [1, 1]} : vector<8x256xf32> to vector<8x32xf32>
    %497 = vector.extract_strided_slice %488 {offsets = [0, 128], sizes = [8, 32], strides = [1, 1]} : vector<8x256xf32> to vector<8x32xf32>
    %498 = vector.extract_strided_slice %488 {offsets = [0, 160], sizes = [8, 32], strides = [1, 1]} : vector<8x256xf32> to vector<8x32xf32>
    %499 = vector.extract_strided_slice %488 {offsets = [0, 192], sizes = [8, 32], strides = [1, 1]} : vector<8x256xf32> to vector<8x32xf32>
    %cst_157 = arith.constant 2.000000e+00 : f32
    %500 = vector.broadcast %cst_157 : f32 to vector<8x32xf32>
    %501 = arith.mulf %500, %499 : vector<8x32xf32>
    %cst_158 = arith.constant 1.000000e+00 : f32
    %502 = vector.broadcast %cst_158 : f32 to vector<8x32xf32>
    %503 = arith.subf %501, %502 : vector<8x32xf32>
    %504 = vector.extract_strided_slice %488 {offsets = [0, 224], sizes = [8, 32], strides = [1, 1]} : vector<8x256xf32> to vector<8x32xf32>
    %505 = arith.mulf %490, %457 : vector<8x32xf32>
    %506 = arith.mulf %489, %495 : vector<8x32xf32>
    %507 = arith.addf %505, %506 : vector<8x32xf32>
    %508 = arith.mulf %498, %460 : vector<8x32xf32>
    %509 = arith.mulf %497, %503 : vector<8x32xf32>
    %510 = arith.addf %508, %509 : vector<8x32xf32>
    %511 = tpu.concatenate %507, %510 in 1 : vector<8x32xf32>, vector<8x32xf32> -> vector<8x64xf32>
    %512 = math.tanh %511 : vector<8x64xf32>
    %513 = vector.extract_strided_slice %512 {offsets = [0, 0], sizes = [8, 32], strides = [1, 1]} : vector<8x64xf32> to vector<8x32xf32>
    %514 = arith.mulf %496, %513 : vector<8x32xf32>
    %515 = vector.extract_strided_slice %512 {offsets = [0, 32], sizes = [8, 32], strides = [1, 1]} : vector<8x64xf32> to vector<8x32xf32>
    %516 = arith.mulf %504, %515 : vector<8x32xf32>
    %517 = arith.index_cast %473 : i32 to index
    %c0_159 = arith.constant 0 : index
    %518 = vector.load %arg12[%517, %c0_159] : memref<64x64xf32, #tpu.memory_space<vmem>>, vector<8x32xf32>
    tpu.vector_store %arg12[%517, %c0_159], %514 {strides = array<i32>} : memref<64x64xf32, #tpu.memory_space<vmem>>, vector<8x32xf32>,
    %519 = arith.index_cast %476 : i32 to index
    %c32_160 = arith.constant 32 : index
    %520 = vector.load %arg12[%519, %c32_160] : memref<64x64xf32, #tpu.memory_space<vmem>>, vector<8x32xf32>
    tpu.vector_store %arg12[%519, %c32_160], %516 {strides = array<i32>} : memref<64x64xf32, #tpu.memory_space<vmem>>, vector<8x32xf32>,
    %521 = tpu.concatenate %514, %516 in 1 : vector<8x32xf32>, vector<8x32xf32> -> vector<8x64xf32>
    %c2_i32_161 = arith.constant 2 : i32
    %c8_i32_162 = arith.constant 8 : i32
    %522 = arith.muli %c2_i32_161, %c8_i32_162 : i32
    %523 = tpu.assume_multiple %522, 8 : i32
    %c7_i32_163 = arith.constant 7 : i32
    %524 = arith.subi %c7_i32_163, %c2_i32_161 : i32
    %c8_i32_164 = arith.constant 8 : i32
    %525 = arith.muli %524, %c8_i32_164 : i32
    %526 = tpu.assume_multiple %525, 8 : i32
    %527 = arith.index_cast %523 : i32 to index
    %c0_165 = arith.constant 0 : index
    %528 = vector.load %arg13[%527, %c0_165] : memref<64x256xf32, #tpu.memory_space<vmem>>, vector<8x128xf32>
    %529 = arith.index_cast %526 : i32 to index
    %c128_166 = arith.constant 128 : index
    %530 = vector.load %arg13[%529, %c128_166] : memref<64x256xf32, #tpu.memory_space<vmem>>, vector<8x128xf32>
    %531 = tpu.concatenate %528, %530 in 1 : vector<8x128xf32>, vector<8x128xf32> -> vector<8x256xf32>
    %cst_167 = arith.constant dense<0.000000e+00> : vector<8x256xf32>
    %532 = tpu.matmul %521, %419, %cst_167 {dimension_numbers = #tpu.dot_dimension_numbers<[1], [0], [0], [1], [0, 0, 1, 1], [], []>} : vector<8x64xf32>, vector<64x256xf32>, vector<8x256xf32> -> vector<8x256xf32>
    %533 = arith.addf %531, %532 : vector<8x256xf32>
    %534 = arith.negf %533 : vector<8x256xf32>
    %535 = math.exp %534 : vector<8x256xf32>
    %cst_168 = arith.constant 1.000000e+00 : f32
    %536 = vector.broadcast %cst_168 : f32 to vector<8x256xf32>
    %537 = arith.addf %536, %535 : vector<8x256xf32>
    %538 = arith.divf %536, %537 : vector<8x256xf32>
    %539 = vector.extract_strided_slice %538 {offsets = [0, 0], sizes = [8, 32], strides = [1, 1]} : vector<8x256xf32> to vector<8x32xf32>
    %540 = vector.extract_strided_slice %538 {offsets = [0, 32], sizes = [8, 32], strides = [1, 1]} : vector<8x256xf32> to vector<8x32xf32>
    %541 = vector.extract_strided_slice %538 {offsets = [0, 64], sizes = [8, 32], strides = [1, 1]} : vector<8x256xf32> to vector<8x32xf32>
    %cst_169 = arith.constant 2.000000e+00 : f32
    %542 = vector.broadcast %cst_169 : f32 to vector<8x32xf32>
    %543 = arith.mulf %542, %541 : vector<8x32xf32>
    %cst_170 = arith.constant 1.000000e+00 : f32
    %544 = vector.broadcast %cst_170 : f32 to vector<8x32xf32>
    %545 = arith.subf %543, %544 : vector<8x32xf32>
    %546 = vector.extract_strided_slice %538 {offsets = [0, 96], sizes = [8, 32], strides = [1, 1]} : vector<8x256xf32> to vector<8x32xf32>
    %547 = vector.extract_strided_slice %538 {offsets = [0, 128], sizes = [8, 32], strides = [1, 1]} : vector<8x256xf32> to vector<8x32xf32>
    %548 = vector.extract_strided_slice %538 {offsets = [0, 160], sizes = [8, 32], strides = [1, 1]} : vector<8x256xf32> to vector<8x32xf32>
    %549 = vector.extract_strided_slice %538 {offsets = [0, 192], sizes = [8, 32], strides = [1, 1]} : vector<8x256xf32> to vector<8x32xf32>
    %cst_171 = arith.constant 2.000000e+00 : f32
    %550 = vector.broadcast %cst_171 : f32 to vector<8x32xf32>
    %551 = arith.mulf %550, %549 : vector<8x32xf32>
    %cst_172 = arith.constant 1.000000e+00 : f32
    %552 = vector.broadcast %cst_172 : f32 to vector<8x32xf32>
    %553 = arith.subf %551, %552 : vector<8x32xf32>
    %554 = vector.extract_strided_slice %538 {offsets = [0, 224], sizes = [8, 32], strides = [1, 1]} : vector<8x256xf32> to vector<8x32xf32>
    %555 = arith.mulf %540, %507 : vector<8x32xf32>
    %556 = arith.mulf %539, %545 : vector<8x32xf32>
    %557 = arith.addf %555, %556 : vector<8x32xf32>
    %558 = arith.mulf %548, %510 : vector<8x32xf32>
    %559 = arith.mulf %547, %553 : vector<8x32xf32>
    %560 = arith.addf %558, %559 : vector<8x32xf32>
    %561 = tpu.concatenate %557, %560 in 1 : vector<8x32xf32>, vector<8x32xf32> -> vector<8x64xf32>
    %562 = math.tanh %561 : vector<8x64xf32>
    %563 = vector.extract_strided_slice %562 {offsets = [0, 0], sizes = [8, 32], strides = [1, 1]} : vector<8x64xf32> to vector<8x32xf32>
    %564 = arith.mulf %546, %563 : vector<8x32xf32>
    %565 = vector.extract_strided_slice %562 {offsets = [0, 32], sizes = [8, 32], strides = [1, 1]} : vector<8x64xf32> to vector<8x32xf32>
    %566 = arith.mulf %554, %565 : vector<8x32xf32>
    %567 = arith.index_cast %523 : i32 to index
    %c0_173 = arith.constant 0 : index
    %568 = vector.load %arg12[%567, %c0_173] : memref<64x64xf32, #tpu.memory_space<vmem>>, vector<8x32xf32>
    tpu.vector_store %arg12[%567, %c0_173], %564 {strides = array<i32>} : memref<64x64xf32, #tpu.memory_space<vmem>>, vector<8x32xf32>,
    %569 = arith.index_cast %526 : i32 to index
    %c32_174 = arith.constant 32 : index
    %570 = vector.load %arg12[%569, %c32_174] : memref<64x64xf32, #tpu.memory_space<vmem>>, vector<8x32xf32>
    tpu.vector_store %arg12[%569, %c32_174], %566 {strides = array<i32>} : memref<64x64xf32, #tpu.memory_space<vmem>>, vector<8x32xf32>,
    %571 = tpu.concatenate %564, %566 in 1 : vector<8x32xf32>, vector<8x32xf32> -> vector<8x64xf32>
    %c3_i32_175 = arith.constant 3 : i32
    %c8_i32_176 = arith.constant 8 : i32
    %572 = arith.muli %c3_i32_175, %c8_i32_176 : i32
    %573 = tpu.assume_multiple %572, 8 : i32
    %c7_i32_177 = arith.constant 7 : i32
    %574 = arith.subi %c7_i32_177, %c3_i32_175 : i32
    %c8_i32_178 = arith.constant 8 : i32
    %575 = arith.muli %574, %c8_i32_178 : i32
    %576 = tpu.assume_multiple %575, 8 : i32
    %577 = arith.index_cast %573 : i32 to index
    %c0_179 = arith.constant 0 : index
    %578 = vector.load %arg13[%577, %c0_179] : memref<64x256xf32, #tpu.memory_space<vmem>>, vector<8x128xf32>
    %579 = arith.index_cast %576 : i32 to index
    %c128_180 = arith.constant 128 : index
    %580 = vector.load %arg13[%579, %c128_180] : memref<64x256xf32, #tpu.memory_space<vmem>>, vector<8x128xf32>
    %581 = tpu.concatenate %578, %580 in 1 : vector<8x128xf32>, vector<8x128xf32> -> vector<8x256xf32>
    %cst_181 = arith.constant dense<0.000000e+00> : vector<8x256xf32>
    %582 = tpu.matmul %571, %419, %cst_181 {dimension_numbers = #tpu.dot_dimension_numbers<[1], [0], [0], [1], [0, 0, 1, 1], [], []>} : vector<8x64xf32>, vector<64x256xf32>, vector<8x256xf32> -> vector<8x256xf32>
    %583 = arith.addf %581, %582 : vector<8x256xf32>
    %584 = arith.negf %583 : vector<8x256xf32>
    %585 = math.exp %584 : vector<8x256xf32>
    %cst_182 = arith.constant 1.000000e+00 : f32
    %586 = vector.broadcast %cst_182 : f32 to vector<8x256xf32>
    %587 = arith.addf %586, %585 : vector<8x256xf32>
    %588 = arith.divf %586, %587 : vector<8x256xf32>
    %589 = vector.extract_strided_slice %588 {offsets = [0, 0], sizes = [8, 32], strides = [1, 1]} : vector<8x256xf32> to vector<8x32xf32>
    %590 = vector.extract_strided_slice %588 {offsets = [0, 32], sizes = [8, 32], strides = [1, 1]} : vector<8x256xf32> to vector<8x32xf32>
    %591 = vector.extract_strided_slice %588 {offsets = [0, 64], sizes = [8, 32], strides = [1, 1]} : vector<8x256xf32> to vector<8x32xf32>
    %cst_183 = arith.constant 2.000000e+00 : f32
    %592 = vector.broadcast %cst_183 : f32 to vector<8x32xf32>
    %593 = arith.mulf %592, %591 : vector<8x32xf32>
    %cst_184 = arith.constant 1.000000e+00 : f32
    %594 = vector.broadcast %cst_184 : f32 to vector<8x32xf32>
    %595 = arith.subf %593, %594 : vector<8x32xf32>
    %596 = vector.extract_strided_slice %588 {offsets = [0, 96], sizes = [8, 32], strides = [1, 1]} : vector<8x256xf32> to vector<8x32xf32>
    %597 = vector.extract_strided_slice %588 {offsets = [0, 128], sizes = [8, 32], strides = [1, 1]} : vector<8x256xf32> to vector<8x32xf32>
    %598 = vector.extract_strided_slice %588 {offsets = [0, 160], sizes = [8, 32], strides = [1, 1]} : vector<8x256xf32> to vector<8x32xf32>
    %599 = vector.extract_strided_slice %588 {offsets = [0, 192], sizes = [8, 32], strides = [1, 1]} : vector<8x256xf32> to vector<8x32xf32>
    %cst_185 = arith.constant 2.000000e+00 : f32
    %600 = vector.broadcast %cst_185 : f32 to vector<8x32xf32>
    %601 = arith.mulf %600, %599 : vector<8x32xf32>
    %cst_186 = arith.constant 1.000000e+00 : f32
    %602 = vector.broadcast %cst_186 : f32 to vector<8x32xf32>
    %603 = arith.subf %601, %602 : vector<8x32xf32>
    %604 = vector.extract_strided_slice %588 {offsets = [0, 224], sizes = [8, 32], strides = [1, 1]} : vector<8x256xf32> to vector<8x32xf32>
    %605 = arith.mulf %590, %557 : vector<8x32xf32>
    %606 = arith.mulf %589, %595 : vector<8x32xf32>
    %607 = arith.addf %605, %606 : vector<8x32xf32>
    %608 = arith.mulf %598, %560 : vector<8x32xf32>
    %609 = arith.mulf %597, %603 : vector<8x32xf32>
    %610 = arith.addf %608, %609 : vector<8x32xf32>
    %611 = tpu.concatenate %607, %610 in 1 : vector<8x32xf32>, vector<8x32xf32> -> vector<8x64xf32>
    %612 = math.tanh %611 : vector<8x64xf32>
    %613 = vector.extract_strided_slice %612 {offsets = [0, 0], sizes = [8, 32], strides = [1, 1]} : vector<8x64xf32> to vector<8x32xf32>
    %614 = arith.mulf %596, %613 : vector<8x32xf32>
    %615 = vector.extract_strided_slice %612 {offsets = [0, 32], sizes = [8, 32], strides = [1, 1]} : vector<8x64xf32> to vector<8x32xf32>
    %616 = arith.mulf %604, %615 : vector<8x32xf32>
    %617 = arith.index_cast %573 : i32 to index
    %c0_187 = arith.constant 0 : index
    %618 = vector.load %arg12[%617, %c0_187] : memref<64x64xf32, #tpu.memory_space<vmem>>, vector<8x32xf32>
    tpu.vector_store %arg12[%617, %c0_187], %614 {strides = array<i32>} : memref<64x64xf32, #tpu.memory_space<vmem>>, vector<8x32xf32>,
    %619 = arith.index_cast %576 : i32 to index
    %c32_188 = arith.constant 32 : index
    %620 = vector.load %arg12[%619, %c32_188] : memref<64x64xf32, #tpu.memory_space<vmem>>, vector<8x32xf32>
    tpu.vector_store %arg12[%619, %c32_188], %616 {strides = array<i32>} : memref<64x64xf32, #tpu.memory_space<vmem>>, vector<8x32xf32>,
    %621 = tpu.concatenate %614, %616 in 1 : vector<8x32xf32>, vector<8x32xf32> -> vector<8x64xf32>
    %c4_i32_189 = arith.constant 4 : i32
    %c8_i32_190 = arith.constant 8 : i32
    %622 = arith.muli %c4_i32_189, %c8_i32_190 : i32
    %623 = tpu.assume_multiple %622, 8 : i32
    %c7_i32_191 = arith.constant 7 : i32
    %624 = arith.subi %c7_i32_191, %c4_i32_189 : i32
    %c8_i32_192 = arith.constant 8 : i32
    %625 = arith.muli %624, %c8_i32_192 : i32
    %626 = tpu.assume_multiple %625, 8 : i32
    %627 = arith.index_cast %623 : i32 to index
    %c0_193 = arith.constant 0 : index
    %628 = vector.load %arg13[%627, %c0_193] : memref<64x256xf32, #tpu.memory_space<vmem>>, vector<8x128xf32>
    %629 = arith.index_cast %626 : i32 to index
    %c128_194 = arith.constant 128 : index
    %630 = vector.load %arg13[%629, %c128_194] : memref<64x256xf32, #tpu.memory_space<vmem>>, vector<8x128xf32>
    %631 = tpu.concatenate %628, %630 in 1 : vector<8x128xf32>, vector<8x128xf32> -> vector<8x256xf32>
    %cst_195 = arith.constant dense<0.000000e+00> : vector<8x256xf32>
    %632 = tpu.matmul %621, %419, %cst_195 {dimension_numbers = #tpu.dot_dimension_numbers<[1], [0], [0], [1], [0, 0, 1, 1], [], []>} : vector<8x64xf32>, vector<64x256xf32>, vector<8x256xf32> -> vector<8x256xf32>
    %633 = arith.addf %631, %632 : vector<8x256xf32>
    %634 = arith.negf %633 : vector<8x256xf32>
    %635 = math.exp %634 : vector<8x256xf32>
    %cst_196 = arith.constant 1.000000e+00 : f32
    %636 = vector.broadcast %cst_196 : f32 to vector<8x256xf32>
    %637 = arith.addf %636, %635 : vector<8x256xf32>
    %638 = arith.divf %636, %637 : vector<8x256xf32>
    %639 = vector.extract_strided_slice %638 {offsets = [0, 0], sizes = [8, 32], strides = [1, 1]} : vector<8x256xf32> to vector<8x32xf32>
    %640 = vector.extract_strided_slice %638 {offsets = [0, 32], sizes = [8, 32], strides = [1, 1]} : vector<8x256xf32> to vector<8x32xf32>
    %641 = vector.extract_strided_slice %638 {offsets = [0, 64], sizes = [8, 32], strides = [1, 1]} : vector<8x256xf32> to vector<8x32xf32>
    %cst_197 = arith.constant 2.000000e+00 : f32
    %642 = vector.broadcast %cst_197 : f32 to vector<8x32xf32>
    %643 = arith.mulf %642, %641 : vector<8x32xf32>
    %cst_198 = arith.constant 1.000000e+00 : f32
    %644 = vector.broadcast %cst_198 : f32 to vector<8x32xf32>
    %645 = arith.subf %643, %644 : vector<8x32xf32>
    %646 = vector.extract_strided_slice %638 {offsets = [0, 96], sizes = [8, 32], strides = [1, 1]} : vector<8x256xf32> to vector<8x32xf32>
    %647 = vector.extract_strided_slice %638 {offsets = [0, 128], sizes = [8, 32], strides = [1, 1]} : vector<8x256xf32> to vector<8x32xf32>
    %648 = vector.extract_strided_slice %638 {offsets = [0, 160], sizes = [8, 32], strides = [1, 1]} : vector<8x256xf32> to vector<8x32xf32>
    %649 = vector.extract_strided_slice %638 {offsets = [0, 192], sizes = [8, 32], strides = [1, 1]} : vector<8x256xf32> to vector<8x32xf32>
    %cst_199 = arith.constant 2.000000e+00 : f32
    %650 = vector.broadcast %cst_199 : f32 to vector<8x32xf32>
    %651 = arith.mulf %650, %649 : vector<8x32xf32>
    %cst_200 = arith.constant 1.000000e+00 : f32
    %652 = vector.broadcast %cst_200 : f32 to vector<8x32xf32>
    %653 = arith.subf %651, %652 : vector<8x32xf32>
    %654 = vector.extract_strided_slice %638 {offsets = [0, 224], sizes = [8, 32], strides = [1, 1]} : vector<8x256xf32> to vector<8x32xf32>
    %655 = arith.mulf %640, %607 : vector<8x32xf32>
    %656 = arith.mulf %639, %645 : vector<8x32xf32>
    %657 = arith.addf %655, %656 : vector<8x32xf32>
    %658 = arith.mulf %648, %610 : vector<8x32xf32>
    %659 = arith.mulf %647, %653 : vector<8x32xf32>
    %660 = arith.addf %658, %659 : vector<8x32xf32>
    %661 = tpu.concatenate %657, %660 in 1 : vector<8x32xf32>, vector<8x32xf32> -> vector<8x64xf32>
    %662 = math.tanh %661 : vector<8x64xf32>
    %663 = vector.extract_strided_slice %662 {offsets = [0, 0], sizes = [8, 32], strides = [1, 1]} : vector<8x64xf32> to vector<8x32xf32>
    %664 = arith.mulf %646, %663 : vector<8x32xf32>
    %665 = vector.extract_strided_slice %662 {offsets = [0, 32], sizes = [8, 32], strides = [1, 1]} : vector<8x64xf32> to vector<8x32xf32>
    %666 = arith.mulf %654, %665 : vector<8x32xf32>
    %667 = arith.index_cast %623 : i32 to index
    %c0_201 = arith.constant 0 : index
    %668 = vector.load %arg12[%667, %c0_201] : memref<64x64xf32, #tpu.memory_space<vmem>>, vector<8x32xf32>
    tpu.vector_store %arg12[%667, %c0_201], %664 {strides = array<i32>} : memref<64x64xf32, #tpu.memory_space<vmem>>, vector<8x32xf32>,
    %669 = arith.index_cast %626 : i32 to index
    %c32_202 = arith.constant 32 : index
    %670 = vector.load %arg12[%669, %c32_202] : memref<64x64xf32, #tpu.memory_space<vmem>>, vector<8x32xf32>
    tpu.vector_store %arg12[%669, %c32_202], %666 {strides = array<i32>} : memref<64x64xf32, #tpu.memory_space<vmem>>, vector<8x32xf32>,
    %671 = tpu.concatenate %664, %666 in 1 : vector<8x32xf32>, vector<8x32xf32> -> vector<8x64xf32>
    %c5_i32_203 = arith.constant 5 : i32
    %c8_i32_204 = arith.constant 8 : i32
    %672 = arith.muli %c5_i32_203, %c8_i32_204 : i32
    %673 = tpu.assume_multiple %672, 8 : i32
    %c7_i32_205 = arith.constant 7 : i32
    %674 = arith.subi %c7_i32_205, %c5_i32_203 : i32
    %c8_i32_206 = arith.constant 8 : i32
    %675 = arith.muli %674, %c8_i32_206 : i32
    %676 = tpu.assume_multiple %675, 8 : i32
    %677 = arith.index_cast %673 : i32 to index
    %c0_207 = arith.constant 0 : index
    %678 = vector.load %arg13[%677, %c0_207] : memref<64x256xf32, #tpu.memory_space<vmem>>, vector<8x128xf32>
    %679 = arith.index_cast %676 : i32 to index
    %c128_208 = arith.constant 128 : index
    %680 = vector.load %arg13[%679, %c128_208] : memref<64x256xf32, #tpu.memory_space<vmem>>, vector<8x128xf32>
    %681 = tpu.concatenate %678, %680 in 1 : vector<8x128xf32>, vector<8x128xf32> -> vector<8x256xf32>
    %cst_209 = arith.constant dense<0.000000e+00> : vector<8x256xf32>
    %682 = tpu.matmul %671, %419, %cst_209 {dimension_numbers = #tpu.dot_dimension_numbers<[1], [0], [0], [1], [0, 0, 1, 1], [], []>} : vector<8x64xf32>, vector<64x256xf32>, vector<8x256xf32> -> vector<8x256xf32>
    %683 = arith.addf %681, %682 : vector<8x256xf32>
    %684 = arith.negf %683 : vector<8x256xf32>
    %685 = math.exp %684 : vector<8x256xf32>
    %cst_210 = arith.constant 1.000000e+00 : f32
    %686 = vector.broadcast %cst_210 : f32 to vector<8x256xf32>
    %687 = arith.addf %686, %685 : vector<8x256xf32>
    %688 = arith.divf %686, %687 : vector<8x256xf32>
    %689 = vector.extract_strided_slice %688 {offsets = [0, 0], sizes = [8, 32], strides = [1, 1]} : vector<8x256xf32> to vector<8x32xf32>
    %690 = vector.extract_strided_slice %688 {offsets = [0, 32], sizes = [8, 32], strides = [1, 1]} : vector<8x256xf32> to vector<8x32xf32>
    %691 = vector.extract_strided_slice %688 {offsets = [0, 64], sizes = [8, 32], strides = [1, 1]} : vector<8x256xf32> to vector<8x32xf32>
    %cst_211 = arith.constant 2.000000e+00 : f32
    %692 = vector.broadcast %cst_211 : f32 to vector<8x32xf32>
    %693 = arith.mulf %692, %691 : vector<8x32xf32>
    %cst_212 = arith.constant 1.000000e+00 : f32
    %694 = vector.broadcast %cst_212 : f32 to vector<8x32xf32>
    %695 = arith.subf %693, %694 : vector<8x32xf32>
    %696 = vector.extract_strided_slice %688 {offsets = [0, 96], sizes = [8, 32], strides = [1, 1]} : vector<8x256xf32> to vector<8x32xf32>
    %697 = vector.extract_strided_slice %688 {offsets = [0, 128], sizes = [8, 32], strides = [1, 1]} : vector<8x256xf32> to vector<8x32xf32>
    %698 = vector.extract_strided_slice %688 {offsets = [0, 160], sizes = [8, 32], strides = [1, 1]} : vector<8x256xf32> to vector<8x32xf32>
    %699 = vector.extract_strided_slice %688 {offsets = [0, 192], sizes = [8, 32], strides = [1, 1]} : vector<8x256xf32> to vector<8x32xf32>
    %cst_213 = arith.constant 2.000000e+00 : f32
    %700 = vector.broadcast %cst_213 : f32 to vector<8x32xf32>
    %701 = arith.mulf %700, %699 : vector<8x32xf32>
    %cst_214 = arith.constant 1.000000e+00 : f32
    %702 = vector.broadcast %cst_214 : f32 to vector<8x32xf32>
    %703 = arith.subf %701, %702 : vector<8x32xf32>
    %704 = vector.extract_strided_slice %688 {offsets = [0, 224], sizes = [8, 32], strides = [1, 1]} : vector<8x256xf32> to vector<8x32xf32>
    %705 = arith.mulf %690, %657 : vector<8x32xf32>
    %706 = arith.mulf %689, %695 : vector<8x32xf32>
    %707 = arith.addf %705, %706 : vector<8x32xf32>
    %708 = arith.mulf %698, %660 : vector<8x32xf32>
    %709 = arith.mulf %697, %703 : vector<8x32xf32>
    %710 = arith.addf %708, %709 : vector<8x32xf32>
    %711 = tpu.concatenate %707, %710 in 1 : vector<8x32xf32>, vector<8x32xf32> -> vector<8x64xf32>
    %712 = math.tanh %711 : vector<8x64xf32>
    %713 = vector.extract_strided_slice %712 {offsets = [0, 0], sizes = [8, 32], strides = [1, 1]} : vector<8x64xf32> to vector<8x32xf32>
    %714 = arith.mulf %696, %713 : vector<8x32xf32>
    %715 = vector.extract_strided_slice %712 {offsets = [0, 32], sizes = [8, 32], strides = [1, 1]} : vector<8x64xf32> to vector<8x32xf32>
    %716 = arith.mulf %704, %715 : vector<8x32xf32>
    %717 = arith.index_cast %673 : i32 to index
    %c0_215 = arith.constant 0 : index
    %718 = vector.load %arg12[%717, %c0_215] : memref<64x64xf32, #tpu.memory_space<vmem>>, vector<8x32xf32>
    tpu.vector_store %arg12[%717, %c0_215], %714 {strides = array<i32>} : memref<64x64xf32, #tpu.memory_space<vmem>>, vector<8x32xf32>,
    %719 = arith.index_cast %676 : i32 to index
    %c32_216 = arith.constant 32 : index
    %720 = vector.load %arg12[%719, %c32_216] : memref<64x64xf32, #tpu.memory_space<vmem>>, vector<8x32xf32>
    tpu.vector_store %arg12[%719, %c32_216], %716 {strides = array<i32>} : memref<64x64xf32, #tpu.memory_space<vmem>>, vector<8x32xf32>,
    %721 = tpu.concatenate %714, %716 in 1 : vector<8x32xf32>, vector<8x32xf32> -> vector<8x64xf32>
    %c6_i32_217 = arith.constant 6 : i32
    %c8_i32_218 = arith.constant 8 : i32
    %722 = arith.muli %c6_i32_217, %c8_i32_218 : i32
    %723 = tpu.assume_multiple %722, 8 : i32
    %c7_i32_219 = arith.constant 7 : i32
    %724 = arith.subi %c7_i32_219, %c6_i32_217 : i32
    %c8_i32_220 = arith.constant 8 : i32
    %725 = arith.muli %724, %c8_i32_220 : i32
    %726 = tpu.assume_multiple %725, 8 : i32
    %727 = arith.index_cast %723 : i32 to index
    %c0_221 = arith.constant 0 : index
    %728 = vector.load %arg13[%727, %c0_221] : memref<64x256xf32, #tpu.memory_space<vmem>>, vector<8x128xf32>
    %729 = arith.index_cast %726 : i32 to index
    %c128_222 = arith.constant 128 : index
    %730 = vector.load %arg13[%729, %c128_222] : memref<64x256xf32, #tpu.memory_space<vmem>>, vector<8x128xf32>
    %731 = tpu.concatenate %728, %730 in 1 : vector<8x128xf32>, vector<8x128xf32> -> vector<8x256xf32>
    %cst_223 = arith.constant dense<0.000000e+00> : vector<8x256xf32>
    %732 = tpu.matmul %721, %419, %cst_223 {dimension_numbers = #tpu.dot_dimension_numbers<[1], [0], [0], [1], [0, 0, 1, 1], [], []>} : vector<8x64xf32>, vector<64x256xf32>, vector<8x256xf32> -> vector<8x256xf32>
    %733 = arith.addf %731, %732 : vector<8x256xf32>
    %734 = arith.negf %733 : vector<8x256xf32>
    %735 = math.exp %734 : vector<8x256xf32>
    %cst_224 = arith.constant 1.000000e+00 : f32
    %736 = vector.broadcast %cst_224 : f32 to vector<8x256xf32>
    %737 = arith.addf %736, %735 : vector<8x256xf32>
    %738 = arith.divf %736, %737 : vector<8x256xf32>
    %739 = vector.extract_strided_slice %738 {offsets = [0, 0], sizes = [8, 32], strides = [1, 1]} : vector<8x256xf32> to vector<8x32xf32>
    %740 = vector.extract_strided_slice %738 {offsets = [0, 32], sizes = [8, 32], strides = [1, 1]} : vector<8x256xf32> to vector<8x32xf32>
    %741 = vector.extract_strided_slice %738 {offsets = [0, 64], sizes = [8, 32], strides = [1, 1]} : vector<8x256xf32> to vector<8x32xf32>
    %cst_225 = arith.constant 2.000000e+00 : f32
    %742 = vector.broadcast %cst_225 : f32 to vector<8x32xf32>
    %743 = arith.mulf %742, %741 : vector<8x32xf32>
    %cst_226 = arith.constant 1.000000e+00 : f32
    %744 = vector.broadcast %cst_226 : f32 to vector<8x32xf32>
    %745 = arith.subf %743, %744 : vector<8x32xf32>
    %746 = vector.extract_strided_slice %738 {offsets = [0, 96], sizes = [8, 32], strides = [1, 1]} : vector<8x256xf32> to vector<8x32xf32>
    %747 = vector.extract_strided_slice %738 {offsets = [0, 128], sizes = [8, 32], strides = [1, 1]} : vector<8x256xf32> to vector<8x32xf32>
    %748 = vector.extract_strided_slice %738 {offsets = [0, 160], sizes = [8, 32], strides = [1, 1]} : vector<8x256xf32> to vector<8x32xf32>
    %749 = vector.extract_strided_slice %738 {offsets = [0, 192], sizes = [8, 32], strides = [1, 1]} : vector<8x256xf32> to vector<8x32xf32>
    %cst_227 = arith.constant 2.000000e+00 : f32
    %750 = vector.broadcast %cst_227 : f32 to vector<8x32xf32>
    %751 = arith.mulf %750, %749 : vector<8x32xf32>
    %cst_228 = arith.constant 1.000000e+00 : f32
    %752 = vector.broadcast %cst_228 : f32 to vector<8x32xf32>
    %753 = arith.subf %751, %752 : vector<8x32xf32>
    %754 = vector.extract_strided_slice %738 {offsets = [0, 224], sizes = [8, 32], strides = [1, 1]} : vector<8x256xf32> to vector<8x32xf32>
    %755 = arith.mulf %740, %707 : vector<8x32xf32>
    %756 = arith.mulf %739, %745 : vector<8x32xf32>
    %757 = arith.addf %755, %756 : vector<8x32xf32>
    %758 = arith.mulf %748, %710 : vector<8x32xf32>
    %759 = arith.mulf %747, %753 : vector<8x32xf32>
    %760 = arith.addf %758, %759 : vector<8x32xf32>
    %761 = tpu.concatenate %757, %760 in 1 : vector<8x32xf32>, vector<8x32xf32> -> vector<8x64xf32>
    %762 = math.tanh %761 : vector<8x64xf32>
    %763 = vector.extract_strided_slice %762 {offsets = [0, 0], sizes = [8, 32], strides = [1, 1]} : vector<8x64xf32> to vector<8x32xf32>
    %764 = arith.mulf %746, %763 : vector<8x32xf32>
    %765 = vector.extract_strided_slice %762 {offsets = [0, 32], sizes = [8, 32], strides = [1, 1]} : vector<8x64xf32> to vector<8x32xf32>
    %766 = arith.mulf %754, %765 : vector<8x32xf32>
    %767 = arith.index_cast %723 : i32 to index
    %c0_229 = arith.constant 0 : index
    %768 = vector.load %arg12[%767, %c0_229] : memref<64x64xf32, #tpu.memory_space<vmem>>, vector<8x32xf32>
    tpu.vector_store %arg12[%767, %c0_229], %764 {strides = array<i32>} : memref<64x64xf32, #tpu.memory_space<vmem>>, vector<8x32xf32>,
    %769 = arith.index_cast %726 : i32 to index
    %c32_230 = arith.constant 32 : index
    %770 = vector.load %arg12[%769, %c32_230] : memref<64x64xf32, #tpu.memory_space<vmem>>, vector<8x32xf32>
    tpu.vector_store %arg12[%769, %c32_230], %766 {strides = array<i32>} : memref<64x64xf32, #tpu.memory_space<vmem>>, vector<8x32xf32>,
    %771 = tpu.concatenate %764, %766 in 1 : vector<8x32xf32>, vector<8x32xf32> -> vector<8x64xf32>
    %c7_i32_231 = arith.constant 7 : i32
    %c8_i32_232 = arith.constant 8 : i32
    %772 = arith.muli %c7_i32_231, %c8_i32_232 : i32
    %773 = tpu.assume_multiple %772, 8 : i32
    %c7_i32_233 = arith.constant 7 : i32
    %774 = arith.subi %c7_i32_233, %c7_i32_231 : i32
    %c8_i32_234 = arith.constant 8 : i32
    %775 = arith.muli %774, %c8_i32_234 : i32
    %776 = tpu.assume_multiple %775, 8 : i32
    %777 = arith.index_cast %773 : i32 to index
    %c0_235 = arith.constant 0 : index
    %778 = vector.load %arg13[%777, %c0_235] : memref<64x256xf32, #tpu.memory_space<vmem>>, vector<8x128xf32>
    %779 = arith.index_cast %776 : i32 to index
    %c128_236 = arith.constant 128 : index
    %780 = vector.load %arg13[%779, %c128_236] : memref<64x256xf32, #tpu.memory_space<vmem>>, vector<8x128xf32>
    %781 = tpu.concatenate %778, %780 in 1 : vector<8x128xf32>, vector<8x128xf32> -> vector<8x256xf32>
    %cst_237 = arith.constant dense<0.000000e+00> : vector<8x256xf32>
    %782 = tpu.matmul %771, %419, %cst_237 {dimension_numbers = #tpu.dot_dimension_numbers<[1], [0], [0], [1], [0, 0, 1, 1], [], []>} : vector<8x64xf32>, vector<64x256xf32>, vector<8x256xf32> -> vector<8x256xf32>
    %783 = arith.addf %781, %782 : vector<8x256xf32>
    %784 = arith.negf %783 : vector<8x256xf32>
    %785 = math.exp %784 : vector<8x256xf32>
    %cst_238 = arith.constant 1.000000e+00 : f32
    %786 = vector.broadcast %cst_238 : f32 to vector<8x256xf32>
    %787 = arith.addf %786, %785 : vector<8x256xf32>
    %788 = arith.divf %786, %787 : vector<8x256xf32>
    %789 = vector.extract_strided_slice %788 {offsets = [0, 0], sizes = [8, 32], strides = [1, 1]} : vector<8x256xf32> to vector<8x32xf32>
    %790 = vector.extract_strided_slice %788 {offsets = [0, 32], sizes = [8, 32], strides = [1, 1]} : vector<8x256xf32> to vector<8x32xf32>
    %791 = vector.extract_strided_slice %788 {offsets = [0, 64], sizes = [8, 32], strides = [1, 1]} : vector<8x256xf32> to vector<8x32xf32>
    %cst_239 = arith.constant 2.000000e+00 : f32
    %792 = vector.broadcast %cst_239 : f32 to vector<8x32xf32>
    %793 = arith.mulf %792, %791 : vector<8x32xf32>
    %cst_240 = arith.constant 1.000000e+00 : f32
    %794 = vector.broadcast %cst_240 : f32 to vector<8x32xf32>
    %795 = arith.subf %793, %794 : vector<8x32xf32>
    %796 = vector.extract_strided_slice %788 {offsets = [0, 96], sizes = [8, 32], strides = [1, 1]} : vector<8x256xf32> to vector<8x32xf32>
    %797 = vector.extract_strided_slice %788 {offsets = [0, 128], sizes = [8, 32], strides = [1, 1]} : vector<8x256xf32> to vector<8x32xf32>
    %798 = vector.extract_strided_slice %788 {offsets = [0, 160], sizes = [8, 32], strides = [1, 1]} : vector<8x256xf32> to vector<8x32xf32>
    %799 = vector.extract_strided_slice %788 {offsets = [0, 192], sizes = [8, 32], strides = [1, 1]} : vector<8x256xf32> to vector<8x32xf32>
    %cst_241 = arith.constant 2.000000e+00 : f32
    %800 = vector.broadcast %cst_241 : f32 to vector<8x32xf32>
    %801 = arith.mulf %800, %799 : vector<8x32xf32>
    %cst_242 = arith.constant 1.000000e+00 : f32
    %802 = vector.broadcast %cst_242 : f32 to vector<8x32xf32>
    %803 = arith.subf %801, %802 : vector<8x32xf32>
    %804 = vector.extract_strided_slice %788 {offsets = [0, 224], sizes = [8, 32], strides = [1, 1]} : vector<8x256xf32> to vector<8x32xf32>
    %805 = arith.mulf %790, %757 : vector<8x32xf32>
    %806 = arith.mulf %789, %795 : vector<8x32xf32>
    %807 = arith.addf %805, %806 : vector<8x32xf32>
    %808 = arith.mulf %798, %760 : vector<8x32xf32>
    %809 = arith.mulf %797, %803 : vector<8x32xf32>
    %810 = arith.addf %808, %809 : vector<8x32xf32>
    %811 = tpu.concatenate %807, %810 in 1 : vector<8x32xf32>, vector<8x32xf32> -> vector<8x64xf32>
    %812 = math.tanh %811 : vector<8x64xf32>
    %813 = vector.extract_strided_slice %812 {offsets = [0, 0], sizes = [8, 32], strides = [1, 1]} : vector<8x64xf32> to vector<8x32xf32>
    %814 = arith.mulf %796, %813 : vector<8x32xf32>
    %815 = vector.extract_strided_slice %812 {offsets = [0, 32], sizes = [8, 32], strides = [1, 1]} : vector<8x64xf32> to vector<8x32xf32>
    %816 = arith.mulf %804, %815 : vector<8x32xf32>
    %817 = arith.index_cast %773 : i32 to index
    %c0_243 = arith.constant 0 : index
    %818 = vector.load %arg12[%817, %c0_243] : memref<64x64xf32, #tpu.memory_space<vmem>>, vector<8x32xf32>
    tpu.vector_store %arg12[%817, %c0_243], %814 {strides = array<i32>} : memref<64x64xf32, #tpu.memory_space<vmem>>, vector<8x32xf32>,
    %819 = arith.index_cast %776 : i32 to index
    %c32_244 = arith.constant 32 : index
    %820 = vector.load %arg12[%819, %c32_244] : memref<64x64xf32, #tpu.memory_space<vmem>>, vector<8x32xf32>
    tpu.vector_store %arg12[%819, %c32_244], %816 {strides = array<i32>} : memref<64x64xf32, #tpu.memory_space<vmem>>, vector<8x32xf32>,
    %821 = tpu.concatenate %814, %816 in 1 : vector<8x32xf32>, vector<8x32xf32> -> vector<8x64xf32>
    %c8_i32_245 = arith.constant 8 : i32
    %c0_246 = arith.constant 0 : index
    %c0_247 = arith.constant 0 : index
    %822 = vector.load %arg12[%c0_246, %c0_247] : memref<64x64xf32, #tpu.memory_space<vmem>>, vector<64x64xf32>
    %c0_248 = arith.constant 0 : index
    %c0_249 = arith.constant 0 : index
    %823 = vector.load %arg8[%c0_248, %c0_249] : memref<64x128xf32, #tpu.memory_space<vmem>>, vector<64x128xf32>
    %cst_250 = arith.constant dense<0.000000e+00> : vector<64x128xf32>
    %824 = tpu.matmul %822, %823, %cst_250 {dimension_numbers = #tpu.dot_dimension_numbers<[1], [0], [0], [1], [0, 0, 1, 1], [], []>} : vector<64x64xf32>, vector<64x128xf32>, vector<64x128xf32> -> vector<64x128xf32>
    %c0_251 = arith.constant 0 : index
    %c0_252 = arith.constant 0 : index
    %825 = vector.load %arg9[%c0_251, %c0_252] : memref<1x128xf32, #tpu.memory_space<vmem>>, vector<1x128xf32>
    %826 = vector.broadcast %825 : vector<1x128xf32> to vector<64x128xf32>
    %827 = arith.addf %824, %826 : vector<64x128xf32>
    %c0_253 = arith.constant 0 : index
    %c0_254 = arith.constant 0 : index
    %828 = vector.load %arg10[%c0_253, %c0_254] : memref<64x128xf32, #tpu.memory_space<vmem>>, vector<64x128xf32>
    tpu.vector_store %arg10[%c0_253, %c0_254], %827 {strides = array<i32>} : memref<64x128xf32, #tpu.memory_space<vmem>>, vector<64x128xf32>,
    return
  }
}

</mosaic_0001>

<bundles_post_ra>
// kernel: bilstm_tagger_forward.1
= control target key start
LH: loop header
LB: loop body
LE: loop exit
PB: predicated region body
PF: predicated region fallthrough
CT: control target
= control target key end

     0   :  { %15 = vsyncpa [#allocation7], 0  ;;  %s4543_s0 = inlined_call_operand.vmem [shape: s32[64], index: 0, kind: input, shape index: {}]   ;;  %s4544_s1 = inlined_call_operand.vmem [shape: f32[64,32], index: 1, kind: input, shape index: {}]   ;;  %s4545_s2 = inlined_call_operand.vmem [shape: f32[32,256], index: 2, kind: input, shape index: {}]   ;;  %s4546_s3 = inlined_call_operand.vmem [shape: f32[1,256], index: 3, kind: input, shape index: {}]   ;;  %s4547_s4 = inlined_call_operand.vmem [shape: f32[64,256], index: 4, kind: input, shape index: {}]   ;;  %s4548_s5 = inlined_call_operand.vmem [shape: f32[64,256], index: 5, kind: input, shape index: {}]   ;;  %s4549_s6 = inlined_call_operand.vmem [shape: f32[1,256], index: 6, kind: input, shape index: {}]   ;;  %s4550_s7 = inlined_call_operand.vmem [shape: f32[64,256], index: 7, kind: input, shape index: {}]   ;;  %s4551_s8 = inlined_call_operand.vmem [shape: f32[64,128], index: 8, kind: input, shape index: {}]   ;;  %s4552_s9 = inlined_call_operand.vmem [shape: f32[1,128], index: 9, kind: input, shape index: {}]   ;;  %s4553_s10 = inlined_call_operand.vmem [shape: f32[64,128], index: 10, kind: output, shape index: {}]  }
   0x1   :  { %s22_s15 = sshll.u32 %s4543_s0, 4  ;;  %s23_s15 = int_to_ptr.vmem [resolvable:$true] %s22_s15 }
   0x2   :  { %s3643_s16 = scalar_lea.vmem %s23_s15, 16  ;;  %p3648_p1 = scmp.lt.s32.totalorder %s23_s15, %s23_s15 }
   0x3   :  { %p3644_p0 = scmp.ne.s32.totalorder %s23_s15, %s3643_s16  ;;  %p3649_p2 = scmp.lt.s32.totalorder %s3643_s16, %s3643_s16 }
   0x5   :  { %p3650_p3 = por %p3649_p2, %p3648_p1 }
   0x7   :  { %p3651_p4 = pnand %p3650_p3, %p3644_p0 }
   0x9   :  { %3654 = shalt.err (!%p3651_p4)
}
   0xa   :  { %s3675_s17 = smov [#allocation6]  }
   0xb   :  { %25 = dma.vmem_to_smem %s23_s15, 16, %s3675_s17, [#allocation7]  }
   0xc   :  { %3663 = dma.done.wait [#allocation7], 16  }
   0xd   :  { %3664 = vsyncadd [#allocation7], 4294967280 }
   0xe   :  { %45 = sfence }
   0xf   :  { %s3667_s18 = smov 0  }
  0x10 LB: > { %s52_s19 = sld [smem:[#allocation6 + %s3669_s18]]  ;;  %s56_s22 = scalar_lea.vmem [#allocation2], %s3669_s18  ;;  %s3669_s18 = sphi %s3667_s18, %s51_s18  }
  0x16   : > { %p53_p5 = scmp.lt.s32.totalorder %s52_s19, 63 }
  0x18   : > { %s4555_s19 = smov (!%p53_p5, %s52_s19), 63 }
  0x19   : > { %s55_s21 = scalar_lea.vmem %s4544_s1, %s4555_s19 }
  0x1a   : > { %v74_v0 = vld [vmem:[%s55_s21] sm:$0x1] }
  0x1b   : > { %75 = vst [vmem:[%s56_s22] sm:$0x1] %v74_v0 }
  0x1c   : > { %100 = vsyncadd [#allocation5], 16  ;;  %s51_s18 = sadd.s32 1, %s3669_s18  }
  0x1d   : > { %p48_p6 = scmp.ge.s32.totalorder %s51_s18, 64  }
  0x1e   :  { %s3671_s23 = smov (%p48_p6), 0  }
  0x1f   :  { %50 = sbr.rel (!%p48_p6) target bundleno = 16 (0x10), region = 131 }
  0x26 LB: > { %3665 = dma.done.wait [#allocation5], 16  ;;  %s3673_s23 = sphi %s3671_s23, %s106_s23  }
  0x27   : > { %3666 = vsyncadd [#allocation5], 4294967280  ;;  %s106_s23 = sadd.s32 1, %s3673_s23  }
  0x28   : > { %p103_p7 = scmp.ge.s32.totalorder %s106_s23, 64  }
  0x29   :  { %v120_v1 = vld [vmem:[%s4545_s2 + $0x8] sm:$0xff] (%p103_p7)  ;;  %v122_v2 = vld [vmem:[%s4545_s2 + $0x18] sm:$0xff] (%p103_p7)  ;;  %v119_v3 = vld [vmem:[%s4545_s2] sm:$0xff] (%p103_p7)  ;;  %v3676_v8 = vmov (%p103_p7), 0.0   ;;  %vm139_vm0 = vcmask (%p103_p7), 261120   ;;  %v129_v43 = vlaneseq (%p103_p7)  ;;  %s3678_s27 = smov (%p103_p7), 32  }
  0x2a   :  { %105 = sbr.rel (!%p103_p7) target bundleno = 38 (0x26), region = 142  ;;  %v3162_v4 = vpack.c.bf16 (%p103_p7), %v122_v2, %v120_v1  ;;  %v121_v5 = vld [vmem:[%s4545_s2 + $0x10] sm:$0xff] (%p103_p7)  ;;  %v124_v6 = vld [vmem:[%s4545_s2 + $0x28] sm:$0xff] (%p103_p7)  ;;  %v126_v7 = vld [vmem:[%s4545_s2 + $0x38] sm:$0xff] (%p103_p7)  ;;  %252 = vmatprep.mubr.f32.mxu1 (%p103_p7), %v3676_v8  ;;  %228 = vmatprep.mubr.f32.mxu0 (%p103_p7), %v3676_v8  ;;  %s3679_s28 = smov (%p103_p7), 96   ;;  %vm457_vm1 = vcmask (%p103_p7), 523520  }
  0x2b   :  { %v3164_v9 = vpack.c.bf16 (%p103_p7), %v121_v5, %v119_v3  ;;  %v3166_v10 = vpack.c.bf16 (%p103_p7), %v126_v7, %v124_v6  ;;  %v123_v11 = vld [vmem:[%s4545_s2 + $0x20] sm:$0xff] (%p103_p7)  ;;  %v125_v12 = vld [vmem:[%s4545_s2 + $0x30] sm:$0xff] (%p103_p7)  ;;  %v294_v13 = vld [vmem:[%s4547_s4 + $0x8] sm:$0xff] (%p103_p7)  ;;  %v3875_v48 = vshrl.u32 (%p103_p7), %v129_v43, 7  ;;  %vm317_vm2 = vcmask (%p103_p7), 523264  }
  0x2c   :  { %3458 = vmatprep.subr.bf16.mxu1 (%p103_p7), %v3162_v4  ;;  %v296_v14 = vld [vmem:[%s4547_s4 + $0x18] sm:$0xff] (%p103_p7)  ;;  %3163 = vmatprep.subr.bf16.mxu0 (%p103_p7), %v3162_v4  ;;  %v3168_v15 = vpack.c.bf16 (%p103_p7), %v125_v12, %v123_v11  ;;  %v293_v17 = vld [vmem:[%s4547_s4] sm:$0xff] (%p103_p7)  ;;  %v295_v18 = vld [vmem:[%s4547_s4 + $0x10] sm:$0xff] (%p103_p7) }
  0x2d   :  { %3460 = vmatpush1.bf16.msra.mxu1 (%p103_p7), %v3164_v9  ;;  %3165 = vmatpush1.bf16.msra.mxu0 (%p103_p7), %v3164_v9  ;;  %v3773_v16 = vpack.c.bf16 (%p103_p7), %v296_v14, %v294_v13  ;;  %v298_v19 = vld [vmem:[%s4547_s4 + $0x28] sm:$0xff] (%p103_p7)  ;;  %v300_v20 = vld [vmem:[%s4547_s4 + $0x38] sm:$0xff] (%p103_p7)  ;;  %v115_v21 = vld [vmem:[#allocation2 + $0x20] sm:$0xff] (%p103_p7)  ;;  %v3787_v22 = vpack.c.bf16 (%p103_p7), %v295_v18, %v293_v17  ;;  %v131_v51 = vsub.s32 (%p103_p7), 0, %v3875_v48  ;;  %v135_v55 = vsub.s32 (%p103_p7), 1, %v3875_v48 }
  0x2e   :  { %3459 = vmatprep.subr.bf16.mxu1 (%p103_p7), %v3166_v10  ;;  %3167 = vmatprep.subr.bf16.mxu0 (%p103_p7), %v3166_v10  ;;  %v3790_v23 = vpack.c.bf16 (%p103_p7), %v300_v20, %v298_v19  ;;  %v297_v24 = vld [vmem:[%s4547_s4 + $0x20] sm:$0xff] (%p103_p7)  ;;  %v299_v25 = vld [vmem:[%s4547_s4 + $0x30] sm:$0xff] (%p103_p7)  ;;  %v302_v27 = vld [vmem:[%s4547_s4 + $0x48] sm:$0xff] (%p103_p7) }
  0x2f   :  { %v111_v26 = vld [vmem:[#allocation2] sm:$0xff] (%p103_p7)  ;;  %v304_v28 = vld [vmem:[%s4547_s4 + $0x58] sm:$0xff] (%p103_p7)  ;;  %v116_v29 = vld [vmem:[#allocation2 + $0x28] sm:$0xff] (%p103_p7)  ;;  %v3809_v30 = vpack.c.bf16 (%p103_p7), %v299_v25, %v297_v24 }
  0x30   :  { %v3812_v31 = vpack.c.bf16 (%p103_p7), %v304_v28, %v302_v27  ;;  %v301_v32 = vld [vmem:[%s4547_s4 + $0x40] sm:$0xff] (%p103_p7)  ;;  %v303_v33 = vld [vmem:[%s4547_s4 + $0x50] sm:$0xff] (%p103_p7)  ;;  %v306_v34 = vld [vmem:[%s4547_s4 + $0x68] sm:$0xff] (%p103_p7) }
  0x31   :  { %3461 = vmatpush1.bf16.msra.mxu1 %v3168_v15  ;;  %3169 = vmatpush1.bf16.msra.mxu0 %v3168_v15  ;;  %v308_v35 = vld [vmem:[%s4547_s4 + $0x78] sm:$0xff]  ;;  %v117_v36 = vld [vmem:[#allocation2 + $0x30] sm:$0xff]  ;;  %v3832_v37 = vpack.c.bf16 %v303_v33, %v301_v32  ;;  %v305_v39 = vld [vmem:[%s4547_s4 + $0x60] sm:$0xff] }
  0x32   :  { %3171 = vmatprep.subr.bf16.mxu1 %v3773_v16  ;;  %3203 = vmatprep.subr.bf16.mxu0 %v3773_v16  ;;  %v3835_v38 = vpack.c.bf16 %v308_v35, %v306_v34  ;;  %v307_v40 = vld [vmem:[%s4547_s4 + $0x70] sm:$0xff]  ;;  %v118_v41 = vld [vmem:[#allocation2 + $0x38] sm:$0xff]  ;;  %v127_v52 = vld [vmem:[%s4546_s3] sm:$0x3]  ;;  %s3677_s3 = smov 64  }
  0x33   :  { %v3848_v42 = vpack.c.bf16 %v307_v40, %v305_v39  ;;  %v3892_v56 = vrot.slane %v127_v52, %v131_v51  ;;  %v3899_v60 = vrot.slane %v127_v52, %v135_v55  ;;  %v112_v32 = vld [vmem:[#allocation2 + $0x8] sm:$0xff] }
  0x34   :  { %3018 = vmatmul.mubr.msk.f32.vlgmr.msra.gmra.mrb[0].mxu1 %vm139_vm0, %v115_v21  ;;  %3014 = vmatmul.mubr.msk.f32.vlgmr.msra.gmra.mrb[0].mxu0 %vm139_vm0, %v111_v26 }
  0x35   :  { %3173 = vmatpush1.bf16.msra.mxu1 %v3787_v22  ;;  %258 = vmatprep.mubr.f32.mxu1 %v3676_v8 }
  0x36   :  { %3175 = vmatprep.subr.bf16.mxu1 %v3790_v23  ;;  %234 = vmatprep.mubr.f32.mxu0 %v3676_v8 }
  0x37   :  { %3205 = vmatpush1.bf16.msra.mxu0 %v3787_v22 }
  0x38   :  { %3019 = vmatmul.mubr.msk.f32.gmra.mrb[2].mxu1 %vm139_vm0, %v116_v29  ;;  %3207 = vmatprep.subr.bf16.mxu0 %v3790_v23 }
  0x39   :  { %3177 = vmatpush1.bf16.msra.mxu1 %v3809_v30  ;;  %264 = vmatprep.mubr.f32.mxu1 %v3676_v8 }
  0x3a   :  { %3179 = vmatprep.subr.bf16.mxu1 %v3812_v31  ;;  %3015 = vmatmul.mubr.msk.f32.gmra.mrb[2].mxu0 %vm139_vm0, %v112_v32  ;;  %v113_v32 = vld [vmem:[#allocation2 + $0x10] sm:$0xff] }
  0x3b   :  { %3209 = vmatpush1.bf16.msra.mxu0 %v3809_v30  ;;  %240 = vmatprep.mubr.f32.mxu0 %v3676_v8 }
  0x3c   :  { %3020 = vmatmul.mubr.msk.f32.gmra.mrb[4].mxu1 %vm139_vm0, %v117_v36  ;;  %3211 = vmatprep.subr.bf16.mxu0 %v3812_v31 }
  0x3d   :  { %3181 = vmatpush1.bf16.msra.mxu1 %v3832_v37  ;;  %270 = vmatprep.mubr.f32.mxu1 %v3676_v8 }
  0x3e   :  { %3183 = vmatprep.subr.bf16.mxu1 %v3835_v38  ;;  %3016 = vmatmul.mubr.msk.f32.gmra.mrb[4].mxu0 %vm139_vm0, %v113_v32 }
  0x3f   :  { %3213 = vmatpush1.bf16.msra.mxu0 %v3832_v37  ;;  %246 = vmatprep.mubr.f32.mxu0 %v3676_v8 }
  0x40   :  { %3021 = vmatmul.mubr.msk.f32.gmra.mrb[6].mxu1 %vm139_vm0, %v118_v41  ;;  %3215 = vmatprep.subr.bf16.mxu0 %v3835_v38 }
  0x41   :  { %3185 = vmatpush1.bf16.msra.mxu1 %v3848_v42  ;;  %385 = vmatprep.mubr.f32.mxu1 %v3676_v8 }
  0x42   :  { %3187 = vmatprep.subr.bf16.mxu1 %v3773_v16 }
  0x43   :  { %3217 = vmatpush1.bf16.msra.mxu0 %v3848_v42 }
  0x44   :  { %386 = vmatmul.mubr.f32.vlgmr.msra.gmra.mrb[8].mxu1 %v3676_v8  ;;  %3235 = vmatprep.subr.bf16.mxu0 %v3773_v16 }
  0x45   :  { %3189 = vmatpush1.bf16.msra.mxu1 %v3787_v22  ;;  %535 = vmatprep.mubr.f32.mxu1 %v3676_v8 }
  0x46   :  { %3191 = vmatprep.subr.bf16.mxu1 %v3790_v23 }
  0x49   :  { %3193 = vmatpush1.bf16.msra.mxu1 %v3809_v30 }
  0x4a   :  { %3195 = vmatprep.subr.bf16.mxu1 %v3812_v31 }
  0x4d   :  { %3197 = vmatpush1.bf16.msra.mxu1 %v3832_v37 }
  0x4e   :  { %3199 = vmatprep.subr.bf16.mxu1 %v3835_v38 }
  0x51   :  { %3201 = vmatpush1.bf16.msra.mxu1 %v3848_v42 }
  0x52   :  { %3219 = vmatprep.subr.bf16.mxu1 %v3773_v16 }
 0x107   :  { %v3869_v44 = vpop.f32.mrb[0].mxu1  ;;  %v230_v45 = vpop.f32.mrb[0].mxu0 }
 0x108   :  { %v3871_v46 = vpop.f32.mrb[1].mxu1  ;;  %v3873_v47 = vpop.f32.mrb[1].mxu0  ;;  %v231_v59 = vadd.f32 %v230_v45, %v3892_v56 }
 0x10b   :  { %v3877_v49 = vpop.f32.mrb[2].mxu1 }
 0x10c   :  { %v3879_v50 = vpop.f32.mrb[3].mxu1 }
 0x10d   :  { %v236_v40 = vpop.f32.mrb[2].mxu0 }
 0x10e   :  { %v3920_v41 = vpop.f32.mrb[3].mxu0 }
 0x10f   :  { %v3885_v53 = vpop.f32.mrb[4].mxu1 }
 0x110   :  { %v3887_v54 = vpop.f32.mrb[5].mxu1 }
 0x113   :  { %v3894_v57 = vpop.f32.mrb[6].mxu1 }
 0x114   :  { %v274_v58 = vpop.f32.mrb[7].mxu1 }
 0x115   :  { %v275_v61 = vadd.f32 %v274_v58, %v3899_v60  ;;  %v237_v58 = vadd.f32 %v236_v40, %v3892_v56 }
 0x117   :  { %v387_v62 = vpop.f32.mrb[8].mxu1 }
 0x118   :  { %v392_v63 = vadd.f32 %v387_v62, %v231_v59  ;;  %v389_v0 = vpop.f32.mrb[9].mxu1  ;;  %v269_v59 = vadd.f32 %v3887_v54, %v3899_v60 }
 0x119   :  { %v393_v1 = vadd.f32 %v389_v0, %v275_v61 }
 0x11a   :  { %v3022_v2 = vmul.f32 -1.442695, %v392_v63 }
 0x11b   :  { %v3023_v3 = vmul.f32 -1.442695, %v393_v1 }
 0x11c   :  { %3483 = vpow2.f32 %v3022_v2 }
 0x11d   :  { %3485 = vpow2.f32 %v3023_v3 }
 0x126   :  { %v3484_v4 = vpop.eup %3483 }
 0x127   :  { %v3486_v5 = vpop.eup %3485  ;;  %v400_v6 = vadd.f32 1.0, %v3484_v4 }
 0x128   :  { %v401_v7 = vadd.f32 1.0, %v3486_v5 }
 0x129   :  { %3487 = vrcp.f32 %v400_v6 }
 0x12a   :  { %3489 = vrcp.f32 %v401_v7 }
 0x133   :  { %v3488_v9 = vpop.eup %3487 }
 0x134   :  { %v3490_v10 = vpop.eup %3489  ;;  %v406_v11 = vmul.f32 2.0, %v3488_v9  ;;  %v410_v20 = vmul.f32 0.0, %v3488_v9 }
 0x135   :  { %v408_v13 = vmul.f32 2.0, %v3490_v10  ;;  %v421_v26 = vmul.f32 0.0, %v3490_v10 }
 0x136   :  { %v3024_v12 = vadd.f32 -1.0, %v406_v11 }
 0x137   :  { %v3025_v14 = vadd.f32 -1.0, %v408_v13 }
 0x138   :  { %412 = vrot.lane.b32.xlu0 %v3024_v12, %s3677_s3 }
 0x13c   :  { %423 = vrot.lane.b32.xlu0 %v3025_v14, %s3677_s3 }
 0x1aa   :  { %v413_v15 = vpop.permute.xlu0 %412 }
 0x1ab   :  { %v415_v17 = vmul.f32 %v3488_v9, %v413_v15 }
 0x1ad   :  { %417 = vrot.lane.b32.xlu1 %v415_v17, %s3678_s27 }
 0x1ae   :  { %v424_v18 = vpop.permute.xlu0 %423 }
 0x1af   :  { %v426_v19 = vmul.f32 %v3490_v10, %v424_v18 }
 0x1b1   :  { %428 = vrot.lane.b32.xlu1 %v426_v19, %s3678_s27 }
 0x21f   :  { %v418_v21 = vpop.permute.xlu1 %417 }
 0x220   :  { %v3906_v24 = vadd.f32 %v418_v21, %v410_v20 }
 0x222   :  { %433 = vrot.lane.b32.xlu0 %v3906_v24, %s3679_s28 }
 0x223   :  { %v429_v25 = vpop.permute.xlu1 %428 }
 0x224   :  { %v3910_v27 = vadd.f32 %v429_v25, %v421_v26 }
 0x294   :  { %v434_v28 = vpop.permute.xlu0 %433 }
 0x295   :  { %v436_v29 = vsel %vm139_vm0, %v434_v28, %v3910_v27 }
 0x296   :  { %3491 = vtanh.f32 %v436_v29 }
 0x2a0   :  { %v3492_v33 = vpop.eup %3491 }
 0x2a1   :  { %443 = vrot.lane.b32.xlu0 %v3492_v33, %s3677_s3  ;;  %439 = vrot.lane.b32.xlu1 %v3492_v33, %s3679_s28 }
 0x313   :  { %v444_v34 = vpop.permute.xlu0 %443  ;;  %v440_v35 = vpop.permute.xlu1 %439 }
 0x314   :  { %v446_v36 = vmul.f32 %v3490_v10, %v444_v34  ;;  %v442_v39 = vmul.f32 %v3488_v9, %v440_v35 }
 0x316   :  { %453 = vrot.lane.b32.xlu0 %v446_v36, %s3677_s3  ;;  %448 = vrot.lane.b32.xlu1 %v442_v39, %s3678_s27  ;;  %v242_v39 = vpop.f32.mrb[4].mxu0 }
 0x317   :  { %v3960_v40 = vpop.f32.mrb[5].mxu0 }
 0x388   :  { %v454_v43 = vpop.permute.xlu0 %453  ;;  %v449_v45 = vpop.permute.xlu1 %448 }
 0x389   :  { %458 = vst.msk [vmem:[#allocation3 + $0x38] sm:$0xff] %vm457_vm1, %v454_v43  ;;  %v459_v52 = vsel %vm139_vm0, %v449_v45, %v454_v43 }
 0x38a   :  { %451 = vst.msk [vmem:[#allocation3] sm:$0xff] %vm139_vm0, %v449_v45  ;;  %3026 = vmatmul.mubr.msk.f32.vlgmr.msra.gmra.mrb[10].mxu1 %vm317_vm2, %v459_v52 }
 0x38b   :  { %3221 = vmatpush1.bf16.msra.mxu1 %v3787_v22  ;;  %835 = vmatprep.mubr.f32.mxu1 %v3676_v8 }
 0x38c   :  { %3223 = vmatprep.subr.bf16.mxu1 %v3790_v23 }
 0x38f   :  { %3225 = vmatpush1.bf16.msra.mxu1 %v3809_v30 }
 0x390   :  { %3227 = vmatprep.subr.bf16.mxu1 %v3812_v31 }
 0x393   :  { %3229 = vmatpush1.bf16.msra.mxu1 %v3832_v37 }
 0x394   :  { %3231 = vmatprep.subr.bf16.mxu1 %v3835_v38 }
 0x397   :  { %3233 = vmatpush1.bf16.msra.mxu1 %v3848_v42 }
 0x398   :  { %3251 = vmatprep.subr.bf16.mxu1 %v3773_v16 }
 0x45d   :  { %v537_v61 = vpop.f32.mrb[10].mxu1 }
 0x45e   :  { %v542_v62 = vadd.f32 %v537_v61, %v237_v58  ;;  %v539_v63 = vpop.f32.mrb[11].mxu1  ;;  %v243_v61 = vadd.f32 %v242_v39, %v3892_v56 }
 0x45f   :  { %v543_v0 = vadd.f32 %v539_v63, %v269_v59 }
 0x460   :  { %v3027_v1 = vmul.f32 -1.442695, %v542_v62  ;;  %v263_v62 = vadd.f32 %v3879_v50, %v3899_v60 }
 0x461   :  { %v3028_v2 = vmul.f32 -1.442695, %v543_v0 }
 0x462   :  { %3493 = vpow2.f32 %v3027_v1 }
 0x463   :  { %3495 = vpow2.f32 %v3028_v2 }
 0x46c   :  { %v3494_v3 = vpop.eup %3493 }
 0x46d   :  { %v3496_v4 = vpop.eup %3495  ;;  %v550_v5 = vadd.f32 1.0, %v3494_v3 }
 0x46e   :  { %v551_v6 = vadd.f32 1.0, %v3496_v4 }
 0x46f   :  { %3497 = vrcp.f32 %v550_v5 }
 0x470   :  { %3499 = vrcp.f32 %v551_v6 }
 0x479   :  { %v3498_v7 = vpop.eup %3497 }
 0x47a   :  { %v3500_v9 = vpop.eup %3499  ;;  %v556_v10 = vmul.f32 2.0, %v3498_v7  ;;  %v560_v18 = vmul.f32 %v3498_v7, %v3906_v24  ;;  %v114_v24 = vld [vmem:[#allocation2 + $0x18] sm:$0xff] }
 0x47b   :  { %v558_v11 = vmul.f32 2.0, %v3500_v9  ;;  %v571_v25 = vmul.f32 %v3500_v9, %v3910_v27  ;;  %3017 = vmatmul.mubr.msk.f32.gmra.mrb[6].mxu0 %vm139_vm0, %v114_v24 }
 0x47c   :  { %v3029_v12 = vadd.f32 -1.0, %v556_v10  ;;  %685 = vmatprep.mubr.f32.mxu0 %v3676_v8 }
 0x47d   :  { %v3030_v54 = vadd.f32 -1.0, %v558_v11 }
 0x47e   :  { %562 = vrot.lane.b32.xlu1 %v3029_v12, %s3677_s3 }
 0x47f   :  { %573 = vrot.lane.b32.xlu0 %v3030_v54, %s3677_s3 }
 0x4f0   :  { %v563_v13 = vpop.permute.xlu1 %562 }
 0x4f1   :  { %v565_v14 = vmul.f32 %v3498_v7, %v563_v13  ;;  %v574_v15 = vpop.permute.xlu0 %573 }
 0x4f2   :  { %v576_v17 = vmul.f32 %v3500_v9, %v574_v15 }
 0x4f3   :  { %567 = vrot.lane.b32.xlu1 %v565_v14, %s3678_s27 }
 0x4f4   :  { %578 = vrot.lane.b32.xlu0 %v576_v17, %s3678_s27 }
 0x54e   :  { %v3962_v43 = vpop.f32.mrb[6].mxu0 }
 0x54f   :  { %v3964_v45 = vpop.f32.mrb[7].mxu0 }
 0x565   :  { %v568_v19 = vpop.permute.xlu1 %567 }
 0x566   :  { %v3943_v20 = vadd.f32 %v568_v19, %v560_v18  ;;  %v579_v21 = vpop.permute.xlu0 %578 }
 0x567   :  { %v3948_v26 = vadd.f32 %v579_v21, %v571_v25 }
 0x568   :  { %583 = vrot.lane.b32.xlu1 %v3943_v20, %s3679_s28 }
 0x5da   :  { %v584_v28 = vpop.permute.xlu1 %583 }
 0x5db   :  { %v586_v29 = vsel %vm139_vm0, %v584_v28, %v3948_v26 }
 0x5dc   :  { %3501 = vtanh.f32 %v586_v29 }
 0x5e6   :  { %v3502_v33 = vpop.eup %3501 }
 0x5e7   :  { %593 = vrot.lane.b32.xlu1 %v3502_v33, %s3677_s3  ;;  %589 = vrot.lane.b32.xlu0 %v3502_v33, %s3679_s28 }
 0x659   :  { %v594_v27 = vpop.permute.xlu1 %593  ;;  %v590_v34 = vpop.permute.xlu0 %589 }
 0x65a   :  { %v596_v35 = vmul.f32 %v3500_v9, %v594_v27  ;;  %v592_v36 = vmul.f32 %v3498_v7, %v590_v34 }
 0x65c   :  { %604 = vrot.lane.b32.xlu1 %v596_v35, %s3677_s3  ;;  %598 = vrot.lane.b32.xlu0 %v592_v36, %s3678_s27 }
 0x6ce   :  { %v605_v52 = vpop.permute.xlu1 %604  ;;  %v599_v58 = vpop.permute.xlu0 %598 }
 0x6cf   :  { %608 = vst.msk [vmem:[#allocation3 + $0x30] sm:$0xff] %vm457_vm1, %v605_v52  ;;  %v609_v59 = vsel %vm139_vm0, %v599_v58, %v605_v52 }
 0x6d0   :  { %602 = vst.msk [vmem:[#allocation3 + $0x8] sm:$0xff] %vm139_vm0, %v599_v58  ;;  %3031 = vmatmul.mubr.msk.f32.vlgmr.msra.gmra.mrb[8].mxu0 %vm317_vm2, %v609_v59  ;;  %v249_v58 = vadd.f32 %v3962_v43, %v3892_v56  ;;  %v257_v59 = vadd.f32 %v3871_v46, %v3899_v60 }
 0x6d1   :  { %3237 = vmatpush1.bf16.msra.mxu0 %v3787_v22  ;;  %979 = vmatprep.mubr.f32.mxu0 %v3676_v8 }
 0x6d2   :  { %3239 = vmatprep.subr.bf16.mxu0 %v3790_v23 }
 0x6d5   :  { %3241 = vmatpush1.bf16.msra.mxu0 %v3809_v30 }
 0x6d6   :  { %3243 = vmatprep.subr.bf16.mxu0 %v3812_v31 }
 0x6d9   :  { %3245 = vmatpush1.bf16.msra.mxu0 %v3832_v37 }
 0x6da   :  { %3247 = vmatprep.subr.bf16.mxu0 %v3835_v38 }
 0x6dd   :  { %3249 = vmatpush1.bf16.msra.mxu0 %v3848_v42 }
 0x6de   :  { %3267 = vmatprep.subr.bf16.mxu0 %v3773_v16 }
 0x7a3   :  { %v687_v63 = vpop.f32.mrb[8].mxu0 }
 0x7a4   :  { %v692_v0 = vadd.f32 %v687_v63, %v243_v61  ;;  %v689_v1 = vpop.f32.mrb[9].mxu0 }
 0x7a5   :  { %v693_v2 = vadd.f32 %v689_v1, %v263_v62 }
 0x7a6   :  { %v3032_v3 = vmul.f32 -1.442695, %v692_v0 }
 0x7a7   :  { %v3033_v4 = vmul.f32 -1.442695, %v693_v2 }
 0x7a8   :  { %3503 = vpow2.f32 %v3032_v3 }
 0x7a9   :  { %3505 = vpow2.f32 %v3033_v4 }
 0x7b2   :  { %v3504_v5 = vpop.eup %3503 }
 0x7b3   :  { %v3506_v6 = vpop.eup %3505  ;;  %v700_v7 = vadd.f32 1.0, %v3504_v5 }
 0x7b4   :  { %v701_v9 = vadd.f32 1.0, %v3506_v6 }
 0x7b5   :  { %3507 = vrcp.f32 %v700_v7 }
 0x7b6   :  { %3509 = vrcp.f32 %v701_v9 }
 0x7bf   :  { %v3508_v10 = vpop.eup %3507 }
 0x7c0   :  { %v3510_v11 = vpop.eup %3509  ;;  %v706_v12 = vmul.f32 2.0, %v3508_v10  ;;  %v710_v19 = vmul.f32 %v3508_v10, %v3943_v20 }
 0x7c1   :  { %v708_v54 = vmul.f32 2.0, %v3510_v11  ;;  %v721_v29 = vmul.f32 %v3510_v11, %v3948_v26 }
 0x7c2   :  { %v3034_v13 = vadd.f32 -1.0, %v706_v12 }
 0x7c3   :  { %v3035_v50 = vadd.f32 -1.0, %v708_v54 }
 0x7c4   :  { %712 = vrot.lane.b32.xlu0 %v3034_v13, %s3677_s3 }
 0x7c5   :  { %723 = vrot.lane.b32.xlu1 %v3035_v50, %s3677_s3 }
 0x836   :  { %v713_v14 = vpop.permute.xlu0 %712 }
 0x837   :  { %v715_v15 = vmul.f32 %v3508_v10, %v713_v14  ;;  %v724_v17 = vpop.permute.xlu1 %723 }
 0x838   :  { %v726_v18 = vmul.f32 %v3510_v11, %v724_v17 }
 0x839   :  { %717 = vrot.lane.b32.xlu0 %v715_v15, %s3678_s27 }
 0x83a   :  { %728 = vrot.lane.b32.xlu1 %v726_v18, %s3678_s27 }
 0x8ab   :  { %v718_v21 = vpop.permute.xlu0 %717 }
 0x8ac   :  { %v720_v25 = vadd.f32 %v718_v21, %v710_v19  ;;  %v729_v28 = vpop.permute.xlu1 %728 }
 0x8ad   :  { %v3989_v32 = vadd.f32 %v729_v28, %v721_v29 }
 0x8ae   :  { %733 = vrot.lane.b32.xlu0 %v720_v25, %s3679_s28 }
 0x920   :  { %v734_v24 = vpop.permute.xlu0 %733 }
 0x921   :  { %v736_v33 = vsel %vm139_vm0, %v734_v24, %v3989_v32 }
 0x922   :  { %3511 = vtanh.f32 %v736_v33 }
 0x92c   :  { %v3512_v27 = vpop.eup %3511 }
 0x92d   :  { %743 = vrot.lane.b32.xlu0 %v3512_v27, %s3677_s3  ;;  %739 = vrot.lane.b32.xlu1 %v3512_v27, %s3679_s28 }
 0x99f   :  { %v744_v20 = vpop.permute.xlu0 %743  ;;  %v740_v34 = vpop.permute.xlu1 %739 }
 0x9a0   :  { %v746_v35 = vmul.f32 %v3510_v11, %v744_v20  ;;  %v742_v36 = vmul.f32 %v3508_v10, %v740_v34 }
 0x9a2   :  { %754 = vrot.lane.b32.xlu0 %v746_v35, %s3677_s3  ;;  %748 = vrot.lane.b32.xlu1 %v742_v36, %s3678_s27  ;;  %v255_v35 = vadd.f32 %v3869_v44, %v3892_v56  ;;  %v251_v36 = vadd.f32 %v3964_v45, %v3899_v60 }
 0xa14   :  { %v755_v26 = vpop.permute.xlu0 %754  ;;  %v749_v39 = vpop.permute.xlu1 %748 }
 0xa15   :  { %758 = vst.msk [vmem:[#allocation3 + $0x28] sm:$0xff] %vm457_vm1, %v755_v26  ;;  %v759_v52 = vsel %vm139_vm0, %v749_v39, %v755_v26 }
 0xa16   :  { %752 = vst.msk [vmem:[#allocation3 + $0x10] sm:$0xff] %vm139_vm0, %v749_v39  ;;  %3036 = vmatmul.mubr.msk.f32.vlgmr.msra.gmra.mrb[12].mxu1 %vm317_vm2, %v759_v52 }
 0xa17   :  { %3253 = vmatpush1.bf16.msra.mxu1 %v3787_v22  ;;  %1121 = vmatprep.mubr.f32.mxu1 %v3676_v8 }
 0xa18   :  { %3255 = vmatprep.subr.bf16.mxu1 %v3790_v23 }
 0xa1b   :  { %3257 = vmatpush1.bf16.msra.mxu1 %v3809_v30 }
 0xa1c   :  { %3259 = vmatprep.subr.bf16.mxu1 %v3812_v31 }
 0xa1f   :  { %3261 = vmatpush1.bf16.msra.mxu1 %v3832_v37 }
 0xa20   :  { %3263 = vmatprep.subr.bf16.mxu1 %v3835_v38 }
 0xa23   :  { %3265 = vmatpush1.bf16.msra.mxu1 %v3848_v42 }
 0xa24   :  { %3283 = vmatprep.subr.bf16.mxu1 %v3773_v16 }
 0xae9   :  { %v837_v61 = vpop.f32.mrb[12].mxu1 }
 0xaea   :  { %v842_v62 = vadd.f32 %v837_v61, %v249_v58  ;;  %v839_v63 = vpop.f32.mrb[13].mxu1 }
 0xaeb   :  { %v843_v0 = vadd.f32 %v839_v63, %v257_v59 }
 0xaec   :  { %v3037_v1 = vmul.f32 -1.442695, %v842_v62 }
 0xaed   :  { %v3038_v2 = vmul.f32 -1.442695, %v843_v0 }
 0xaee   :  { %3513 = vpow2.f32 %v3037_v1 }
 0xaef   :  { %3515 = vpow2.f32 %v3038_v2 }
 0xaf8   :  { %v3514_v3 = vpop.eup %3513 }
 0xaf9   :  { %v3516_v4 = vpop.eup %3515  ;;  %v850_v5 = vadd.f32 1.0, %v3514_v3 }
 0xafa   :  { %v851_v6 = vadd.f32 1.0, %v3516_v4 }
 0xafb   :  { %3517 = vrcp.f32 %v850_v5 }
 0xafc   :  { %3519 = vrcp.f32 %v851_v6 }
 0xb05   :  { %v3518_v16 = vpop.eup %3517 }
 0xb06   :  { %v3520_v7 = vpop.eup %3519  ;;  %v856_v43 = vmul.f32 2.0, %v3518_v16  ;;  %v860_v50 = vmul.f32 %v3518_v16, %v720_v25 }
 0xb07   :  { %v858_v9 = vmul.f32 2.0, %v3520_v7  ;;  %v871_v18 = vmul.f32 %v3520_v7, %v3989_v32 }
 0xb08   :  { %v3039_v10 = vadd.f32 -1.0, %v856_v43 }
 0xb09   :  { %v3040_v46 = vadd.f32 -1.0, %v858_v9 }
 0xb0a   :  { %862 = vrot.lane.b32.xlu1 %v3039_v10, %s3677_s3 }
 0xb0b   :  { %873 = vrot.lane.b32.xlu0 %v3040_v46, %s3677_s3 }
 0xb7c   :  { %v863_v11 = vpop.permute.xlu1 %862 }
 0xb7d   :  { %v865_v12 = vmul.f32 %v3518_v16, %v863_v11  ;;  %v874_v54 = vpop.permute.xlu0 %873 }
 0xb7e   :  { %v876_v13 = vmul.f32 %v3520_v7, %v874_v54 }
 0xb7f   :  { %867 = vrot.lane.b32.xlu1 %v865_v12, %s3678_s27 }
 0xb80   :  { %878 = vrot.lane.b32.xlu0 %v876_v13, %s3678_s27 }
 0xbf1   :  { %v868_v14 = vpop.permute.xlu1 %867 }
 0xbf2   :  { %v870_v15 = vadd.f32 %v868_v14, %v860_v50  ;;  %v879_v17 = vpop.permute.xlu0 %878 }
 0xbf3   :  { %v881_v19 = vadd.f32 %v879_v17, %v871_v18 }
 0xbf4   :  { %883 = vrot.lane.b32.xlu1 %v870_v15, %s3679_s28 }
 0xc66   :  { %v884_v21 = vpop.permute.xlu1 %883 }
 0xc67   :  { %v886_v28 = vsel %vm139_vm0, %v884_v21, %v881_v19 }
 0xc68   :  { %3521 = vtanh.f32 %v886_v28 }
 0xc72   :  { %v3522_v29 = vpop.eup %3521 }
 0xc73   :  { %893 = vrot.lane.b32.xlu1 %v3522_v29, %s3677_s3  ;;  %889 = vrot.lane.b32.xlu0 %v3522_v29, %s3679_s28 }
 0xce5   :  { %v894_v24 = vpop.permute.xlu1 %893  ;;  %v890_v33 = vpop.permute.xlu0 %889 }
 0xce6   :  { %v896_v25 = vmul.f32 %v3520_v7, %v894_v24  ;;  %v892_v27 = vmul.f32 %v3518_v16, %v890_v33  ;;  %v261_v24 = vadd.f32 %v3877_v49, %v3892_v56 }
 0xce8   :  { %904 = vrot.lane.b32.xlu1 %v896_v25, %s3677_s3  ;;  %898 = vrot.lane.b32.xlu0 %v892_v27, %s3678_s27 }
 0xd5a   :  { %v905_v20 = vpop.permute.xlu1 %904  ;;  %v899_v32 = vpop.permute.xlu0 %898 }
 0xd5b   :  { %908 = vst.msk [vmem:[#allocation3 + $0x20] sm:$0xff] %vm457_vm1, %v905_v20  ;;  %v909_v34 = vsel %vm139_vm0, %v899_v32, %v905_v20 }
 0xd5c   :  { %902 = vst.msk [vmem:[#allocation3 + $0x18] sm:$0xff] %vm139_vm0, %v899_v32  ;;  %3041 = vmatmul.mubr.msk.f32.vlgmr.msra.gmra.mrb[10].mxu0 %vm317_vm2, %v909_v34 }
 0xd5d   :  { %3269 = vmatpush1.bf16.msra.mxu0 %v3787_v22  ;;  %1263 = vmatprep.mubr.f32.mxu0 %v3676_v8 }
 0xd5e   :  { %3271 = vmatprep.subr.bf16.mxu0 %v3790_v23 }
 0xd61   :  { %3273 = vmatpush1.bf16.msra.mxu0 %v3809_v30 }
 0xd62   :  { %3275 = vmatprep.subr.bf16.mxu0 %v3812_v31 }
 0xd65   :  { %3277 = vmatpush1.bf16.msra.mxu0 %v3832_v37 }
 0xd66   :  { %3279 = vmatprep.subr.bf16.mxu0 %v3835_v38 }
 0xd69   :  { %3281 = vmatpush1.bf16.msra.mxu0 %v3848_v42 }
 0xe2f   :  { %v981_v26 = vpop.f32.mrb[10].mxu0 }
 0xe30   :  { %v986_v39 = vadd.f32 %v981_v26, %v255_v35  ;;  %v983_v52 = vpop.f32.mrb[11].mxu0 }
 0xe31   :  { %v987_v58 = vadd.f32 %v983_v52, %v251_v36 }
 0xe32   :  { %v3042_v59 = vmul.f32 -1.442695, %v986_v39 }
 0xe33   :  { %v3043_v61 = vmul.f32 -1.442695, %v987_v58 }
 0xe34   :  { %3523 = vpow2.f32 %v3042_v59 }
 0xe35   :  { %3525 = vpow2.f32 %v3043_v61 }
 0xe3e   :  { %v3524_v62 = vpop.eup %3523 }
 0xe3f   :  { %v3526_v63 = vpop.eup %3525  ;;  %v994_v0 = vadd.f32 1.0, %v3524_v62 }
 0xe40   :  { %v995_v1 = vadd.f32 1.0, %v3526_v63 }
 0xe41   :  { %3527 = vrcp.f32 %v994_v0 }
 0xe42   :  { %3529 = vrcp.f32 %v995_v1 }
 0xe4b   :  { %v3528_v2 = vpop.eup %3527 }
 0xe4c   :  { %v3530_v3 = vpop.eup %3529  ;;  %v1000_v44 = vmul.f32 2.0, %v3528_v2  ;;  %v1004_v9 = vmul.f32 %v3528_v2, %v870_v15 }
 0xe4d   :  { %v1002_v4 = vmul.f32 2.0, %v3530_v3  ;;  %v1015_v12 = vmul.f32 %v3530_v3, %v881_v19 }
 0xe4e   :  { %v3044_v5 = vadd.f32 -1.0, %v1000_v44 }
 0xe4f   :  { %v3045_v45 = vadd.f32 -1.0, %v1002_v4 }
 0xe50   :  { %1006 = vrot.lane.b32.xlu0 %v3044_v5, %s3677_s3 }
 0xe51   :  { %1017 = vrot.lane.b32.xlu1 %v3045_v45, %s3677_s3 }
 0xec2   :  { %v1007_v6 = vpop.permute.xlu0 %1006 }
 0xec3   :  { %v1009_v16 = vmul.f32 %v3528_v2, %v1007_v6  ;;  %v1018_v7 = vpop.permute.xlu1 %1017 }
 0xec4   :  { %v1020_v43 = vmul.f32 %v3530_v3, %v1018_v7 }
 0xec5   :  { %1011 = vrot.lane.b32.xlu0 %v1009_v16, %s3678_s27 }
 0xec6   :  { %1022 = vrot.lane.b32.xlu1 %v1020_v43, %s3678_s27 }
 0xf37   :  { %v1012_v10 = vpop.permute.xlu0 %1011 }
 0xf38   :  { %v1014_v46 = vadd.f32 %v1012_v10, %v1004_v9  ;;  %v1023_v11 = vpop.permute.xlu1 %1022  ;;  %v267_v9 = vadd.f32 %v3885_v53, %v3892_v56  ;;  %v239_v10 = vadd.f32 %v3920_v41, %v3899_v60 }
 0xf39   :  { %v1025_v54 = vadd.f32 %v1023_v11, %v1015_v12 }
 0xf3a   :  { %1027 = vrot.lane.b32.xlu0 %v1014_v46, %s3679_s28 }
 0xfac   :  { %v1028_v13 = vpop.permute.xlu0 %1027 }
 0xfad   :  { %v1030_v50 = vsel %vm139_vm0, %v1028_v13, %v1025_v54 }
 0xfae   :  { %3531 = vtanh.f32 %v1030_v50 }
 0xfb8   :  { %v3532_v14 = vpop.eup %3531 }
 0xfb9   :  { %1037 = vrot.lane.b32.xlu0 %v3532_v14, %s3677_s3  ;;  %1033 = vrot.lane.b32.xlu1 %v3532_v14, %s3679_s28 }
0x102b   :  { %v1038_v17 = vpop.permute.xlu0 %1037  ;;  %v1034_v18 = vpop.permute.xlu1 %1033 }
0x102c   :  { %v1040_v21 = vmul.f32 %v3530_v3, %v1038_v17  ;;  %v1036_v15 = vmul.f32 %v3528_v2, %v1034_v18 }
0x102e   :  { %1047 = vrot.lane.b32.xlu0 %v1040_v21, %s3677_s3  ;;  %1042 = vrot.lane.b32.xlu1 %v1036_v15, %s3678_s27 }
0x10a0   :  { %v1048_v28 = vpop.permute.xlu0 %1047  ;;  %v1043_v19 = vpop.permute.xlu1 %1042 }
0x10a1   :  { %1050 = vst.msk [vmem:[#allocation3 + $0x18] sm:$0xff] %vm457_vm1, %v1048_v28  ;;  %v1051_v29 = vsel %vm139_vm0, %v1043_v19, %v1048_v28 }
0x10a2   :  { %1045 = vst.msk [vmem:[#allocation3 + $0x20] sm:$0xff] %vm139_vm0, %v1043_v19  ;;  %3046 = vmatmul.mubr.msk.f32.vlgmr.msra.gmra.mrb[14].mxu1 %vm317_vm2, %v1051_v29 }
0x10a3   :  { %3285 = vmatpush1.bf16.msra.mxu1 %v3787_v22  ;;  %1405 = vmatprep.mubr.f32.mxu1 %v3676_v8  ;;  %v245_v22 = vadd.f32 %v3960_v40, %v3899_v60 }
0x10a4   :  { %3287 = vmatprep.subr.bf16.mxu1 %v3790_v23 }
0x10a7   :  { %3289 = vmatpush1.bf16.msra.mxu1 %v3809_v30 }
0x10a8   :  { %3291 = vmatprep.subr.bf16.mxu1 %v3812_v31 }
0x10ab   :  { %3293 = vmatpush1.bf16.msra.mxu1 %v3832_v37 }
0x10ac   :  { %3295 = vmatprep.subr.bf16.mxu1 %v3835_v38 }
0x10af   :  { %3297 = vmatpush1.bf16.msra.mxu1 %v3848_v42 }
0x1175   :  { %v1123_v33 = vpop.f32.mrb[14].mxu1 }
0x1176   :  { %v1128_v25 = vadd.f32 %v1123_v33, %v261_v24  ;;  %v1125_v27 = vpop.f32.mrb[15].mxu1 }
0x1177   :  { %v1129_v23 = vadd.f32 %v1125_v27, %v245_v22 }
0x1178   :  { %v3047_v20 = vmul.f32 -1.442695, %v1128_v25 }
0x1179   :  { %v3048_v30 = vmul.f32 -1.442695, %v1129_v23 }
0x117a   :  { %3533 = vpow2.f32 %v3047_v20 }
0x117b   :  { %3535 = vpow2.f32 %v3048_v30 }
0x1184   :  { %v3534_v31 = vpop.eup %3533 }
0x1185   :  { %v3536_v37 = vpop.eup %3535  ;;  %v1136_v32 = vadd.f32 1.0, %v3534_v31 }
0x1186   :  { %v1137_v38 = vadd.f32 1.0, %v3536_v37 }
0x1187   :  { %3537 = vrcp.f32 %v1136_v32 }
0x1188   :  { %3539 = vrcp.f32 %v1137_v38 }
0x1191   :  { %v3538_v42 = vpop.eup %3537 }
0x1192   :  { %v3540_v34 = vpop.eup %3539  ;;  %v1142_v49 = vmul.f32 2.0, %v3538_v42  ;;  %v1146_v59 = vmul.f32 %v3538_v42, %v1014_v46 }
0x1193   :  { %v1144_v35 = vmul.f32 2.0, %v3540_v34  ;;  %v1157_v0 = vmul.f32 %v3540_v34, %v1025_v54 }
0x1194   :  { %v3049_v36 = vadd.f32 -1.0, %v1142_v49 }
0x1195   :  { %v3050_v40 = vadd.f32 -1.0, %v1144_v35 }
0x1196   :  { %1148 = vrot.lane.b32.xlu1 %v3049_v36, %s3677_s3 }
0x1197   :  { %1159 = vrot.lane.b32.xlu0 %v3050_v40, %s3677_s3 }
0x1208   :  { %v1149_v26 = vpop.permute.xlu1 %1148 }
0x1209   :  { %v1151_v39 = vmul.f32 %v3538_v42, %v1149_v26  ;;  %v1160_v52 = vpop.permute.xlu0 %1159 }
0x120a   :  { %v1162_v58 = vmul.f32 %v3540_v34, %v1160_v52  ;;  %v273_v52 = vadd.f32 %v3894_v57, %v3892_v56 }
0x120b   :  { %1153 = vrot.lane.b32.xlu1 %v1151_v39, %s3678_s27 }
0x120c   :  { %1164 = vrot.lane.b32.xlu0 %v1162_v58, %s3678_s27  ;;  %v233_v58 = vadd.f32 %v3873_v47, %v3899_v60 }
0x127d   :  { %v1154_v61 = vpop.permute.xlu1 %1153 }
0x127e   :  { %v1156_v62 = vadd.f32 %v1154_v61, %v1146_v59  ;;  %v1165_v63 = vpop.permute.xlu0 %1164 }
0x127f   :  { %v1167_v1 = vadd.f32 %v1165_v63, %v1157_v0 }
0x1280   :  { %1169 = vrot.lane.b32.xlu1 %v1156_v62, %s3679_s28 }
0x12f2   :  { %v1170_v2 = vpop.permute.xlu1 %1169 }
0x12f3   :  { %v1172_v3 = vsel %vm139_vm0, %v1170_v2, %v1167_v1 }
0x12f4   :  { %3541 = vtanh.f32 %v1172_v3 }
0x12fe   :  { %v3542_v44 = vpop.eup %3541 }
0x12ff   :  { %1179 = vrot.lane.b32.xlu1 %v3542_v44, %s3677_s3  ;;  %1175 = vrot.lane.b32.xlu0 %v3542_v44, %s3679_s28 }
0x1371   :  { %v1180_v4 = vpop.permute.xlu1 %1179  ;;  %v1176_v5 = vpop.permute.xlu0 %1175 }
0x1372   :  { %v1182_v45 = vmul.f32 %v3540_v34, %v1180_v4  ;;  %v1178_v6 = vmul.f32 %v3538_v42, %v1176_v5 }
0x1374   :  { %1189 = vrot.lane.b32.xlu1 %v1182_v45, %s3677_s3  ;;  %1184 = vrot.lane.b32.xlu0 %v1178_v6, %s3678_s27 }
0x13e6   :  { %v1190_v16 = vpop.permute.xlu1 %1189  ;;  %v1185_v7 = vpop.permute.xlu0 %1184 }
0x13e7   :  { %1192 = vst.msk [vmem:[#allocation3 + $0x10] sm:$0xff] %vm457_vm1, %v1190_v16  ;;  %v1193_v43 = vsel %vm139_vm0, %v1185_v7, %v1190_v16 }
0x13e8   :  { %1187 = vst.msk [vmem:[#allocation3 + $0x28] sm:$0xff] %vm139_vm0, %v1185_v7  ;;  %3051 = vmatmul.mubr.msk.f32.vlgmr.msra.gmra.mrb[12].mxu0 %vm317_vm2, %v1193_v43 }
0x13e9   :  { %1601 = vmatprep.mubr.f32.mxu0 %v3676_v8 }
0x14bb   :  { %v1265_v46 = vpop.f32.mrb[12].mxu0 }
0x14bc   :  { %v1270_v11 = vadd.f32 %v1265_v46, %v267_v9  ;;  %v1267_v12 = vpop.f32.mrb[13].mxu0 }
0x14bd   :  { %v1271_v54 = vadd.f32 %v1267_v12, %v239_v10 }
0x14be   :  { %v3052_v13 = vmul.f32 -1.442695, %v1270_v11 }
0x14bf   :  { %v3053_v50 = vmul.f32 -1.442695, %v1271_v54 }
0x14c0   :  { %3543 = vpow2.f32 %v3052_v13 }
0x14c1   :  { %3545 = vpow2.f32 %v3053_v50 }
0x14ca   :  { %v3544_v14 = vpop.eup %3543 }
0x14cb   :  { %v3546_v17 = vpop.eup %3545  ;;  %v1278_v18 = vadd.f32 1.0, %v3544_v14  ;;  %v1486_v14 = vld [vmem:[%s4548_s5 + $0x8] sm:$0xff] }
0x14cc   :  { %v1279_v21 = vadd.f32 1.0, %v3546_v17  ;;  %v1488_v17 = vld [vmem:[%s4548_s5 + $0x18] sm:$0xff] }
0x14cd   :  { %3547 = vrcp.f32 %v1278_v18  ;;  %v1485_v18 = vld [vmem:[%s4548_s5] sm:$0xff] }
0x14ce   :  { %3549 = vrcp.f32 %v1279_v21  ;;  %v3298_v21 = vpack.c.bf16 %v1488_v17, %v1486_v14  ;;  %v1482_v14 = vld [vmem:[#allocation3 + $0x28] sm:$0xff] }
0x14d0   :  { %3299 = vmatprep.subr.bf16.mxu0 %v3298_v21 }
0x14d7   :  { %v3548_v15 = vpop.eup %3547 }
0x14d8   :  { %v3550_v28 = vpop.eup %3549  ;;  %v1284_v53 = vmul.f32 2.0, %v3548_v15  ;;  %v1288_v27 = vmul.f32 %v3548_v15, %v1156_v62 }
0x14d9   :  { %v1286_v19 = vmul.f32 2.0, %v3550_v28  ;;  %v1299_v31 = vmul.f32 %v3550_v28, %v1167_v1 }
0x14da   :  { %v3054_v29 = vadd.f32 -1.0, %v1284_v53  ;;  %v1669_v53 = vld [vmem:[%s4550_s7 + $0x18] sm:$0xff] }
0x14db   :  { %v3055_v41 = vadd.f32 -1.0, %v1286_v19 }
0x14dc   :  { %1290 = vrot.lane.b32.xlu0 %v3054_v29, %s3677_s3 }
0x14dd   :  { %1301 = vrot.lane.b32.xlu1 %v3055_v41, %s3677_s3  ;;  %v1666_v41 = vld [vmem:[%s4550_s7] sm:$0xff] }
0x154e   :  { %v1291_v24 = vpop.permute.xlu0 %1290 }
0x154f   :  { %v1293_v22 = vmul.f32 %v3548_v15, %v1291_v24  ;;  %v1302_v33 = vpop.permute.xlu1 %1301  ;;  %v1668_v24 = vld [vmem:[%s4550_s7 + $0x10] sm:$0xff] }
0x1550   :  { %v1304_v25 = vmul.f32 %v3550_v28, %v1302_v33  ;;  %v4150_v33 = vpack.c.bf16 %v1668_v24, %v1666_v41 }
0x1551   :  { %1295 = vrot.lane.b32.xlu0 %v1293_v22, %s3678_s27  ;;  %v1490_v22 = vld [vmem:[%s4548_s5 + $0x28] sm:$0xff] }
0x1552   :  { %1306 = vrot.lane.b32.xlu1 %v1304_v25, %s3678_s27  ;;  %v1492_v25 = vld [vmem:[%s4548_s5 + $0x38] sm:$0xff] }
0x15c3   :  { %v1296_v23 = vpop.permute.xlu0 %1295 }
0x15c4   :  { %v1298_v20 = vadd.f32 %v1296_v23, %v1288_v27  ;;  %v1307_v30 = vpop.permute.xlu1 %1306  ;;  %v1489_v27 = vld [vmem:[%s4548_s5 + $0x20] sm:$0xff]  ;;  %v1491_v23 = vld [vmem:[%s4548_s5 + $0x30] sm:$0xff] }
0x15c5   :  { %v1309_v37 = vadd.f32 %v1307_v30, %v1299_v31  ;;  %v3304_v30 = vpack.c.bf16 %v1491_v23, %v1489_v27  ;;  %v1671_v31 = vld [vmem:[%s4550_s7 + $0x28] sm:$0xff] }
0x15c6   :  { %1311 = vrot.lane.b32.xlu0 %v1298_v20, %s3679_s28 }
0x1638   :  { %v1312_v32 = vpop.permute.xlu0 %1311 }
0x1639   :  { %v1314_v38 = vsel %vm139_vm0, %v1312_v32, %v1309_v37  ;;  %v1670_v32 = vld [vmem:[%s4550_s7 + $0x20] sm:$0xff] }
0x163a   :  { %3551 = vtanh.f32 %v1314_v38 }
0x1644   :  { %v3552_v42 = vpop.eup %3551 }
0x1645   :  { %1321 = vrot.lane.b32.xlu0 %v3552_v42, %s3677_s3  ;;  %1317 = vrot.lane.b32.xlu1 %v3552_v42, %s3679_s28  ;;  %v1672_v42 = vld [vmem:[%s4550_s7 + $0x30] sm:$0xff] }
0x16b7   :  { %v1322_v34 = vpop.permute.xlu0 %1321  ;;  %v1318_v49 = vpop.permute.xlu1 %1317 }
0x16b8   :  { %v1324_v35 = vmul.f32 %v3550_v28, %v1322_v34  ;;  %v1320_v36 = vmul.f32 %v3548_v15, %v1318_v49  ;;  %v1487_v15 = vld [vmem:[%s4548_s5 + $0x10] sm:$0xff]  ;;  %v1667_v28 = vld [vmem:[%s4550_s7 + $0x8] sm:$0xff]  ;;  %v4177_v34 = vpack.c.bf16 %v1672_v42, %v1670_v32 }
0x16b9   :  { %v3300_v19 = vpack.c.bf16 %v1487_v15, %v1485_v18  ;;  %v4139_v29 = vpack.c.bf16 %v1669_v53, %v1667_v28  ;;  %v1501_v28 = vld [vmem:[%s4549_s6] sm:$0x3] }
0x16ba   :  { %1331 = vrot.lane.b32.xlu0 %v1324_v35, %s3677_s3  ;;  %1326 = vrot.lane.b32.xlu1 %v1320_v36, %s3678_s27  ;;  %v1494_v35 = vld [vmem:[%s4548_s5 + $0x48] sm:$0xff]  ;;  %v1496_v36 = vld [vmem:[%s4548_s5 + $0x58] sm:$0xff]  ;;  %v1506_v53 = vrot.slane %v1501_v28, %v131_v51 }
0x16bb   :  { %3301 = vmatpush1.bf16.msra.mxu0 %v3300_v19  ;;  %3315 = vmatprep.subr.bf16.mxu1 %v4139_v29  ;;  %v1510_v19 = vrot.slane %v1501_v28, %v135_v55 }
0x172c   :  { %v1332_v40 = vpop.permute.xlu0 %1331  ;;  %v1327_v26 = vpop.permute.xlu1 %1326 }
0x172d   :  { %1334 = vst.msk [vmem:[#allocation3 + $0x8] sm:$0xff] %vm457_vm1, %v1332_v40  ;;  %v1335_v39 = vsel %vm139_vm0, %v1327_v26, %v1332_v40  ;;  %v3306_v40 = vpack.c.bf16 %v1496_v36, %v1494_v35 }
0x172e   :  { %1329 = vst.msk [vmem:[#allocation3 + $0x30] sm:$0xff] %vm139_vm0, %v1327_v26  ;;  %3056 = vmatmul.mubr.msk.f32.vlgmr.msra.gmra.mrb[16].mxu1 %vm317_vm2, %v1335_v39  ;;  %v1493_v26 = vld [vmem:[%s4548_s5 + $0x40] sm:$0xff]  ;;  %v1495_v39 = vld [vmem:[%s4548_s5 + $0x50] sm:$0xff] }
0x172f   :  { %1748 = vmatprep.mubr.f32.mxu1 %v3676_v8  ;;  %3317 = vmatpush1.bf16.msra.mxu1 %v4150_v33 }
0x1735   :  { %v1483_v17 = vld [vmem:[#allocation3 + $0x30] sm:$0xff] }
0x1801   :  { %v1407_v59 = vpop.f32.mrb[16].mxu1 }
0x1802   :  { %v1412_v61 = vadd.f32 %v1407_v59, %v273_v52  ;;  %v1409_v62 = vpop.f32.mrb[17].mxu1  ;;  %v1675_v52 = vld [vmem:[%s4550_s7 + $0x48] sm:$0xff]  ;;  %v1677_v59 = vld [vmem:[%s4550_s7 + $0x58] sm:$0xff] }
0x1803   :  { %v1413_v63 = vadd.f32 %v1409_v62, %v233_v58  ;;  %v3308_v58 = vpack.c.bf16 %v1495_v39, %v1493_v26  ;;  %v1676_v62 = vld [vmem:[%s4550_s7 + $0x50] sm:$0xff] }
0x1804   :  { %v3057_v0 = vmul.f32 -1.442695, %v1412_v61  ;;  %v1674_v61 = vld [vmem:[%s4550_s7 + $0x40] sm:$0xff] }
0x1805   :  { %v3058_v1 = vmul.f32 -1.442695, %v1413_v63  ;;  %v4207_v63 = vpack.c.bf16 %v1677_v59, %v1675_v52 }
0x1806   :  { %3553 = vpow2.f32 %v3057_v0  ;;  %v4209_v0 = vpack.c.bf16 %v1676_v62, %v1674_v61 }
0x1807   :  { %3555 = vpow2.f32 %v3058_v1  ;;  %v1498_v1 = vld [vmem:[%s4548_s5 + $0x68] sm:$0xff] }
0x1810   :  { %v3554_v2 = vpop.eup %3553 }
0x1811   :  { %v3556_v3 = vpop.eup %3555  ;;  %v1420_v44 = vadd.f32 1.0, %v3554_v2  ;;  %v1500_v2 = vld [vmem:[%s4548_s5 + $0x78] sm:$0xff] }
0x1812   :  { %v1421_v4 = vadd.f32 1.0, %v3556_v3  ;;  %v1497_v3 = vld [vmem:[%s4548_s5 + $0x60] sm:$0xff] }
0x1813   :  { %3557 = vrcp.f32 %v1420_v44  ;;  %v3310_v44 = vpack.c.bf16 %v1500_v2, %v1498_v1 }
0x1814   :  { %3559 = vrcp.f32 %v1421_v4  ;;  %v1499_v4 = vld [vmem:[%s4548_s5 + $0x70] sm:$0xff] }
0x181d   :  { %v4105_v5 = vpop.eup %3557 }
0x181e   :  { %v4107_v56 = vpop.eup %3559  ;;  %v1426_v47 = vmul.f32 2.0, %v4105_v5  ;;  %v1430_v9 = vmul.f32 %v4105_v5, %v1298_v20  ;;  %v3302_v20 = vpack.c.bf16 %v1492_v25, %v1490_v22 }
0x181f   :  { %v1428_v57 = vmul.f32 2.0, %v4107_v56  ;;  %v1441_v12 = vmul.f32 %v4107_v56, %v1309_v37  ;;  %v1673_v37 = vld [vmem:[%s4550_s7 + $0x38] sm:$0xff] }
0x1820   :  { %v3059_v60 = vadd.f32 -1.0, %v1426_v47  ;;  %v4172_v38 = vpack.c.bf16 %v1673_v37, %v1671_v31  ;;  %3303 = vmatprep.subr.bf16.mxu0 %v3302_v20  ;;  %v1679_v47 = vld [vmem:[%s4550_s7 + $0x68] sm:$0xff] }
0x1821   :  { %v3060_v45 = vadd.f32 -1.0, %v1428_v57  ;;  %3305 = vmatpush1.bf16.msra.mxu0 %v3304_v30  ;;  %v1681_v57 = vld [vmem:[%s4550_s7 + $0x78] sm:$0xff] }
0x1822   :  { %1432 = vrot.lane.b32.xlu1 %v3059_v60, %s3677_s3  ;;  %3319 = vmatprep.subr.bf16.mxu1 %v4172_v38  ;;  %v3312_v60 = vpack.c.bf16 %v1499_v4, %v1497_v3 }
0x1823   :  { %1443 = vrot.lane.b32.xlu0 %v3060_v45, %s3677_s3  ;;  %3321 = vmatpush1.bf16.msra.mxu1 %v4177_v34  ;;  %v4230_v45 = vpack.c.bf16 %v1681_v57, %v1679_v47 }
0x1824   :  { %3307 = vmatprep.subr.bf16.mxu0 %v3306_v40  ;;  %3323 = vmatprep.subr.bf16.mxu1 %v4207_v63 }
0x1825   :  { %3309 = vmatpush1.bf16.msra.mxu0 %v3308_v58 }
0x1826   :  { %3311 = vmatprep.subr.bf16.mxu0 %v3310_v44 }
0x1827   :  { %3325 = vmatpush1.bf16.msra.mxu1 %v4209_v0 }
0x1828   :  { %3327 = vmatprep.subr.bf16.mxu1 %v4230_v45 }
0x1829   :  { %3313 = vmatpush1.bf16.msra.mxu0 %v3312_v60 }
0x182a   :  { %3347 = vmatprep.subr.bf16.mxu0 %v4139_v29 }
0x1894   :  { %v1433_v6 = vpop.permute.xlu1 %1432 }
0x1895   :  { %v1435_v16 = vmul.f32 %v4105_v5, %v1433_v6  ;;  %v1444_v7 = vpop.permute.xlu0 %1443  ;;  %v1678_v6 = vld [vmem:[%s4550_s7 + $0x60] sm:$0xff] }
0x1896   :  { %v1446_v43 = vmul.f32 %v4107_v56, %v1444_v7 }
0x1897   :  { %1437 = vrot.lane.b32.xlu1 %v1435_v16, %s3678_s27  ;;  %v1680_v16 = vld [vmem:[%s4550_s7 + $0x70] sm:$0xff] }
0x1898   :  { %1448 = vrot.lane.b32.xlu0 %v1446_v43, %s3678_s27  ;;  %v4239_v7 = vpack.c.bf16 %v1680_v16, %v1678_v6 }
0x189a   :  { %3329 = vmatpush1.bf16.msra.mxu1 %v4239_v7 }
0x189b   :  { %3331 = vmatprep.subr.bf16.mxu1 %v4139_v29 }
0x189d   :  { %1749 = vmatmul.mubr.f32.vlgmr.msra.gmra.mrb[18].mxu1 %v3676_v8 }
0x189e   :  { %3333 = vmatpush1.bf16.msra.mxu1 %v4150_v33  ;;  %1890 = vmatprep.mubr.f32.mxu1 %v3676_v8 }
0x189f   :  { %3335 = vmatprep.subr.bf16.mxu1 %v4172_v38 }
0x18a2   :  { %3337 = vmatpush1.bf16.msra.mxu1 %v4177_v34 }
0x18a3   :  { %3339 = vmatprep.subr.bf16.mxu1 %v4207_v63 }
0x18a6   :  { %3341 = vmatpush1.bf16.msra.mxu1 %v4209_v0 }
0x18a7   :  { %3343 = vmatprep.subr.bf16.mxu1 %v4230_v45 }
0x18aa   :  { %3345 = vmatpush1.bf16.msra.mxu1 %v4239_v7 }
0x18ab   :  { %3363 = vmatprep.subr.bf16.mxu1 %v4139_v29 }
0x1909   :  { %v1438_v10 = vpop.permute.xlu1 %1437 }
0x190a   :  { %v1440_v46 = vadd.f32 %v1438_v10, %v1430_v9  ;;  %v1449_v11 = vpop.permute.xlu0 %1448 }
0x190b   :  { %v1451_v54 = vadd.f32 %v1449_v11, %v1441_v12  ;;  %v1478_v12 = vld [vmem:[#allocation3 + $0x8] sm:$0xff] }
0x190c   :  { %1453 = vrot.lane.b32.xlu1 %v1440_v46, %s3679_s28 }
0x1970   :  { %v1750_v21 = vpop.f32.mrb[18].mxu1 }
0x1971   :  { %v1752_v15 = vpop.f32.mrb[19].mxu1 }
0x197e   :  { %v1454_v13 = vpop.permute.xlu1 %1453 }
0x197f   :  { %v1456_v50 = vsel %vm139_vm0, %v1454_v13, %v1451_v54  ;;  %v1479_v54 = vld [vmem:[#allocation3 + $0x10] sm:$0xff]  ;;  %v1480_v13 = vld [vmem:[#allocation3 + $0x18] sm:$0xff] }
0x1980   :  { %3561 = vtanh.f32 %v1456_v50  ;;  %v1481_v50 = vld [vmem:[#allocation3 + $0x20] sm:$0xff] }
0x198a   :  { %v3562_v49 = vpop.eup %3561 }
0x198b   :  { %1459 = vrot.lane.b32.xlu1 %v3562_v49, %s3679_s28  ;;  %1463 = vrot.lane.b32.xlu0 %v3562_v49, %s3677_s3 }
0x19fd   :  { %v1460_v43 = vpop.permute.xlu1 %1459  ;;  %v1464_v9 = vpop.permute.xlu0 %1463 }
0x19fe   :  { %v1462_v10 = vmul.f32 %v4105_v5, %v1460_v43  ;;  %v1466_v46 = vmul.f32 %v4107_v56, %v1464_v9 }
0x1a00   :  { %1468 = vrot.lane.b32.xlu1 %v1462_v10, %s3678_s27  ;;  %1473 = vrot.lane.b32.xlu0 %v1466_v46, %s3677_s3 }
0x1a72   :  { %v1469_v5 = vpop.permute.xlu1 %1468  ;;  %v1474_v56 = vpop.permute.xlu0 %1473 }
0x1a73   :  { %1471 = vst.msk [vmem:[#allocation3 + $0x38] sm:$0xff] %vm139_vm0, %v1469_v5 }
0x1a74   :  { %1476 = vst.msk [vmem:[#allocation3] sm:$0xff] %vm457_vm1, %v1474_v56 }
0x1a7a   :  { %v1484_v18 = vld [vmem:[#allocation3 + $0x38] sm:$0xff] }
0x1a7b   :  { %v1477_v11 = vld [vmem:[#allocation3] sm:$0xff] }
0x1a7c   :  { %3061 = vmatmul.mubr.msk.f32.vlgmr.msra.gmra.mrb[14].mxu0 %vm317_vm2, %v1477_v11 }
0x1a7d   :  { %1607 = vmatprep.mubr.f32.mxu0 %v3676_v8  ;;  %3349 = vmatpush1.bf16.msra.mxu0 %v4150_v33 }
0x1a7e   :  { %3351 = vmatprep.subr.bf16.mxu0 %v4172_v38 }
0x1a80   :  { %3062 = vmatmul.mubr.msk.f32.gmra.mrb[16].mxu0 %vm317_vm2, %v1478_v12 }
0x1a81   :  { %1613 = vmatprep.mubr.f32.mxu0 %v3676_v8  ;;  %3353 = vmatpush1.bf16.msra.mxu0 %v4177_v34 }
0x1a82   :  { %3355 = vmatprep.subr.bf16.mxu0 %v4207_v63 }
0x1a84   :  { %3063 = vmatmul.mubr.msk.f32.gmra.mrb[18].mxu0 %vm317_vm2, %v1479_v54 }
0x1a85   :  { %1619 = vmatprep.mubr.f32.mxu0 %v3676_v8  ;;  %3357 = vmatpush1.bf16.msra.mxu0 %v4209_v0 }
0x1a86   :  { %3359 = vmatprep.subr.bf16.mxu0 %v4230_v45 }
0x1a88   :  { %3064 = vmatmul.mubr.msk.f32.gmra.mrb[20].mxu0 %vm317_vm2, %v1480_v13 }
0x1a89   :  { %1625 = vmatprep.mubr.f32.mxu0 %v3676_v8  ;;  %3361 = vmatpush1.bf16.msra.mxu0 %v4239_v7 }
0x1a8a   :  { %3379 = vmatprep.subr.bf16.mxu0 %v4139_v29 }
0x1a8c   :  { %3065 = vmatmul.mubr.msk.f32.gmra.mrb[22].mxu0 %vm317_vm2, %v1481_v50 }
0x1a8d   :  { %1631 = vmatprep.mubr.f32.mxu0 %v3676_v8 }
0x1a90   :  { %3066 = vmatmul.mubr.msk.f32.gmra.mrb[24].mxu0 %vm317_vm2, %v1482_v14 }
0x1a91   :  { %1637 = vmatprep.mubr.f32.mxu0 %v3676_v8 }
0x1a94   :  { %3067 = vmatmul.mubr.msk.f32.gmra.mrb[26].mxu0 %vm317_vm2, %v1483_v17 }
0x1a95   :  { %1643 = vmatprep.mubr.f32.mxu0 %v3676_v8 }
0x1a98   :  { %3068 = vmatmul.mubr.msk.f32.gmra.mrb[28].mxu0 %vm317_vm2, %v1484_v18 }
0x1a99   :  { %2032 = vmatprep.mubr.f32.mxu0 %v3676_v8 }
0x1b4f   :  { %v1603_v41 = vpop.f32.mrb[14].mxu0 }
0x1b50   :  { %v1604_v24 = vadd.f32 %v1603_v41, %v1506_v53  ;;  %v1605_v22 = vpop.f32.mrb[15].mxu0 }
0x1b51   :  { %v4292_v25 = vadd.f32 %v1605_v22, %v1510_v19 }
0x1b52   :  { %v1755_v27 = vadd.f32 %v1750_v21, %v1604_v24 }
0x1b53   :  { %v1609_v23 = vpop.f32.mrb[16].mxu0 }
0x1b54   :  { %v3069_v20 = vmul.f32 -1.442695, %v1755_v27  ;;  %v4294_v30 = vadd.f32 %v1609_v23, %v1506_v53  ;;  %v1611_v31 = vpop.f32.mrb[17].mxu0 }
0x1b55   :  { %v4296_v37 = vadd.f32 %v1611_v31, %v1510_v19 }
0x1b56   :  { %3563 = vpow2.f32 %v3069_v20 }
0x1b57   :  { %v1615_v32 = vpop.f32.mrb[18].mxu0 }
0x1b58   :  { %v4298_v42 = vadd.f32 %v1615_v32, %v1506_v53  ;;  %v1617_v51 = vpop.f32.mrb[19].mxu0 }
0x1b59   :  { %v4300_v48 = vadd.f32 %v1617_v51, %v1510_v19 }
0x1b5b   :  { %v1621_v55 = vpop.f32.mrb[20].mxu0 }
0x1b5c   :  { %v4302_v49 = vadd.f32 %v1621_v55, %v1506_v53  ;;  %v1623_v35 = vpop.f32.mrb[21].mxu0 }
0x1b5d   :  { %v4304_v36 = vadd.f32 %v1623_v35, %v1510_v19 }
0x1b5f   :  { %v1627_v40 = vpop.f32.mrb[22].mxu0 }
0x1b60   :  { %v3564_v26 = vpop.eup %3563  ;;  %v4306_v39 = vadd.f32 %v1627_v40, %v1506_v53  ;;  %v1629_v52 = vpop.f32.mrb[23].mxu0 }
0x1b61   :  { %v1763_v58 = vadd.f32 1.0, %v3564_v26  ;;  %v4308_v59 = vadd.f32 %v1629_v52, %v1510_v19 }
0x1b63   :  { %3565 = vrcp.f32 %v1763_v58  ;;  %v1633_v61 = vpop.f32.mrb[24].mxu0 }
0x1b64   :  { %v4310_v62 = vadd.f32 %v1633_v61, %v1506_v53  ;;  %v1635_v1 = vpop.f32.mrb[25].mxu0 }
0x1b65   :  { %v4312_v2 = vadd.f32 %v1635_v1, %v1510_v19 }
0x1b67   :  { %v1639_v3 = vpop.f32.mrb[26].mxu0 }
0x1b68   :  { %v4314_v44 = vadd.f32 %v1639_v3, %v1506_v53  ;;  %v1641_v4 = vpop.f32.mrb[27].mxu0 }
0x1b69   :  { %v1642_v47 = vadd.f32 %v1641_v4, %v1510_v19 }
0x1b6b   :  { %v1645_v57 = vpop.f32.mrb[28].mxu0 }
0x1b6c   :  { %v4316_v60 = vadd.f32 %v1645_v57, %v1506_v53  ;;  %v1647_v6 = vpop.f32.mrb[29].mxu0 }
0x1b6d   :  { %v3566_v16 = vpop.eup %3565  ;;  %v1648_v43 = vadd.f32 %v1647_v6, %v1510_v19 }
0x1b6e   :  { %v1769_v9 = vmul.f32 2.0, %v3566_v16  ;;  %v1773_v21 = vmul.f32 0.0, %v3566_v16 }
0x1b6f   :  { %v1756_v10 = vadd.f32 %v1752_v15, %v1648_v43 }
0x1b70   :  { %v3071_v46 = vadd.f32 -1.0, %v1769_v9 }
0x1b71   :  { %v3070_v5 = vmul.f32 -1.442695, %v1756_v10 }
0x1b72   :  { %1775 = vrot.lane.b32.xlu0 %v3071_v46, %s3677_s3 }
0x1b73   :  { %3567 = vpow2.f32 %v3070_v5 }
0x1b7d   :  { %v3568_v56 = vpop.eup %3567 }
0x1b7e   :  { %v1764_v11 = vadd.f32 1.0, %v3568_v56 }
0x1b80   :  { %3569 = vrcp.f32 %v1764_v11 }
0x1b8a   :  { %v3570_v12 = vpop.eup %3569 }
0x1b8b   :  { %v1771_v54 = vmul.f32 2.0, %v3570_v12  ;;  %v1784_v19 = vmul.f32 0.0, %v3570_v12 }
0x1b8d   :  { %v3072_v13 = vadd.f32 -1.0, %v1771_v54 }
0x1b8f   :  { %1786 = vrot.lane.b32.xlu1 %v3072_v13, %s3677_s3 }
0x1be4   :  { %v1776_v50 = vpop.permute.xlu0 %1775 }
0x1be5   :  { %v1778_v14 = vmul.f32 %v3566_v16, %v1776_v50 }
0x1be7   :  { %1780 = vrot.lane.b32.xlu0 %v1778_v14, %s3678_s27 }
0x1c01   :  { %v1787_v17 = vpop.permute.xlu1 %1786 }
0x1c02   :  { %v1789_v18 = vmul.f32 %v3570_v12, %v1787_v17 }
0x1c04   :  { %1791 = vrot.lane.b32.xlu1 %v1789_v18, %s3678_s27 }
0x1c59   :  { %v1781_v15 = vpop.permute.xlu0 %1780 }
0x1c5a   :  { %v1783_v28 = vadd.f32 %v1781_v15, %v1773_v21 }
0x1c5c   :  { %1796 = vrot.lane.b32.xlu0 %v1783_v28, %s3679_s28 }
0x1c76   :  { %v1792_v53 = vpop.permute.xlu1 %1791 }
0x1c77   :  { %v1794_v41 = vadd.f32 %v1792_v53, %v1784_v19 }
0x1cce   :  { %v1797_v24 = vpop.permute.xlu0 %1796 }
0x1ccf   :  { %v1799_v22 = vsel %vm139_vm0, %v1797_v24, %v1794_v41 }
0x1cd0   :  { %3571 = vtanh.f32 %v1799_v22 }
0x1cda   :  { %v3572_v27 = vpop.eup %3571 }
0x1cdb   :  { %1806 = vrot.lane.b32.xlu0 %v3572_v27, %s3677_s3  ;;  %1802 = vrot.lane.b32.xlu1 %v3572_v27, %s3679_s28 }
0x1d4d   :  { %v1807_v23 = vpop.permute.xlu0 %1806  ;;  %v1803_v20 = vpop.permute.xlu1 %1802 }
0x1d4e   :  { %v1809_v31 = vmul.f32 %v3570_v12, %v1807_v23  ;;  %v1805_v32 = vmul.f32 %v3566_v16, %v1803_v20 }
0x1d50   :  { %1816 = vrot.lane.b32.xlu0 %v1809_v31, %s3677_s3  ;;  %1811 = vrot.lane.b32.xlu1 %v1805_v32, %s3678_s27 }
0x1dc2   :  { %v1817_v51 = vpop.permute.xlu0 %1816  ;;  %v1812_v55 = vpop.permute.xlu1 %1811 }
0x1dc3   :  { %1819 = vst.msk [vmem:[#allocation3 + $0x38] sm:$0xff] %vm457_vm1, %v1817_v51  ;;  %v1820_v35 = vsel %vm139_vm0, %v1812_v55, %v1817_v51 }
0x1dc4   :  { %1814 = vst.msk [vmem:[#allocation3] sm:$0xff] %vm139_vm0, %v1812_v55  ;;  %3073 = vmatmul.mubr.msk.f32.vlgmr.msra.gmra.mrb[20].mxu1 %vm317_vm2, %v1820_v35 }
0x1dc5   :  { %3365 = vmatpush1.bf16.msra.mxu1 %v4150_v33  ;;  %2174 = vmatprep.mubr.f32.mxu1 %v3676_v8 }
0x1dc6   :  { %3367 = vmatprep.subr.bf16.mxu1 %v4172_v38 }
0x1dc9   :  { %3369 = vmatpush1.bf16.msra.mxu1 %v4177_v34 }
0x1dca   :  { %3371 = vmatprep.subr.bf16.mxu1 %v4207_v63 }
0x1dcd   :  { %3373 = vmatpush1.bf16.msra.mxu1 %v4209_v0 }
0x1dce   :  { %3375 = vmatprep.subr.bf16.mxu1 %v4230_v45 }
0x1dd1   :  { %3377 = vmatpush1.bf16.msra.mxu1 %v4239_v7 }
0x1dd2   :  { %3395 = vmatprep.subr.bf16.mxu1 %v4139_v29 }
0x1e97   :  { %v1892_v40 = vpop.f32.mrb[20].mxu1 }
0x1e98   :  { %v1897_v26 = vadd.f32 %v1892_v40, %v4294_v30  ;;  %v1894_v52 = vpop.f32.mrb[21].mxu1 }
0x1e99   :  { %v1898_v58 = vadd.f32 %v1894_v52, %v1642_v47 }
0x1e9a   :  { %v3074_v61 = vmul.f32 -1.442695, %v1897_v26 }
0x1e9b   :  { %v3075_v1 = vmul.f32 -1.442695, %v1898_v58 }
0x1e9c   :  { %3573 = vpow2.f32 %v3074_v61 }
0x1e9d   :  { %3575 = vpow2.f32 %v3075_v1 }
0x1ea6   :  { %v3574_v3 = vpop.eup %3573 }
0x1ea7   :  { %v3576_v4 = vpop.eup %3575  ;;  %v1905_v57 = vadd.f32 1.0, %v3574_v3 }
0x1ea8   :  { %v1906_v6 = vadd.f32 1.0, %v3576_v4 }
0x1ea9   :  { %3577 = vrcp.f32 %v1905_v57 }
0x1eaa   :  { %3579 = vrcp.f32 %v1906_v6 }
0x1eb3   :  { %v3578_v16 = vpop.eup %3577 }
0x1eb4   :  { %v3580_v43 = vpop.eup %3579  ;;  %v1911_v9 = vmul.f32 2.0, %v3578_v16  ;;  %v1915_v12 = vmul.f32 %v3578_v16, %v1783_v28 }
0x1eb5   :  { %v1913_v10 = vmul.f32 2.0, %v3580_v43  ;;  %v1926_v14 = vmul.f32 %v3580_v43, %v1794_v41 }
0x1eb6   :  { %v3076_v46 = vadd.f32 -1.0, %v1911_v9 }
0x1eb7   :  { %v3077_v5 = vadd.f32 -1.0, %v1913_v10 }
0x1eb8   :  { %1917 = vrot.lane.b32.xlu1 %v3076_v46, %s3677_s3 }
0x1eb9   :  { %1928 = vrot.lane.b32.xlu0 %v3077_v5, %s3677_s3 }
0x1f2a   :  { %v1918_v30 = vpop.permute.xlu1 %1917 }
0x1f2b   :  { %v1920_v47 = vmul.f32 %v3578_v16, %v1918_v30  ;;  %v1929_v56 = vpop.permute.xlu0 %1928 }
0x1f2c   :  { %v1931_v11 = vmul.f32 %v3580_v43, %v1929_v56 }
0x1f2d   :  { %1922 = vrot.lane.b32.xlu1 %v1920_v47, %s3678_s27 }
0x1f2e   :  { %1933 = vrot.lane.b32.xlu0 %v1931_v11, %s3678_s27 }
0x1f9f   :  { %v1923_v54 = vpop.permute.xlu1 %1922 }
0x1fa0   :  { %v1925_v13 = vadd.f32 %v1923_v54, %v1915_v12  ;;  %v1934_v50 = vpop.permute.xlu0 %1933 }
0x1fa1   :  { %v1936_v17 = vadd.f32 %v1934_v50, %v1926_v14 }
0x1fa2   :  { %1938 = vrot.lane.b32.xlu1 %v1925_v13, %s3679_s28 }
0x2014   :  { %v1939_v18 = vpop.permute.xlu1 %1938 }
0x2015   :  { %v1941_v21 = vsel %vm139_vm0, %v1939_v18, %v1936_v17 }
0x2016   :  { %3581 = vtanh.f32 %v1941_v21 }
0x2020   :  { %v3582_v15 = vpop.eup %3581 }
0x2021   :  { %1948 = vrot.lane.b32.xlu1 %v3582_v15, %s3677_s3  ;;  %1944 = vrot.lane.b32.xlu0 %v3582_v15, %s3679_s28 }
0x2093   :  { %v1949_v53 = vpop.permute.xlu1 %1948  ;;  %v1945_v19 = vpop.permute.xlu0 %1944 }
0x2094   :  { %v1951_v24 = vmul.f32 %v3580_v43, %v1949_v53  ;;  %v1947_v28 = vmul.f32 %v3578_v16, %v1945_v19 }
0x2096   :  { %1958 = vrot.lane.b32.xlu1 %v1951_v24, %s3677_s3  ;;  %1953 = vrot.lane.b32.xlu0 %v1947_v28, %s3678_s27 }
0x2108   :  { %v1959_v22 = vpop.permute.xlu1 %1958  ;;  %v1954_v41 = vpop.permute.xlu0 %1953 }
0x2109   :  { %1961 = vst.msk [vmem:[#allocation3 + $0x30] sm:$0xff] %vm457_vm1, %v1959_v22  ;;  %v1962_v27 = vsel %vm139_vm0, %v1954_v41, %v1959_v22 }
0x210a   :  { %1956 = vst.msk [vmem:[#allocation3 + $0x8] sm:$0xff] %vm139_vm0, %v1954_v41  ;;  %3078 = vmatmul.mubr.msk.f32.vlgmr.msra.gmra.mrb[30].mxu0 %vm317_vm2, %v1962_v27 }
0x210b   :  { %3381 = vmatpush1.bf16.msra.mxu0 %v4150_v33  ;;  %2316 = vmatprep.mubr.f32.mxu0 %v3676_v8 }
0x210c   :  { %3383 = vmatprep.subr.bf16.mxu0 %v4172_v38 }
0x210f   :  { %3385 = vmatpush1.bf16.msra.mxu0 %v4177_v34 }
0x2110   :  { %3387 = vmatprep.subr.bf16.mxu0 %v4207_v63 }
0x2113   :  { %3389 = vmatpush1.bf16.msra.mxu0 %v4209_v0 }
0x2114   :  { %3391 = vmatprep.subr.bf16.mxu0 %v4230_v45 }
0x2117   :  { %3393 = vmatpush1.bf16.msra.mxu0 %v4239_v7 }
0x2118   :  { %3411 = vmatprep.subr.bf16.mxu0 %v4139_v29 }
0x21dd   :  { %v2034_v23 = vpop.f32.mrb[30].mxu0 }
0x21de   :  { %v2039_v20 = vadd.f32 %v2034_v23, %v4298_v42  ;;  %v2036_v31 = vpop.f32.mrb[31].mxu0 }
0x21df   :  { %v2040_v32 = vadd.f32 %v2036_v31, %v4312_v2 }
0x21e0   :  { %v3079_v51 = vmul.f32 -1.442695, %v2039_v20 }
0x21e1   :  { %v3080_v55 = vmul.f32 -1.442695, %v2040_v32 }
0x21e2   :  { %3583 = vpow2.f32 %v3079_v51 }
0x21e3   :  { %3585 = vpow2.f32 %v3080_v55 }
0x21ec   :  { %v3584_v35 = vpop.eup %3583 }
0x21ed   :  { %v3586_v40 = vpop.eup %3585  ;;  %v2047_v26 = vadd.f32 1.0, %v3584_v35 }
0x21ee   :  { %v2048_v52 = vadd.f32 1.0, %v3586_v40 }
0x21ef   :  { %3587 = vrcp.f32 %v2047_v26 }
0x21f0   :  { %3589 = vrcp.f32 %v2048_v52 }
0x21f9   :  { %v3588_v58 = vpop.eup %3587 }
0x21fa   :  { %v3590_v61 = vpop.eup %3589  ;;  %v2053_v1 = vmul.f32 2.0, %v3588_v58  ;;  %v2057_v43 = vmul.f32 %v3588_v58, %v1925_v13 }
0x21fb   :  { %v2055_v3 = vmul.f32 2.0, %v3590_v61  ;;  %v2068_v5 = vmul.f32 %v3590_v61, %v1936_v17 }
0x21fc   :  { %v3081_v4 = vadd.f32 -1.0, %v2053_v1 }
0x21fd   :  { %v3082_v57 = vadd.f32 -1.0, %v2055_v3 }
0x21fe   :  { %2059 = vrot.lane.b32.xlu0 %v3081_v4, %s3677_s3 }
0x21ff   :  { %2070 = vrot.lane.b32.xlu1 %v3082_v57, %s3677_s3 }
0x2270   :  { %v2060_v42 = vpop.permute.xlu0 %2059 }
0x2271   :  { %v2062_v2 = vmul.f32 %v3588_v58, %v2060_v42  ;;  %v2071_v6 = vpop.permute.xlu1 %2070 }
0x2272   :  { %v2073_v16 = vmul.f32 %v3590_v61, %v2071_v6 }
0x2273   :  { %2064 = vrot.lane.b32.xlu0 %v2062_v2, %s3678_s27 }
0x2274   :  { %2075 = vrot.lane.b32.xlu1 %v2073_v16, %s3678_s27 }
0x22e5   :  { %v2065_v9 = vpop.permute.xlu0 %2064 }
0x22e6   :  { %v2067_v10 = vadd.f32 %v2065_v9, %v2057_v43  ;;  %v2076_v46 = vpop.permute.xlu1 %2075 }
0x22e7   :  { %v2078_v30 = vadd.f32 %v2076_v46, %v2068_v5 }
0x22e8   :  { %2080 = vrot.lane.b32.xlu0 %v2067_v10, %s3679_s28 }
0x235a   :  { %v2081_v47 = vpop.permute.xlu0 %2080 }
0x235b   :  { %v2083_v56 = vsel %vm139_vm0, %v2081_v47, %v2078_v30 }
0x235c   :  { %3591 = vtanh.f32 %v2083_v56 }
0x2366   :  { %v3592_v11 = vpop.eup %3591 }
0x2367   :  { %2090 = vrot.lane.b32.xlu0 %v3592_v11, %s3677_s3  ;;  %2086 = vrot.lane.b32.xlu1 %v3592_v11, %s3679_s28 }
0x23d9   :  { %v2091_v12 = vpop.permute.xlu0 %2090  ;;  %v2087_v54 = vpop.permute.xlu1 %2086 }
0x23da   :  { %v2093_v50 = vmul.f32 %v3590_v61, %v2091_v12  ;;  %v2089_v13 = vmul.f32 %v3588_v58, %v2087_v54 }
0x23dc   :  { %2100 = vrot.lane.b32.xlu0 %v2093_v50, %s3677_s3  ;;  %2095 = vrot.lane.b32.xlu1 %v2089_v13, %s3678_s27 }
0x244e   :  { %v2101_v14 = vpop.permute.xlu0 %2100  ;;  %v2096_v17 = vpop.permute.xlu1 %2095 }
0x244f   :  { %2103 = vst.msk [vmem:[#allocation3 + $0x28] sm:$0xff] %vm457_vm1, %v2101_v14  ;;  %v2104_v18 = vsel %vm139_vm0, %v2096_v17, %v2101_v14 }
0x2450   :  { %2098 = vst.msk [vmem:[#allocation3 + $0x10] sm:$0xff] %vm139_vm0, %v2096_v17  ;;  %3083 = vmatmul.mubr.msk.f32.vlgmr.msra.gmra.mrb[22].mxu1 %vm317_vm2, %v2104_v18 }
0x2451   :  { %3397 = vmatpush1.bf16.msra.mxu1 %v4150_v33  ;;  %2458 = vmatprep.mubr.f32.mxu1 %v3676_v8 }
0x2452   :  { %3399 = vmatprep.subr.bf16.mxu1 %v4172_v38 }
0x2455   :  { %3401 = vmatpush1.bf16.msra.mxu1 %v4177_v34 }
0x2456   :  { %3403 = vmatprep.subr.bf16.mxu1 %v4207_v63 }
0x2459   :  { %3405 = vmatpush1.bf16.msra.mxu1 %v4209_v0 }
0x245a   :  { %3407 = vmatprep.subr.bf16.mxu1 %v4230_v45 }
0x245d   :  { %3409 = vmatpush1.bf16.msra.mxu1 %v4239_v7 }
0x245e   :  { %3427 = vmatprep.subr.bf16.mxu1 %v4139_v29 }
0x2523   :  { %v2176_v21 = vpop.f32.mrb[22].mxu1 }
0x2524   :  { %v2181_v15 = vadd.f32 %v2176_v21, %v4302_v49  ;;  %v2178_v53 = vpop.f32.mrb[23].mxu1 }
0x2525   :  { %v2182_v19 = vadd.f32 %v2178_v53, %v4308_v59 }
0x2526   :  { %v3084_v24 = vmul.f32 -1.442695, %v2181_v15 }
0x2527   :  { %v3085_v28 = vmul.f32 -1.442695, %v2182_v19 }
0x2528   :  { %3593 = vpow2.f32 %v3084_v24 }
0x2529   :  { %3595 = vpow2.f32 %v3085_v28 }
0x2532   :  { %v3594_v22 = vpop.eup %3593 }
0x2533   :  { %v3596_v41 = vpop.eup %3595  ;;  %v2189_v27 = vadd.f32 1.0, %v3594_v22 }
0x2534   :  { %v2190_v23 = vadd.f32 1.0, %v3596_v41 }
0x2535   :  { %3597 = vrcp.f32 %v2189_v27 }
0x2536   :  { %3599 = vrcp.f32 %v2190_v23 }
0x253f   :  { %v3598_v20 = vpop.eup %3597 }
0x2540   :  { %v3600_v31 = vpop.eup %3599  ;;  %v2195_v32 = vmul.f32 2.0, %v3598_v20  ;;  %v2199_v26 = vmul.f32 %v3598_v20, %v2067_v10 }
0x2541   :  { %v2197_v29 = vmul.f32 2.0, %v3600_v31  ;;  %v2210_v1 = vmul.f32 %v3600_v31, %v2078_v30 }
0x2542   :  { %v3086_v51 = vadd.f32 -1.0, %v2195_v32 }
0x2543   :  { %v3087_v55 = vadd.f32 -1.0, %v2197_v29 }
0x2544   :  { %2201 = vrot.lane.b32.xlu1 %v3086_v51, %s3677_s3 }
0x2545   :  { %2212 = vrot.lane.b32.xlu0 %v3087_v55, %s3677_s3 }
0x25b6   :  { %v2202_v49 = vpop.permute.xlu1 %2201 }
0x25b7   :  { %v2204_v59 = vmul.f32 %v3598_v20, %v2202_v49  ;;  %v2213_v35 = vpop.permute.xlu0 %2212 }
0x25b8   :  { %v2215_v40 = vmul.f32 %v3600_v31, %v2213_v35 }
0x25b9   :  { %2206 = vrot.lane.b32.xlu1 %v2204_v59, %s3678_s27 }
0x25ba   :  { %2217 = vrot.lane.b32.xlu0 %v2215_v40, %s3678_s27 }
0x262b   :  { %v2207_v52 = vpop.permute.xlu1 %2206 }
0x262c   :  { %v2209_v58 = vadd.f32 %v2207_v52, %v2199_v26  ;;  %v2218_v61 = vpop.permute.xlu0 %2217 }
0x262d   :  { %v2220_v3 = vadd.f32 %v2218_v61, %v2210_v1 }
0x262e   :  { %2222 = vrot.lane.b32.xlu1 %v2209_v58, %s3679_s28 }
0x26a0   :  { %v2223_v4 = vpop.permute.xlu1 %2222 }
0x26a1   :  { %v2225_v57 = vsel %vm139_vm0, %v2223_v4, %v2220_v3 }
0x26a2   :  { %3601 = vtanh.f32 %v2225_v57 }
0x26ac   :  { %v3602_v42 = vpop.eup %3601 }
0x26ad   :  { %2232 = vrot.lane.b32.xlu1 %v3602_v42, %s3677_s3  ;;  %2228 = vrot.lane.b32.xlu0 %v3602_v42, %s3679_s28 }
0x271f   :  { %v2233_v2 = vpop.permute.xlu1 %2232  ;;  %v2229_v6 = vpop.permute.xlu0 %2228 }
0x2720   :  { %v2235_v16 = vmul.f32 %v3600_v31, %v2233_v2  ;;  %v2231_v43 = vmul.f32 %v3598_v20, %v2229_v6 }
0x2722   :  { %2242 = vrot.lane.b32.xlu1 %v2235_v16, %s3677_s3  ;;  %2237 = vrot.lane.b32.xlu0 %v2231_v43, %s3678_s27 }
0x2794   :  { %v2243_v9 = vpop.permute.xlu1 %2242  ;;  %v2238_v10 = vpop.permute.xlu0 %2237 }
0x2795   :  { %2245 = vst.msk [vmem:[#allocation3 + $0x20] sm:$0xff] %vm457_vm1, %v2243_v9  ;;  %v2246_v46 = vsel %vm139_vm0, %v2238_v10, %v2243_v9 }
0x2796   :  { %2240 = vst.msk [vmem:[#allocation3 + $0x18] sm:$0xff] %vm139_vm0, %v2238_v10  ;;  %3088 = vmatmul.mubr.msk.f32.vlgmr.msra.gmra.mrb[32].mxu0 %vm317_vm2, %v2246_v46 }
0x2797   :  { %3413 = vmatpush1.bf16.msra.mxu0 %v4150_v33  ;;  %2600 = vmatprep.mubr.f32.mxu0 %v3676_v8 }
0x2798   :  { %3415 = vmatprep.subr.bf16.mxu0 %v4172_v38 }
0x279b   :  { %3417 = vmatpush1.bf16.msra.mxu0 %v4177_v34 }
0x279c   :  { %3419 = vmatprep.subr.bf16.mxu0 %v4207_v63 }
0x279f   :  { %3421 = vmatpush1.bf16.msra.mxu0 %v4209_v0 }
0x27a0   :  { %3423 = vmatprep.subr.bf16.mxu0 %v4230_v45 }
0x27a3   :  { %3425 = vmatpush1.bf16.msra.mxu0 %v4239_v7 }
0x2869   :  { %v2318_v5 = vpop.f32.mrb[32].mxu0 }
0x286a   :  { %v2323_v30 = vadd.f32 %v2318_v5, %v4306_v39  ;;  %v2320_v47 = vpop.f32.mrb[33].mxu0 }
0x286b   :  { %v2324_v56 = vadd.f32 %v2320_v47, %v4304_v36 }
0x286c   :  { %v3089_v11 = vmul.f32 -1.442695, %v2323_v30 }
0x286d   :  { %v3090_v12 = vmul.f32 -1.442695, %v2324_v56 }
0x286e   :  { %3603 = vpow2.f32 %v3089_v11 }
0x286f   :  { %3605 = vpow2.f32 %v3090_v12 }
0x2878   :  { %v3604_v54 = vpop.eup %3603 }
0x2879   :  { %v3606_v50 = vpop.eup %3605  ;;  %v2331_v13 = vadd.f32 1.0, %v3604_v54 }
0x287a   :  { %v2332_v14 = vadd.f32 1.0, %v3606_v50 }
0x287b   :  { %3607 = vrcp.f32 %v2331_v13 }
0x287c   :  { %3609 = vrcp.f32 %v2332_v14 }
0x2885   :  { %v3608_v17 = vpop.eup %3607 }
0x2886   :  { %v3610_v18 = vpop.eup %3609  ;;  %v2337_v21 = vmul.f32 2.0, %v3608_v17  ;;  %v2341_v22 = vmul.f32 %v3608_v17, %v2209_v58 }
0x2887   :  { %v2339_v15 = vmul.f32 2.0, %v3610_v18  ;;  %v2352_v20 = vmul.f32 %v3610_v18, %v2220_v3 }
0x2888   :  { %v3091_v53 = vadd.f32 -1.0, %v2337_v21 }
0x2889   :  { %v3092_v19 = vadd.f32 -1.0, %v2339_v15 }
0x288a   :  { %2343 = vrot.lane.b32.xlu0 %v3091_v53, %s3677_s3 }
0x288b   :  { %2354 = vrot.lane.b32.xlu1 %v3092_v19, %s3677_s3 }
0x28fc   :  { %v2344_v36 = vpop.permute.xlu0 %2343 }
0x28fd   :  { %v2346_v39 = vmul.f32 %v3608_v17, %v2344_v36  ;;  %v2355_v24 = vpop.permute.xlu1 %2354 }
0x28fe   :  { %v2357_v28 = vmul.f32 %v3610_v18, %v2355_v24 }
0x28ff   :  { %2348 = vrot.lane.b32.xlu0 %v2346_v39, %s3678_s27 }
0x2900   :  { %2359 = vrot.lane.b32.xlu1 %v2357_v28, %s3678_s27 }
0x2971   :  { %v2349_v41 = vpop.permute.xlu0 %2348 }
0x2972   :  { %v2351_v27 = vadd.f32 %v2349_v41, %v2341_v22  ;;  %v2360_v23 = vpop.permute.xlu1 %2359 }
0x2973   :  { %v2362_v31 = vadd.f32 %v2360_v23, %v2352_v20 }
0x2974   :  { %2364 = vrot.lane.b32.xlu0 %v2351_v27, %s3679_s28 }
0x29e6   :  { %v2365_v32 = vpop.permute.xlu0 %2364 }
0x29e7   :  { %v2367_v29 = vsel %vm139_vm0, %v2365_v32, %v2362_v31 }
0x29e8   :  { %3611 = vtanh.f32 %v2367_v29 }
0x29f2   :  { %v3612_v51 = vpop.eup %3611 }
0x29f3   :  { %2374 = vrot.lane.b32.xlu0 %v3612_v51, %s3677_s3  ;;  %2370 = vrot.lane.b32.xlu1 %v3612_v51, %s3679_s28 }
0x2a65   :  { %v2375_v55 = vpop.permute.xlu0 %2374  ;;  %v2371_v49 = vpop.permute.xlu1 %2370 }
0x2a66   :  { %v2377_v59 = vmul.f32 %v3610_v18, %v2375_v55  ;;  %v2373_v35 = vmul.f32 %v3608_v17, %v2371_v49 }
0x2a68   :  { %2384 = vrot.lane.b32.xlu0 %v2377_v59, %s3677_s3  ;;  %2379 = vrot.lane.b32.xlu1 %v2373_v35, %s3678_s27 }
0x2ada   :  { %v2385_v40 = vpop.permute.xlu0 %2384  ;;  %v2380_v26 = vpop.permute.xlu1 %2379 }
0x2adb   :  { %2387 = vst.msk [vmem:[#allocation3 + $0x18] sm:$0xff] %vm457_vm1, %v2385_v40  ;;  %v2388_v52 = vsel %vm139_vm0, %v2380_v26, %v2385_v40 }
0x2adc   :  { %2382 = vst.msk [vmem:[#allocation3 + $0x20] sm:$0xff] %vm139_vm0, %v2380_v26  ;;  %3093 = vmatmul.mubr.msk.f32.vlgmr.msra.gmra.mrb[24].mxu1 %vm317_vm2, %v2388_v52 }
0x2add   :  { %3429 = vmatpush1.bf16.msra.mxu1 %v4150_v33  ;;  %2742 = vmatprep.mubr.f32.mxu1 %v3676_v8 }
0x2ade   :  { %3431 = vmatprep.subr.bf16.mxu1 %v4172_v38 }
0x2ae1   :  { %3433 = vmatpush1.bf16.msra.mxu1 %v4177_v34 }
0x2ae2   :  { %3435 = vmatprep.subr.bf16.mxu1 %v4207_v63 }
0x2ae5   :  { %3437 = vmatpush1.bf16.msra.mxu1 %v4209_v0 }
0x2ae6   :  { %3439 = vmatprep.subr.bf16.mxu1 %v4230_v45 }
0x2ae9   :  { %3441 = vmatpush1.bf16.msra.mxu1 %v4239_v7 }
0x2baf   :  { %v2460_v58 = vpop.f32.mrb[24].mxu1 }
0x2bb0   :  { %v2465_v61 = vadd.f32 %v2460_v58, %v4310_v62  ;;  %v2462_v1 = vpop.f32.mrb[25].mxu1 }
0x2bb1   :  { %v2466_v33 = vadd.f32 %v2462_v1, %v4300_v48 }
0x2bb2   :  { %v3094_v3 = vmul.f32 -1.442695, %v2465_v61 }
0x2bb3   :  { %v3095_v8 = vmul.f32 -1.442695, %v2466_v33 }
0x2bb4   :  { %3613 = vpow2.f32 %v3094_v3 }
0x2bb5   :  { %3615 = vpow2.f32 %v3095_v8 }
0x2bbe   :  { %v3614_v38 = vpop.eup %3613 }
0x2bbf   :  { %v3616_v34 = vpop.eup %3615  ;;  %v2473_v4 = vadd.f32 1.0, %v3614_v38 }
0x2bc0   :  { %v2474_v63 = vadd.f32 1.0, %v3616_v34 }
0x2bc1   :  { %3617 = vrcp.f32 %v2473_v4 }
0x2bc2   :  { %3619 = vrcp.f32 %v2474_v63 }
0x2bcb   :  { %v3618_v0 = vpop.eup %3617 }
0x2bcc   :  { %v3620_v45 = vpop.eup %3619  ;;  %v2479_v57 = vmul.f32 2.0, %v3618_v0  ;;  %v2483_v43 = vmul.f32 %v3618_v0, %v2351_v27 }
0x2bcd   :  { %v2481_v7 = vmul.f32 2.0, %v3620_v45  ;;  %v2494_v5 = vmul.f32 %v3620_v45, %v2362_v31 }
0x2bce   :  { %v3096_v42 = vadd.f32 -1.0, %v2479_v57 }
0x2bcf   :  { %v3097_v2 = vadd.f32 -1.0, %v2481_v7 }
0x2bd0   :  { %2485 = vrot.lane.b32.xlu1 %v3096_v42, %s3677_s3 }
0x2bd1   :  { %2496 = vrot.lane.b32.xlu0 %v3097_v2, %s3677_s3 }
0x2c42   :  { %v2486_v48 = vpop.permute.xlu1 %2485 }
0x2c43   :  { %v2488_v62 = vmul.f32 %v3618_v0, %v2486_v48  ;;  %v2497_v6 = vpop.permute.xlu0 %2496 }
0x2c44   :  { %v2499_v16 = vmul.f32 %v3620_v45, %v2497_v6 }
0x2c45   :  { %2490 = vrot.lane.b32.xlu1 %v2488_v62, %s3678_s27 }
0x2c46   :  { %2501 = vrot.lane.b32.xlu0 %v2499_v16, %s3678_s27 }
0x2cb7   :  { %v2491_v9 = vpop.permute.xlu1 %2490 }
0x2cb8   :  { %v2493_v10 = vadd.f32 %v2491_v9, %v2483_v43  ;;  %v2502_v46 = vpop.permute.xlu0 %2501 }
0x2cb9   :  { %v2504_v30 = vadd.f32 %v2502_v46, %v2494_v5 }
0x2cba   :  { %2506 = vrot.lane.b32.xlu1 %v2493_v10, %s3679_s28 }
0x2d2c   :  { %v2507_v47 = vpop.permute.xlu1 %2506 }
0x2d2d   :  { %v2509_v56 = vsel %vm139_vm0, %v2507_v47, %v2504_v30 }
0x2d2e   :  { %3621 = vtanh.f32 %v2509_v56 }
0x2d38   :  { %v3622_v11 = vpop.eup %3621 }
0x2d39   :  { %2516 = vrot.lane.b32.xlu1 %v3622_v11, %s3677_s3  ;;  %2512 = vrot.lane.b32.xlu0 %v3622_v11, %s3679_s28 }
0x2dab   :  { %v2517_v12 = vpop.permute.xlu1 %2516  ;;  %v2513_v54 = vpop.permute.xlu0 %2512 }
0x2dac   :  { %v2519_v50 = vmul.f32 %v3620_v45, %v2517_v12  ;;  %v2515_v13 = vmul.f32 %v3618_v0, %v2513_v54 }
0x2dae   :  { %2526 = vrot.lane.b32.xlu1 %v2519_v50, %s3677_s3  ;;  %2521 = vrot.lane.b32.xlu0 %v2515_v13, %s3678_s27 }
0x2e20   :  { %v2527_v14 = vpop.permute.xlu1 %2526  ;;  %v2522_v17 = vpop.permute.xlu0 %2521 }
0x2e21   :  { %2529 = vst.msk [vmem:[#allocation3 + $0x10] sm:$0xff] %vm457_vm1, %v2527_v14  ;;  %v2530_v18 = vsel %vm139_vm0, %v2522_v17, %v2527_v14 }
0x2e22   :  { %2524 = vst.msk [vmem:[#allocation3 + $0x28] sm:$0xff] %vm139_vm0, %v2522_v17  ;;  %3098 = vmatmul.mubr.msk.f32.vlgmr.msra.gmra.mrb[34].mxu0 %vm317_vm2, %v2530_v18 }
0x2ef5   :  { %v2602_v21 = vpop.f32.mrb[34].mxu0 }
0x2ef6   :  { %v2607_v15 = vadd.f32 %v2602_v21, %v4314_v44  ;;  %v2604_v53 = vpop.f32.mrb[35].mxu0  ;;  %v2822_v21 = vld [vmem:[%s4551_s8] sm:$0xff] }
0x2ef7   :  { %v2608_v19 = vadd.f32 %v2604_v53, %v4296_v37  ;;  %v2824_v53 = vld [vmem:[%s4551_s8 + $0x10] sm:$0xff] }
0x2ef8   :  { %v3099_v36 = vmul.f32 -1.442695, %v2607_v15  ;;  %v2823_v15 = vld [vmem:[%s4551_s8 + $0x8] sm:$0xff] }
0x2ef9   :  { %v3100_v39 = vmul.f32 -1.442695, %v2608_v19  ;;  %v3442_v19 = vpack.c.bf16 %v2823_v15, %v2822_v21 }
0x2efa   :  { %3623 = vpow2.f32 %v3099_v36  ;;  %v2825_v36 = vld [vmem:[%s4551_s8 + $0x18] sm:$0xff] }
0x2efb   :  { %3625 = vpow2.f32 %v3100_v39  ;;  %v3446_v39 = vpack.c.bf16 %v2825_v36, %v2824_v53  ;;  %3443 = vmatprep.subr.bf16.mxu0 %v3442_v19 }
0x2efc   :  { %3445 = vmatpush3.bf16.msra.mxu0 %v3442_v19 }
0x2efd   :  { %3447 = vmatprep.subr.bf16.mxu0 %v3446_v39 }
0x2f00   :  { %3449 = vmatpush3.bf16.msra.mxu0 %v3446_v39 }
0x2f04   :  { %v3624_v24 = vpop.eup %3623 }
0x2f05   :  { %v3626_v28 = vpop.eup %3625  ;;  %v2615_v22 = vadd.f32 1.0, %v3624_v24 }
0x2f06   :  { %v2616_v41 = vadd.f32 1.0, %v3626_v28  ;;  %v2826_v28 = vld [vmem:[%s4551_s8 + $0x20] sm:$0xff] }
0x2f07   :  { %3627 = vrcp.f32 %v2615_v22  ;;  %v2827_v22 = vld [vmem:[%s4551_s8 + $0x28] sm:$0xff] }
0x2f08   :  { %3629 = vrcp.f32 %v2616_v41  ;;  %v3450_v41 = vpack.c.bf16 %v2827_v22, %v2826_v28 }
0x2f0a   :  { %3451 = vmatprep.subr.bf16.mxu0 %v3450_v41 }
0x2f0b   :  { %3453 = vmatpush3.bf16.msra.mxu0 %v3450_v41 }
0x2f11   :  { %v3628_v27 = vpop.eup %3627 }
0x2f12   :  { %v3630_v23 = vpop.eup %3629  ;;  %v2621_v20 = vmul.f32 2.0, %v3628_v27  ;;  %v2625_v49 = vmul.f32 %v3628_v27, %v2493_v10 }
0x2f13   :  { %v2623_v31 = vmul.f32 2.0, %v3630_v23  ;;  %v2636_v26 = vmul.f32 %v3630_v23, %v2504_v30 }
0x2f14   :  { %v3101_v32 = vadd.f32 -1.0, %v2621_v20 }
0x2f15   :  { %v3102_v29 = vadd.f32 -1.0, %v2623_v31 }
0x2f16   :  { %2627 = vrot.lane.b32.xlu0 %v3101_v32, %s3677_s3 }
0x2f17   :  { %2638 = vrot.lane.b32.xlu1 %v3102_v29, %s3677_s3 }
0x2f88   :  { %v2628_v37 = vpop.permute.xlu0 %2627 }
0x2f89   :  { %v2630_v44 = vmul.f32 %v3628_v27, %v2628_v37  ;;  %v2639_v51 = vpop.permute.xlu1 %2638 }
0x2f8a   :  { %v2641_v55 = vmul.f32 %v3630_v23, %v2639_v51 }
0x2f8b   :  { %2632 = vrot.lane.b32.xlu0 %v2630_v44, %s3678_s27 }
0x2f8c   :  { %2643 = vrot.lane.b32.xlu1 %v2641_v55, %s3678_s27 }
0x2ffd   :  { %v2633_v59 = vpop.permute.xlu0 %2632 }
0x2ffe   :  { %v2635_v35 = vadd.f32 %v2633_v59, %v2625_v49  ;;  %v2644_v40 = vpop.permute.xlu1 %2643  ;;  %v2816_v59 = vld [vmem:[#allocation3 + $0x10] sm:$0xff] }
0x2fff   :  { %v2646_v52 = vadd.f32 %v2644_v40, %v2636_v26  ;;  %v2818_v40 = vld [vmem:[#allocation3 + $0x20] sm:$0xff]  ;;  %v2819_v26 = vld [vmem:[#allocation3 + $0x28] sm:$0xff] }
0x3000   :  { %2648 = vrot.lane.b32.xlu0 %v2635_v35, %s3679_s28 }
0x3072   :  { %v2649_v58 = vpop.permute.xlu0 %2648 }
0x3073   :  { %v2651_v61 = vsel %vm139_vm0, %v2649_v58, %v2646_v52 }
0x3074   :  { %3631 = vtanh.f32 %v2651_v61  ;;  %v3108_v61 = vld [vmem:[%s4552_s9] ss:$0 sm:$0xff] }
0x307e   :  { %v3632_v1 = vpop.eup %3631 }
0x307f   :  { %2658 = vrot.lane.b32.xlu0 %v3632_v1, %s3677_s3  ;;  %2654 = vrot.lane.b32.xlu1 %v3632_v1, %s3679_s28 }
0x30f1   :  { %v2659_v33 = vpop.permute.xlu0 %2658  ;;  %v2655_v3 = vpop.permute.xlu1 %2654 }
0x30f2   :  { %v2661_v8 = vmul.f32 %v3630_v23, %v2659_v33  ;;  %v2657_v38 = vmul.f32 %v3628_v27, %v2655_v3  ;;  %v2828_v27 = vld [vmem:[%s4551_s8 + $0x30] sm:$0xff]  ;;  %v2829_v23 = vld [vmem:[%s4551_s8 + $0x38] sm:$0xff] }
0x30f3   :  { %v3454_v20 = vpack.c.bf16 %v2829_v23, %v2828_v27 }
0x30f4   :  { %2668 = vrot.lane.b32.xlu0 %v2661_v8, %s3677_s3  ;;  %2663 = vrot.lane.b32.xlu1 %v2657_v38, %s3678_s27 }
0x30f5   :  { %3455 = vmatprep.subr.bf16.mxu0 %v3454_v20 }
0x30f6   :  { %3457 = vmatpush3.bf16.msra.mxu0 %v3454_v20 }
0x3166   :  { %v2669_v34 = vpop.permute.xlu0 %2668  ;;  %v2664_v4 = vpop.permute.xlu1 %2663 }
0x3167   :  { %2671 = vst.msk [vmem:[#allocation3 + $0x8] sm:$0xff] %vm457_vm1, %v2669_v34  ;;  %v2672_v63 = vsel %vm139_vm0, %v2664_v4, %v2669_v34 }
0x3168   :  { %2666 = vst.msk [vmem:[#allocation3 + $0x30] sm:$0xff] %vm139_vm0, %v2664_v4  ;;  %3103 = vmatmul.mubr.msk.f32.vlgmr.msra.gmra.mrb[26].mxu1 %vm317_vm2, %v2672_v63 }
0x316e   :  { %v2815_v49 = vld [vmem:[#allocation3 + $0x8] sm:$0xff] }
0x323b   :  { %v2744_v0 = vpop.f32.mrb[26].mxu1 }
0x323c   :  { %v2749_v45 = vadd.f32 %v2744_v0, %v4316_v60  ;;  %v2746_v57 = vpop.f32.mrb[27].mxu1 }
0x323d   :  { %v2750_v7 = vadd.f32 %v2746_v57, %v4292_v25 }
0x323e   :  { %v3104_v42 = vmul.f32 -1.442695, %v2749_v45 }
0x323f   :  { %v3105_v2 = vmul.f32 -1.442695, %v2750_v7 }
0x3240   :  { %3633 = vpow2.f32 %v3104_v42 }
0x3241   :  { %3635 = vpow2.f32 %v3105_v2 }
0x324a   :  { %v3634_v48 = vpop.eup %3633 }
0x324b   :  { %v3636_v62 = vpop.eup %3635  ;;  %v2757_v6 = vadd.f32 1.0, %v3634_v48 }
0x324c   :  { %v2758_v16 = vadd.f32 1.0, %v3636_v62 }
0x324d   :  { %3637 = vrcp.f32 %v2757_v6 }
0x324e   :  { %3639 = vrcp.f32 %v2758_v16 }
0x3257   :  { %v3638_v43 = vpop.eup %3637 }
0x3258   :  { %v3640_v9 = vpop.eup %3639  ;;  %v2763_v10 = vmul.f32 2.0, %v3638_v43  ;;  %v2767_v11 = vmul.f32 %v3638_v43, %v2635_v35  ;;  %v2817_v35 = vld [vmem:[#allocation3 + $0x18] sm:$0xff] }
0x3259   :  { %v2765_v46 = vmul.f32 2.0, %v3640_v9  ;;  %v2778_v13 = vmul.f32 %v3640_v9, %v2646_v52  ;;  %v2820_v52 = vld [vmem:[#allocation3 + $0x30] sm:$0xff] }
0x325a   :  { %v3106_v5 = vadd.f32 -1.0, %v2763_v10 }
0x325b   :  { %v3107_v30 = vadd.f32 -1.0, %v2765_v46 }
0x325c   :  { %2769 = vrot.lane.b32.xlu1 %v3106_v5, %s3677_s3 }
0x325d   :  { %2780 = vrot.lane.b32.xlu0 %v3107_v30, %s3677_s3 }
0x32ce   :  { %v2770_v25 = vpop.permute.xlu1 %2769 }
0x32cf   :  { %v2772_v60 = vmul.f32 %v3638_v43, %v2770_v25  ;;  %v2781_v47 = vpop.permute.xlu0 %2780 }
0x32d0   :  { %v2783_v56 = vmul.f32 %v3640_v9, %v2781_v47 }
0x32d1   :  { %2774 = vrot.lane.b32.xlu1 %v2772_v60, %s3678_s27 }
0x32d2   :  { %2785 = vrot.lane.b32.xlu0 %v2783_v56, %s3678_s27 }
0x3343   :  { %v2775_v12 = vpop.permute.xlu1 %2774 }
0x3344   :  { %v2777_v54 = vadd.f32 %v2775_v12, %v2767_v11  ;;  %v2786_v50 = vpop.permute.xlu0 %2785 }
0x3345   :  { %v2788_v14 = vadd.f32 %v2786_v50, %v2778_v13 }
0x3346   :  { %2790 = vrot.lane.b32.xlu1 %v2777_v54, %s3679_s28 }
0x33b8   :  { %v2791_v17 = vpop.permute.xlu1 %2790 }
0x33b9   :  { %v2793_v18 = vsel %vm139_vm0, %v2791_v17, %v2788_v14 }
0x33ba   :  { %3641 = vtanh.f32 %v2793_v18 }
0x33c4   :  { %v3642_v24 = vpop.eup %3641 }
0x33c5   :  { %2796 = vrot.lane.b32.xlu1 %v3642_v24, %s3679_s28  ;;  %2800 = vrot.lane.b32.xlu0 %v3642_v24, %s3677_s3 }
0x3437   :  { %v2797_v31 = vpop.permute.xlu1 %2796  ;;  %v2801_v32 = vpop.permute.xlu0 %2800 }
0x3438   :  { %v2799_v29 = vmul.f32 %v3638_v43, %v2797_v31  ;;  %v2803_v37 = vmul.f32 %v3640_v9, %v2801_v32 }
0x343a   :  { %2805 = vrot.lane.b32.xlu1 %v2799_v29, %s3678_s27  ;;  %2810 = vrot.lane.b32.xlu0 %v2803_v37, %s3677_s3 }
0x34ac   :  { %v2806_v44 = vpop.permute.xlu1 %2805  ;;  %v2811_v51 = vpop.permute.xlu0 %2810 }
0x34ad   :  { %2808 = vst.msk [vmem:[#allocation3 + $0x38] sm:$0xff] %vm139_vm0, %v2806_v44 }
0x34ae   :  { %2813 = vst.msk [vmem:[#allocation3] sm:$0xff] %vm457_vm1, %v2811_v51 }
0x34b4   :  { %v2821_v58 = vld [vmem:[#allocation3 + $0x38] sm:$0xff] }
0x34b5   :  { %v2814_v55 = vld [vmem:[#allocation3] sm:$0xff] }
0x34b6   :  { %3150 = vmatprep.mubr.msk.f32.mxu0 %vm317_vm2, %v2814_v55 }
0x34b7   :  { %3151 = vmatmul.mubr.msk.f32.vlgmr.msra.gmra.mrb[36].mxu0 %vm317_vm2, %v2815_v49 }
0x34b8   :  { %3153 = vmatprep.mubr.msk.f32.mxu0 %vm317_vm2, %v2816_v59 }
0x34bb   :  { %3154 = vmatmul.mubr.msk.f32.gmra.mrb[38].mxu0 %vm317_vm2, %v2817_v35 }
0x34bc   :  { %3156 = vmatprep.mubr.msk.f32.mxu0 %vm317_vm2, %v2818_v40 }
0x34bf   :  { %3157 = vmatmul.mubr.msk.f32.gmra.mrb[40].mxu0 %vm317_vm2, %v2819_v26 }
0x34c0   :  { %3159 = vmatprep.mubr.msk.f32.mxu0 %vm317_vm2, %v2820_v52 }
0x34c3   :  { %3160 = vmatmul.mubr.msk.f32.gmra.mrb[42].mxu0 %vm317_vm2, %v2821_v58 }
0x358a   :  { %v3152_v1 = vpop.f32.mrb[36].mxu0 }
0x358b   :  { %v2933_v33 = vadd.f32 %v3152_v1, %v3108_v61  ;;  %v2927_v3 = vpop.f32.mrb[37].mxu0 }
0x358c   :  { %v2928_v8 = vadd.f32 %v3108_v61, %v2927_v3 }
0x358d   :  { %2967 = vst [vmem:[%s4553_s10 + $0x8] sm:$0xff] %v2933_v33 }
0x358e   :  { %2966 = vst [vmem:[%s4553_s10] sm:$0xff] %v2928_v8  ;;  %v3155_v38 = vpop.f32.mrb[38].mxu0 }
0x358f   :  { %v2943_v34 = vadd.f32 %v3155_v38, %v3108_v61  ;;  %v2937_v4 = vpop.f32.mrb[39].mxu0 }
0x3590   :  { %v2938_v63 = vadd.f32 %v3108_v61, %v2937_v4 }
0x3591   :  { %2969 = vst [vmem:[%s4553_s10 + $0x18] sm:$0xff] %v2943_v34 }
0x3592   :  { %2968 = vst [vmem:[%s4553_s10 + $0x10] sm:$0xff] %v2938_v63  ;;  %v3158_v0 = vpop.f32.mrb[40].mxu0 }
0x3593   :  { %v2953_v45 = vadd.f32 %v3158_v0, %v3108_v61  ;;  %v2947_v57 = vpop.f32.mrb[41].mxu0 }
0x3594   :  { %v2948_v7 = vadd.f32 %v3108_v61, %v2947_v57 }
0x3595   :  { %2971 = vst [vmem:[%s4553_s10 + $0x28] sm:$0xff] %v2953_v45 }
0x3596   :  { %2970 = vst [vmem:[%s4553_s10 + $0x20] sm:$0xff] %v2948_v7  ;;  %v3161_v42 = vpop.f32.mrb[42].mxu0 }
0x3597   :  { %v2963_v2 = vadd.f32 %v3161_v42, %v3108_v61  ;;  %v2957_v48 = vpop.f32.mrb[43].mxu0 }
0x3598   :  { %v2958_v62 = vadd.f32 %v3108_v61, %v2957_v48 }
0x3599   :  { %2973 = vst [vmem:[%s4553_s10 + $0x38] sm:$0xff] %v2963_v2 }
0x359a   :  { %2972 = vst [vmem:[%s4553_s10 + $0x30] sm:$0xff] %v2958_v62 }
0x359b   :  { %2978 = vsyncpa [#allocation7], 1 }
0x359c   :  { %2979 = vsyncmov [#allocation5] }
0x359f   :  { %s2980_s1 = vpop.sfrf %2979 }
0x35a0   :  { %p3117_p8 = scmp.ne.s32.totalorder %s2980_s1, 0 }
0x35a2   :  { %2984 = shalt.err (%p3117_p8)  }

</bundles_post_ra>
